<compile_context>
chip_gen: v7x
topology: tpu7x:2x2x1
jax: 0.10.0
libtpu: 0.0.40
codegen_flags: <defaults>
</compile_context>

<pallas_src>
import math

import jax
import jax.numpy as jnp
from jax.experimental import pallas as pl
from jax.experimental.pallas import tpu as pltpu


def edge_attn_kernel(q_ref, k_ref, v_ref, m_ref,
                     wq_ref, wk_ref, bh_ref, wo_ref, bo_ref,
                     out_ref, p_ref):
    _, H, N, d_k = q_ref.shape

    mask = m_ref[0]                     # (N, N), shared by all H heads of this batch
    v = v_ref[0]                        # (H, N, d_k)

    # One MXU pass over all heads; b_h folded into the key half here (item 2).
    q2 = q_ref[0].reshape(H * N, d_k)
    k2 = k_ref[0].reshape(H * N, d_k)
    aq = jnp.dot(q2, wq_ref[...], preferred_element_type=jnp.float32)              # (H*N, d_k)
    ak = jnp.dot(k2, wk_ref[...], preferred_element_type=jnp.float32) + bh_ref[...]  # (H*N, d_k)

    wo = [wo_ref[d] for d in range(d_k)]   # scalar weights from SMEM
    bo = bo_ref[0]

    for h in range(H):
        aq_h = aq[h * N:(h + 1) * N, :]        # (N, d_k)  queries on sublanes
        akT_h = ak[h * N:(h + 1) * N, :].T     # (d_k, N)  keys on lanes

        # scores[i, j] = b_o + sum_d wo[d] * LeakyReLU(aq_h[i, d] + akT_h[d, j]),
        # accumulated as lane-dense (N, N) slabs -- no (N, N, d_k) intermediate,
        # no cross-lane reduction.
        scores = jnp.zeros((N, N), jnp.float32)
        for d in range(d_k):
            slab = aq_h[:, d:d + 1] + akT_h[d:d + 1, :]        # (N, N)
            slab = jnp.where(slab >= 0, slab, 0.2 * slab)      # LeakyReLU(0.2)
            scores = scores + wo[d] * slab
        scores = scores + bo

        # masked_fill(mask == 0, -1e9) then softmax over keys.
        scores = jnp.where(mask == 0.0, jnp.float32(-1.0e9), scores)
        scores = scores - jnp.max(scores, axis=-1, keepdims=True)
        e = jnp.exp(scores)
        # approx=True would use the (idle) EUP but risks the 1e-5 p_attn tolerance.
        p = e * pl.reciprocal(jnp.sum(e, axis=-1, keepdims=True), approx=False)

        p_ref[0, h] = p.astype(p_ref.dtype)
        out_ref[0, h] = jnp.dot(p, v[h],
                                preferred_element_type=jnp.float32).astype(out_ref.dtype)
    # TODO(synk): optional dropout on p_attn (module's dropout arg) not implemented;
    # forward is evaluated with dropout=None.


def edge_guided_attention(query, key, value, mask, W_h, b_h, W_o, b_o):
    """query/key/value: (B, H, N, d_k); mask: (B, 1, N, N).

    Returns (context (B, H, N, d_k), p_attn (B, H, N, N)).
    """
    B, H, N, d_k = query.shape

    qf = query.astype(jnp.float32)
    kf = key.astype(jnp.float32)
    vf = value.astype(jnp.float32)
    # No head broadcast in HBM: keep the mask as (B, N, N), one block per batch.
    mf = mask.reshape(B, N, N).astype(jnp.float32)

    # Split the 2*d_k linear into query- and key-halves (pre-transposed for x @ W).
    wq = jnp.asarray(W_h[:, :d_k].T, jnp.float32)       # (d_k, d_k)
    wk = jnp.asarray(W_h[:, d_k:].T, jnp.float32)       # (d_k, d_k)
    bh = jnp.asarray(b_h, jnp.float32).reshape(1, d_k)  # folded into key projection
    wo = jnp.asarray(W_o, jnp.float32).reshape(-1)      # (d_k,)  -> SMEM scalars
    bo = jnp.asarray(b_o, jnp.float32).reshape(-1)      # (1,)    -> SMEM scalar

    out, p_attn = pl.pallas_call(
        edge_attn_kernel,
        out_shape=(
            jax.ShapeDtypeStruct((B, H, N, d_k), jnp.float32),
            jax.ShapeDtypeStruct((B, H, N, N), jnp.float32),
        ),
        grid=(B,),
        in_specs=[
            pl.BlockSpec((1, H, N, d_k), lambda b: (b, 0, 0, 0)),   # q
            pl.BlockSpec((1, H, N, d_k), lambda b: (b, 0, 0, 0)),   # k
            pl.BlockSpec((1, H, N, d_k), lambda b: (b, 0, 0, 0)),   # v
            pl.BlockSpec((1, N, N), lambda b: (b, 0, 0)),           # mask (per batch)
            pl.BlockSpec((d_k, d_k), lambda b: (0, 0)),             # Wq
            pl.BlockSpec((d_k, d_k), lambda b: (0, 0)),             # Wk
            pl.BlockSpec((1, d_k), lambda b: (0, 0)),               # b_h
            pl.BlockSpec(memory_space=pltpu.MemorySpace.SMEM),      # W_o (scalars)
            pl.BlockSpec(memory_space=pltpu.MemorySpace.SMEM),      # b_o (scalar)
        ],
        out_specs=(
            pl.BlockSpec((1, H, N, d_k), lambda b: (b, 0, 0, 0)),
            pl.BlockSpec((1, H, N, N), lambda b: (b, 0, 0, 0)),
        ),
        compiler_params=pltpu.CompilerParams(
            dimension_semantics=("parallel",)),
    )(qf, kf, vf, mf, wq, wk, bh, wo, bo)

    return out, p_attn


def reference(query, key, value, mask, W_h, b_h, W_o, b_o):
    """Plain-JAX transcription of the PyTorch forward (for verification)."""
    B, H, N, d_k = query.shape
    qf = query.reshape(B * H, N, d_k)
    kf = key.reshape(B * H, N, d_k)
    qe = jnp.broadcast_to(qf[:, :, None, :], (B * H, N, N, d_k))
    ke = jnp.broadcast_to(kf[:, None, :, :], (B * H, N, N, d_k))
    attn_input = jnp.concatenate([qe, ke], axis=3)              # (BH, N, N, 2*d_k)
    h = attn_input @ W_h.T + b_h
    h = jnp.where(h >= 0, h, 0.2 * h)                           # LeakyReLU(0.2)
    s = (h @ W_o.T + b_o)[..., 0].reshape(B, H, N, N)
    s = jnp.where(mask == 0, -1.0e9, s)
    p = jax.nn.softmax(s, axis=-1)
    return p @ value, p


if __name__ == "__main__":
    B, H, N, d_k = 2, 2, 8, 32

    key0 = jax.random.PRNGKey(0)
    kq, kk, kv, km, kw1, kb1, kw2, kb2 = jax.random.split(key0, 8)

    query = jax.random.normal(kq, (B, H, N, d_k), jnp.float32)
    key_ = jax.random.normal(kk, (B, H, N, d_k), jnp.float32)
    value = jax.random.normal(kv, (B, H, N, d_k), jnp.float32)
    # mask: (B, 1, N, N) of {0, 1}
    mask = (jax.random.uniform(km, (B, 1, N, N)) > 0.3).astype(jnp.float32)

    # Deterministic "PyTorch-like" Linear init: U(-1/sqrt(fan_in), 1/sqrt(fan_in)).
    bound_h = 1.0 / math.sqrt(2 * d_k)
    W_h = jax.random.uniform(kw1, (d_k, 2 * d_k), jnp.float32, -bound_h, bound_h)
    b_h = jax.random.uniform(kb1, (d_k,), jnp.float32, -bound_h, bound_h)
    bound_o = 1.0 / math.sqrt(d_k)
    W_o = jax.random.uniform(kw2, (1, d_k), jnp.float32, -bound_o, bound_o)
    b_o = jax.random.uniform(kb2, (1,), jnp.float32, -bound_o, bound_o)

    out, p_attn = edge_guided_attention(query, key_, value, mask, W_h, b_h, W_o, b_o)
    jax.block_until_ready((out, p_attn))

    out_ref, p_ref = reference(query, key_, value, mask, W_h, b_h, W_o, b_o)
    assert jnp.allclose(out, out_ref, atol=1e-4, rtol=1e-4), "context mismatch"
    assert jnp.allclose(p_attn, p_ref, atol=1e-5, rtol=1e-4), "p_attn mismatch"

    print("KERNEL_OK")
</pallas_src>

<mosaic_0001>
module attributes {stable_mosaic.version = 11 : i64} {
  func.func @edge_attn_kernel(%arg0: i32, %arg1: memref<1x2x8x32xf32, #tpu.memory_space<vmem>>, %arg2: memref<1x2x8x32xf32, #tpu.memory_space<vmem>>, %arg3: memref<1x2x8x32xf32, #tpu.memory_space<vmem>>, %arg4: memref<1x8x8xf32, #tpu.memory_space<vmem>>, %arg5: memref<32x32xf32, #tpu.memory_space<vmem>>, %arg6: memref<32x32xf32, #tpu.memory_space<vmem>>, %arg7: memref<1x32xf32, #tpu.memory_space<vmem>>, %arg8: memref<32xf32, #tpu.memory_space<smem>>, %arg9: memref<1xf32, #tpu.memory_space<smem>>, %arg10: memref<1x2x8x32xf32, #tpu.memory_space<vmem>>, %arg11: memref<1x2x8x8xf32, #tpu.memory_space<vmem>>) attributes {dimension_semantics = [#tpu.dimension_semantics<parallel>], iteration_bounds = array<i64: 2>, scalar_prefetch = 0 : i64, scratch_operands = 0 : i64, tpu.core_type = #tpu.core_type<tc>, window_params = [{transform_indices = @transform_0, window_bounds = array<i64: 1, 2, 8, 32>}, {transform_indices = @transform_1, window_bounds = array<i64: 1, 2, 8, 32>}, {transform_indices = @transform_2, window_bounds = array<i64: 1, 2, 8, 32>}, {transform_indices = @transform_3, window_bounds = array<i64: 1, 8, 8>}, {pipeline_mode = #tpu.pipeline_mode<synchronous>, transform_indices = @transform_4, window_bounds = array<i64: 32, 32>}, {pipeline_mode = #tpu.pipeline_mode<synchronous>, transform_indices = @transform_5, window_bounds = array<i64: 32, 32>}, {pipeline_mode = #tpu.pipeline_mode<synchronous>, transform_indices = @transform_6, window_bounds = array<i64: 1, 32>}, {transform_indices = @transform_7, window_bounds = array<i64: 32>}, {transform_indices = @transform_8, window_bounds = array<i64: 1>}, {transform_indices = @transform_9, window_bounds = array<i64: 1, 2, 8, 32>}, {transform_indices = @transform_10, window_bounds = array<i64: 1, 2, 8, 8>}]} {
    %c0 = arith.constant 0 : index
    %c0_0 = arith.constant 0 : index
    %c0_1 = arith.constant 0 : index
    %0 = vector.load %arg4[%c0, %c0_0, %c0_1] : memref<1x8x8xf32, #tpu.memory_space<vmem>>, vector<1x8x8xf32>
    %1 = vector.shape_cast %0 : vector<1x8x8xf32> to vector<8x8xf32>
    %c0_2 = arith.constant 0 : index
    %c0_3 = arith.constant 0 : index
    %c0_4 = arith.constant 0 : index
    %c0_5 = arith.constant 0 : index
    %2 = vector.load %arg3[%c0_2, %c0_3, %c0_4, %c0_5] : memref<1x2x8x32xf32, #tpu.memory_space<vmem>>, vector<1x2x8x32xf32>
    %3 = vector.shape_cast %2 : vector<1x2x8x32xf32> to vector<2x8x32xf32>
    %c0_6 = arith.constant 0 : index
    %c0_7 = arith.constant 0 : index
    %c0_8 = arith.constant 0 : index
    %c0_9 = arith.constant 0 : index
    %4 = vector.load %arg1[%c0_6, %c0_7, %c0_8, %c0_9] : memref<1x2x8x32xf32, #tpu.memory_space<vmem>>, vector<1x2x8x32xf32>
    %5 = vector.shape_cast %4 : vector<1x2x8x32xf32> to vector<2x8x32xf32>
    %6 = vector.shape_cast %5 : vector<2x8x32xf32> to vector<16x32xf32>
    %c0_10 = arith.constant 0 : index
    %c0_11 = arith.constant 0 : index
    %c0_12 = arith.constant 0 : index
    %c0_13 = arith.constant 0 : index
    %7 = vector.load %arg2[%c0_10, %c0_11, %c0_12, %c0_13] : memref<1x2x8x32xf32, #tpu.memory_space<vmem>>, vector<1x2x8x32xf32>
    %8 = vector.shape_cast %7 : vector<1x2x8x32xf32> to vector<2x8x32xf32>
    %9 = vector.shape_cast %8 : vector<2x8x32xf32> to vector<16x32xf32>
    %c0_14 = arith.constant 0 : index
    %c0_15 = arith.constant 0 : index
    %10 = vector.load %arg5[%c0_14, %c0_15] : memref<32x32xf32, #tpu.memory_space<vmem>>, vector<32x32xf32>
    %cst = arith.constant dense<0.000000e+00> : vector<16x32xf32>
    %11 = tpu.matmul %6, %10, %cst {dimension_numbers = #tpu.dot_dimension_numbers<[1], [0], [0], [1], [0, 0, 1, 1], [], []>} : vector<16x32xf32>, vector<32x32xf32>, vector<16x32xf32> -> vector<16x32xf32>
    %c0_16 = arith.constant 0 : index
    %c0_17 = arith.constant 0 : index
    %12 = vector.load %arg6[%c0_16, %c0_17] : memref<32x32xf32, #tpu.memory_space<vmem>>, vector<32x32xf32>
    %cst_18 = arith.constant dense<0.000000e+00> : vector<16x32xf32>
    %13 = tpu.matmul %9, %12, %cst_18 {dimension_numbers = #tpu.dot_dimension_numbers<[1], [0], [0], [1], [0, 0, 1, 1], [], []>} : vector<16x32xf32>, vector<32x32xf32>, vector<16x32xf32> -> vector<16x32xf32>
    %c0_19 = arith.constant 0 : index
    %c0_20 = arith.constant 0 : index
    %14 = vector.load %arg7[%c0_19, %c0_20] : memref<1x32xf32, #tpu.memory_space<vmem>>, vector<1x32xf32>
    %15 = vector.broadcast %14 : vector<1x32xf32> to vector<16x32xf32>
    %16 = arith.addf %13, %15 : vector<16x32xf32>
    %c0_21 = arith.constant 0 : index
    %17 = memref.load %arg8[%c0_21] : memref<32xf32, #tpu.memory_space<smem>>
    %c1 = arith.constant 1 : index
    %18 = memref.load %arg8[%c1] : memref<32xf32, #tpu.memory_space<smem>>
    %c2 = arith.constant 2 : index
    %19 = memref.load %arg8[%c2] : memref<32xf32, #tpu.memory_space<smem>>
    %c3 = arith.constant 3 : index
    %20 = memref.load %arg8[%c3] : memref<32xf32, #tpu.memory_space<smem>>
    %c4 = arith.constant 4 : index
    %21 = memref.load %arg8[%c4] : memref<32xf32, #tpu.memory_space<smem>>
    %c5 = arith.constant 5 : index
    %22 = memref.load %arg8[%c5] : memref<32xf32, #tpu.memory_space<smem>>
    %c6 = arith.constant 6 : index
    %23 = memref.load %arg8[%c6] : memref<32xf32, #tpu.memory_space<smem>>
    %c7 = arith.constant 7 : index
    %24 = memref.load %arg8[%c7] : memref<32xf32, #tpu.memory_space<smem>>
    %c8 = arith.constant 8 : index
    %25 = memref.load %arg8[%c8] : memref<32xf32, #tpu.memory_space<smem>>
    %c9 = arith.constant 9 : index
    %26 = memref.load %arg8[%c9] : memref<32xf32, #tpu.memory_space<smem>>
    %c10 = arith.constant 10 : index
    %27 = memref.load %arg8[%c10] : memref<32xf32, #tpu.memory_space<smem>>
    %c11 = arith.constant 11 : index
    %28 = memref.load %arg8[%c11] : memref<32xf32, #tpu.memory_space<smem>>
    %c12 = arith.constant 12 : index
    %29 = memref.load %arg8[%c12] : memref<32xf32, #tpu.memory_space<smem>>
    %c13 = arith.constant 13 : index
    %30 = memref.load %arg8[%c13] : memref<32xf32, #tpu.memory_space<smem>>
    %c14 = arith.constant 14 : index
    %31 = memref.load %arg8[%c14] : memref<32xf32, #tpu.memory_space<smem>>
    %c15 = arith.constant 15 : index
    %32 = memref.load %arg8[%c15] : memref<32xf32, #tpu.memory_space<smem>>
    %c16 = arith.constant 16 : index
    %33 = memref.load %arg8[%c16] : memref<32xf32, #tpu.memory_space<smem>>
    %c17 = arith.constant 17 : index
    %34 = memref.load %arg8[%c17] : memref<32xf32, #tpu.memory_space<smem>>
    %c18 = arith.constant 18 : index
    %35 = memref.load %arg8[%c18] : memref<32xf32, #tpu.memory_space<smem>>
    %c19 = arith.constant 19 : index
    %36 = memref.load %arg8[%c19] : memref<32xf32, #tpu.memory_space<smem>>
    %c20 = arith.constant 20 : index
    %37 = memref.load %arg8[%c20] : memref<32xf32, #tpu.memory_space<smem>>
    %c21 = arith.constant 21 : index
    %38 = memref.load %arg8[%c21] : memref<32xf32, #tpu.memory_space<smem>>
    %c22 = arith.constant 22 : index
    %39 = memref.load %arg8[%c22] : memref<32xf32, #tpu.memory_space<smem>>
    %c23 = arith.constant 23 : index
    %40 = memref.load %arg8[%c23] : memref<32xf32, #tpu.memory_space<smem>>
    %c24 = arith.constant 24 : index
    %41 = memref.load %arg8[%c24] : memref<32xf32, #tpu.memory_space<smem>>
    %c25 = arith.constant 25 : index
    %42 = memref.load %arg8[%c25] : memref<32xf32, #tpu.memory_space<smem>>
    %c26 = arith.constant 26 : index
    %43 = memref.load %arg8[%c26] : memref<32xf32, #tpu.memory_space<smem>>
    %c27 = arith.constant 27 : index
    %44 = memref.load %arg8[%c27] : memref<32xf32, #tpu.memory_space<smem>>
    %c28 = arith.constant 28 : index
    %45 = memref.load %arg8[%c28] : memref<32xf32, #tpu.memory_space<smem>>
    %c29 = arith.constant 29 : index
    %46 = memref.load %arg8[%c29] : memref<32xf32, #tpu.memory_space<smem>>
    %c30 = arith.constant 30 : index
    %47 = memref.load %arg8[%c30] : memref<32xf32, #tpu.memory_space<smem>>
    %c31 = arith.constant 31 : index
    %48 = memref.load %arg8[%c31] : memref<32xf32, #tpu.memory_space<smem>>
    %c0_22 = arith.constant 0 : index
    %49 = memref.load %arg9[%c0_22] : memref<1xf32, #tpu.memory_space<smem>>
    %50 = vector.extract_strided_slice %11 {offsets = [0, 0], sizes = [8, 32], strides = [1, 1]} : vector<16x32xf32> to vector<8x32xf32>
    %51 = vector.extract_strided_slice %16 {offsets = [0, 0], sizes = [8, 32], strides = [1, 1]} : vector<16x32xf32> to vector<8x32xf32>
    %52 = tpu.transpose %51, [1, 0] : vector<8x32xf32> -> vector<32x8xf32>
    %cst_23 = arith.constant 0.000000e+00 : f32
    %53 = vector.broadcast %cst_23 : f32 to vector<8x8xf32>
    %54 = vector.extract_strided_slice %50 {offsets = [0, 0], sizes = [8, 1], strides = [1, 1]} : vector<8x32xf32> to vector<8x1xf32>
    %55 = vector.extract_strided_slice %52 {offsets = [0, 0], sizes = [1, 8], strides = [1, 1]} : vector<32x8xf32> to vector<1x8xf32>
    %56 = vector.broadcast %54 : vector<8x1xf32> to vector<8x8xf32>
    %57 = vector.broadcast %55 : vector<1x8xf32> to vector<8x8xf32>
    %58 = arith.addf %56, %57 : vector<8x8xf32>
    %cst_24 = arith.constant 0.000000e+00 : f32
    %59 = vector.broadcast %cst_24 : f32 to vector<8x8xf32>
    %60 = arith.cmpf oge, %58, %59 : vector<8x8xf32>
    %cst_25 = arith.constant 2.000000e-01 : f32
    %61 = vector.broadcast %cst_25 : f32 to vector<8x8xf32>
    %62 = arith.mulf %61, %58 : vector<8x8xf32>
    %63 = arith.select %60, %58, %62 : vector<8x8xi1>, vector<8x8xf32>
    %64 = vector.broadcast %17 : f32 to vector<8x8xf32>
    %65 = arith.mulf %64, %63 : vector<8x8xf32>
    %66 = arith.addf %53, %65 : vector<8x8xf32>
    %67 = vector.extract_strided_slice %50 {offsets = [0, 1], sizes = [8, 1], strides = [1, 1]} : vector<8x32xf32> to vector<8x1xf32>
    %68 = vector.extract_strided_slice %52 {offsets = [1, 0], sizes = [1, 8], strides = [1, 1]} : vector<32x8xf32> to vector<1x8xf32>
    %69 = vector.broadcast %67 : vector<8x1xf32> to vector<8x8xf32>
    %70 = vector.broadcast %68 : vector<1x8xf32> to vector<8x8xf32>
    %71 = arith.addf %69, %70 : vector<8x8xf32>
    %cst_26 = arith.constant 0.000000e+00 : f32
    %72 = vector.broadcast %cst_26 : f32 to vector<8x8xf32>
    %73 = arith.cmpf oge, %71, %72 : vector<8x8xf32>
    %cst_27 = arith.constant 2.000000e-01 : f32
    %74 = vector.broadcast %cst_27 : f32 to vector<8x8xf32>
    %75 = arith.mulf %74, %71 : vector<8x8xf32>
    %76 = arith.select %73, %71, %75 : vector<8x8xi1>, vector<8x8xf32>
    %77 = vector.broadcast %18 : f32 to vector<8x8xf32>
    %78 = arith.mulf %77, %76 : vector<8x8xf32>
    %79 = arith.addf %66, %78 : vector<8x8xf32>
    %80 = vector.extract_strided_slice %50 {offsets = [0, 2], sizes = [8, 1], strides = [1, 1]} : vector<8x32xf32> to vector<8x1xf32>
    %81 = vector.extract_strided_slice %52 {offsets = [2, 0], sizes = [1, 8], strides = [1, 1]} : vector<32x8xf32> to vector<1x8xf32>
    %82 = vector.broadcast %80 : vector<8x1xf32> to vector<8x8xf32>
    %83 = vector.broadcast %81 : vector<1x8xf32> to vector<8x8xf32>
    %84 = arith.addf %82, %83 : vector<8x8xf32>
    %cst_28 = arith.constant 0.000000e+00 : f32
    %85 = vector.broadcast %cst_28 : f32 to vector<8x8xf32>
    %86 = arith.cmpf oge, %84, %85 : vector<8x8xf32>
    %cst_29 = arith.constant 2.000000e-01 : f32
    %87 = vector.broadcast %cst_29 : f32 to vector<8x8xf32>
    %88 = arith.mulf %87, %84 : vector<8x8xf32>
    %89 = arith.select %86, %84, %88 : vector<8x8xi1>, vector<8x8xf32>
    %90 = vector.broadcast %19 : f32 to vector<8x8xf32>
    %91 = arith.mulf %90, %89 : vector<8x8xf32>
    %92 = arith.addf %79, %91 : vector<8x8xf32>
    %93 = vector.extract_strided_slice %50 {offsets = [0, 3], sizes = [8, 1], strides = [1, 1]} : vector<8x32xf32> to vector<8x1xf32>
    %94 = vector.extract_strided_slice %52 {offsets = [3, 0], sizes = [1, 8], strides = [1, 1]} : vector<32x8xf32> to vector<1x8xf32>
    %95 = vector.broadcast %93 : vector<8x1xf32> to vector<8x8xf32>
    %96 = vector.broadcast %94 : vector<1x8xf32> to vector<8x8xf32>
    %97 = arith.addf %95, %96 : vector<8x8xf32>
    %cst_30 = arith.constant 0.000000e+00 : f32
    %98 = vector.broadcast %cst_30 : f32 to vector<8x8xf32>
    %99 = arith.cmpf oge, %97, %98 : vector<8x8xf32>
    %cst_31 = arith.constant 2.000000e-01 : f32
    %100 = vector.broadcast %cst_31 : f32 to vector<8x8xf32>
    %101 = arith.mulf %100, %97 : vector<8x8xf32>
    %102 = arith.select %99, %97, %101 : vector<8x8xi1>, vector<8x8xf32>
    %103 = vector.broadcast %20 : f32 to vector<8x8xf32>
    %104 = arith.mulf %103, %102 : vector<8x8xf32>
    %105 = arith.addf %92, %104 : vector<8x8xf32>
    %106 = vector.extract_strided_slice %50 {offsets = [0, 4], sizes = [8, 1], strides = [1, 1]} : vector<8x32xf32> to vector<8x1xf32>
    %107 = vector.extract_strided_slice %52 {offsets = [4, 0], sizes = [1, 8], strides = [1, 1]} : vector<32x8xf32> to vector<1x8xf32>
    %108 = vector.broadcast %106 : vector<8x1xf32> to vector<8x8xf32>
    %109 = vector.broadcast %107 : vector<1x8xf32> to vector<8x8xf32>
    %110 = arith.addf %108, %109 : vector<8x8xf32>
    %cst_32 = arith.constant 0.000000e+00 : f32
    %111 = vector.broadcast %cst_32 : f32 to vector<8x8xf32>
    %112 = arith.cmpf oge, %110, %111 : vector<8x8xf32>
    %cst_33 = arith.constant 2.000000e-01 : f32
    %113 = vector.broadcast %cst_33 : f32 to vector<8x8xf32>
    %114 = arith.mulf %113, %110 : vector<8x8xf32>
    %115 = arith.select %112, %110, %114 : vector<8x8xi1>, vector<8x8xf32>
    %116 = vector.broadcast %21 : f32 to vector<8x8xf32>
    %117 = arith.mulf %116, %115 : vector<8x8xf32>
    %118 = arith.addf %105, %117 : vector<8x8xf32>
    %119 = vector.extract_strided_slice %50 {offsets = [0, 5], sizes = [8, 1], strides = [1, 1]} : vector<8x32xf32> to vector<8x1xf32>
    %120 = vector.extract_strided_slice %52 {offsets = [5, 0], sizes = [1, 8], strides = [1, 1]} : vector<32x8xf32> to vector<1x8xf32>
    %121 = vector.broadcast %119 : vector<8x1xf32> to vector<8x8xf32>
    %122 = vector.broadcast %120 : vector<1x8xf32> to vector<8x8xf32>
    %123 = arith.addf %121, %122 : vector<8x8xf32>
    %cst_34 = arith.constant 0.000000e+00 : f32
    %124 = vector.broadcast %cst_34 : f32 to vector<8x8xf32>
    %125 = arith.cmpf oge, %123, %124 : vector<8x8xf32>
    %cst_35 = arith.constant 2.000000e-01 : f32
    %126 = vector.broadcast %cst_35 : f32 to vector<8x8xf32>
    %127 = arith.mulf %126, %123 : vector<8x8xf32>
    %128 = arith.select %125, %123, %127 : vector<8x8xi1>, vector<8x8xf32>
    %129 = vector.broadcast %22 : f32 to vector<8x8xf32>
    %130 = arith.mulf %129, %128 : vector<8x8xf32>
    %131 = arith.addf %118, %130 : vector<8x8xf32>
    %132 = vector.extract_strided_slice %50 {offsets = [0, 6], sizes = [8, 1], strides = [1, 1]} : vector<8x32xf32> to vector<8x1xf32>
    %133 = vector.extract_strided_slice %52 {offsets = [6, 0], sizes = [1, 8], strides = [1, 1]} : vector<32x8xf32> to vector<1x8xf32>
    %134 = vector.broadcast %132 : vector<8x1xf32> to vector<8x8xf32>
    %135 = vector.broadcast %133 : vector<1x8xf32> to vector<8x8xf32>
    %136 = arith.addf %134, %135 : vector<8x8xf32>
    %cst_36 = arith.constant 0.000000e+00 : f32
    %137 = vector.broadcast %cst_36 : f32 to vector<8x8xf32>
    %138 = arith.cmpf oge, %136, %137 : vector<8x8xf32>
    %cst_37 = arith.constant 2.000000e-01 : f32
    %139 = vector.broadcast %cst_37 : f32 to vector<8x8xf32>
    %140 = arith.mulf %139, %136 : vector<8x8xf32>
    %141 = arith.select %138, %136, %140 : vector<8x8xi1>, vector<8x8xf32>
    %142 = vector.broadcast %23 : f32 to vector<8x8xf32>
    %143 = arith.mulf %142, %141 : vector<8x8xf32>
    %144 = arith.addf %131, %143 : vector<8x8xf32>
    %145 = vector.extract_strided_slice %50 {offsets = [0, 7], sizes = [8, 1], strides = [1, 1]} : vector<8x32xf32> to vector<8x1xf32>
    %146 = vector.extract_strided_slice %52 {offsets = [7, 0], sizes = [1, 8], strides = [1, 1]} : vector<32x8xf32> to vector<1x8xf32>
    %147 = vector.broadcast %145 : vector<8x1xf32> to vector<8x8xf32>
    %148 = vector.broadcast %146 : vector<1x8xf32> to vector<8x8xf32>
    %149 = arith.addf %147, %148 : vector<8x8xf32>
    %cst_38 = arith.constant 0.000000e+00 : f32
    %150 = vector.broadcast %cst_38 : f32 to vector<8x8xf32>
    %151 = arith.cmpf oge, %149, %150 : vector<8x8xf32>
    %cst_39 = arith.constant 2.000000e-01 : f32
    %152 = vector.broadcast %cst_39 : f32 to vector<8x8xf32>
    %153 = arith.mulf %152, %149 : vector<8x8xf32>
    %154 = arith.select %151, %149, %153 : vector<8x8xi1>, vector<8x8xf32>
    %155 = vector.broadcast %24 : f32 to vector<8x8xf32>
    %156 = arith.mulf %155, %154 : vector<8x8xf32>
    %157 = arith.addf %144, %156 : vector<8x8xf32>
    %158 = vector.extract_strided_slice %50 {offsets = [0, 8], sizes = [8, 1], strides = [1, 1]} : vector<8x32xf32> to vector<8x1xf32>
    %159 = vector.extract_strided_slice %52 {offsets = [8, 0], sizes = [1, 8], strides = [1, 1]} : vector<32x8xf32> to vector<1x8xf32>
    %160 = vector.broadcast %158 : vector<8x1xf32> to vector<8x8xf32>
    %161 = vector.broadcast %159 : vector<1x8xf32> to vector<8x8xf32>
    %162 = arith.addf %160, %161 : vector<8x8xf32>
    %cst_40 = arith.constant 0.000000e+00 : f32
    %163 = vector.broadcast %cst_40 : f32 to vector<8x8xf32>
    %164 = arith.cmpf oge, %162, %163 : vector<8x8xf32>
    %cst_41 = arith.constant 2.000000e-01 : f32
    %165 = vector.broadcast %cst_41 : f32 to vector<8x8xf32>
    %166 = arith.mulf %165, %162 : vector<8x8xf32>
    %167 = arith.select %164, %162, %166 : vector<8x8xi1>, vector<8x8xf32>
    %168 = vector.broadcast %25 : f32 to vector<8x8xf32>
    %169 = arith.mulf %168, %167 : vector<8x8xf32>
    %170 = arith.addf %157, %169 : vector<8x8xf32>
    %171 = vector.extract_strided_slice %50 {offsets = [0, 9], sizes = [8, 1], strides = [1, 1]} : vector<8x32xf32> to vector<8x1xf32>
    %172 = vector.extract_strided_slice %52 {offsets = [9, 0], sizes = [1, 8], strides = [1, 1]} : vector<32x8xf32> to vector<1x8xf32>
    %173 = vector.broadcast %171 : vector<8x1xf32> to vector<8x8xf32>
    %174 = vector.broadcast %172 : vector<1x8xf32> to vector<8x8xf32>
    %175 = arith.addf %173, %174 : vector<8x8xf32>
    %cst_42 = arith.constant 0.000000e+00 : f32
    %176 = vector.broadcast %cst_42 : f32 to vector<8x8xf32>
    %177 = arith.cmpf oge, %175, %176 : vector<8x8xf32>
    %cst_43 = arith.constant 2.000000e-01 : f32
    %178 = vector.broadcast %cst_43 : f32 to vector<8x8xf32>
    %179 = arith.mulf %178, %175 : vector<8x8xf32>
    %180 = arith.select %177, %175, %179 : vector<8x8xi1>, vector<8x8xf32>
    %181 = vector.broadcast %26 : f32 to vector<8x8xf32>
    %182 = arith.mulf %181, %180 : vector<8x8xf32>
    %183 = arith.addf %170, %182 : vector<8x8xf32>
    %184 = vector.extract_strided_slice %50 {offsets = [0, 10], sizes = [8, 1], strides = [1, 1]} : vector<8x32xf32> to vector<8x1xf32>
    %185 = vector.extract_strided_slice %52 {offsets = [10, 0], sizes = [1, 8], strides = [1, 1]} : vector<32x8xf32> to vector<1x8xf32>
    %186 = vector.broadcast %184 : vector<8x1xf32> to vector<8x8xf32>
    %187 = vector.broadcast %185 : vector<1x8xf32> to vector<8x8xf32>
    %188 = arith.addf %186, %187 : vector<8x8xf32>
    %cst_44 = arith.constant 0.000000e+00 : f32
    %189 = vector.broadcast %cst_44 : f32 to vector<8x8xf32>
    %190 = arith.cmpf oge, %188, %189 : vector<8x8xf32>
    %cst_45 = arith.constant 2.000000e-01 : f32
    %191 = vector.broadcast %cst_45 : f32 to vector<8x8xf32>
    %192 = arith.mulf %191, %188 : vector<8x8xf32>
    %193 = arith.select %190, %188, %192 : vector<8x8xi1>, vector<8x8xf32>
    %194 = vector.broadcast %27 : f32 to vector<8x8xf32>
    %195 = arith.mulf %194, %193 : vector<8x8xf32>
    %196 = arith.addf %183, %195 : vector<8x8xf32>
    %197 = vector.extract_strided_slice %50 {offsets = [0, 11], sizes = [8, 1], strides = [1, 1]} : vector<8x32xf32> to vector<8x1xf32>
    %198 = vector.extract_strided_slice %52 {offsets = [11, 0], sizes = [1, 8], strides = [1, 1]} : vector<32x8xf32> to vector<1x8xf32>
    %199 = vector.broadcast %197 : vector<8x1xf32> to vector<8x8xf32>
    %200 = vector.broadcast %198 : vector<1x8xf32> to vector<8x8xf32>
    %201 = arith.addf %199, %200 : vector<8x8xf32>
    %cst_46 = arith.constant 0.000000e+00 : f32
    %202 = vector.broadcast %cst_46 : f32 to vector<8x8xf32>
    %203 = arith.cmpf oge, %201, %202 : vector<8x8xf32>
    %cst_47 = arith.constant 2.000000e-01 : f32
    %204 = vector.broadcast %cst_47 : f32 to vector<8x8xf32>
    %205 = arith.mulf %204, %201 : vector<8x8xf32>
    %206 = arith.select %203, %201, %205 : vector<8x8xi1>, vector<8x8xf32>
    %207 = vector.broadcast %28 : f32 to vector<8x8xf32>
    %208 = arith.mulf %207, %206 : vector<8x8xf32>
    %209 = arith.addf %196, %208 : vector<8x8xf32>
    %210 = vector.extract_strided_slice %50 {offsets = [0, 12], sizes = [8, 1], strides = [1, 1]} : vector<8x32xf32> to vector<8x1xf32>
    %211 = vector.extract_strided_slice %52 {offsets = [12, 0], sizes = [1, 8], strides = [1, 1]} : vector<32x8xf32> to vector<1x8xf32>
    %212 = vector.broadcast %210 : vector<8x1xf32> to vector<8x8xf32>
    %213 = vector.broadcast %211 : vector<1x8xf32> to vector<8x8xf32>
    %214 = arith.addf %212, %213 : vector<8x8xf32>
    %cst_48 = arith.constant 0.000000e+00 : f32
    %215 = vector.broadcast %cst_48 : f32 to vector<8x8xf32>
    %216 = arith.cmpf oge, %214, %215 : vector<8x8xf32>
    %cst_49 = arith.constant 2.000000e-01 : f32
    %217 = vector.broadcast %cst_49 : f32 to vector<8x8xf32>
    %218 = arith.mulf %217, %214 : vector<8x8xf32>
    %219 = arith.select %216, %214, %218 : vector<8x8xi1>, vector<8x8xf32>
    %220 = vector.broadcast %29 : f32 to vector<8x8xf32>
    %221 = arith.mulf %220, %219 : vector<8x8xf32>
    %222 = arith.addf %209, %221 : vector<8x8xf32>
    %223 = vector.extract_strided_slice %50 {offsets = [0, 13], sizes = [8, 1], strides = [1, 1]} : vector<8x32xf32> to vector<8x1xf32>
    %224 = vector.extract_strided_slice %52 {offsets = [13, 0], sizes = [1, 8], strides = [1, 1]} : vector<32x8xf32> to vector<1x8xf32>
    %225 = vector.broadcast %223 : vector<8x1xf32> to vector<8x8xf32>
    %226 = vector.broadcast %224 : vector<1x8xf32> to vector<8x8xf32>
    %227 = arith.addf %225, %226 : vector<8x8xf32>
    %cst_50 = arith.constant 0.000000e+00 : f32
    %228 = vector.broadcast %cst_50 : f32 to vector<8x8xf32>
    %229 = arith.cmpf oge, %227, %228 : vector<8x8xf32>
    %cst_51 = arith.constant 2.000000e-01 : f32
    %230 = vector.broadcast %cst_51 : f32 to vector<8x8xf32>
    %231 = arith.mulf %230, %227 : vector<8x8xf32>
    %232 = arith.select %229, %227, %231 : vector<8x8xi1>, vector<8x8xf32>
    %233 = vector.broadcast %30 : f32 to vector<8x8xf32>
    %234 = arith.mulf %233, %232 : vector<8x8xf32>
    %235 = arith.addf %222, %234 : vector<8x8xf32>
    %236 = vector.extract_strided_slice %50 {offsets = [0, 14], sizes = [8, 1], strides = [1, 1]} : vector<8x32xf32> to vector<8x1xf32>
    %237 = vector.extract_strided_slice %52 {offsets = [14, 0], sizes = [1, 8], strides = [1, 1]} : vector<32x8xf32> to vector<1x8xf32>
    %238 = vector.broadcast %236 : vector<8x1xf32> to vector<8x8xf32>
    %239 = vector.broadcast %237 : vector<1x8xf32> to vector<8x8xf32>
    %240 = arith.addf %238, %239 : vector<8x8xf32>
    %cst_52 = arith.constant 0.000000e+00 : f32
    %241 = vector.broadcast %cst_52 : f32 to vector<8x8xf32>
    %242 = arith.cmpf oge, %240, %241 : vector<8x8xf32>
    %cst_53 = arith.constant 2.000000e-01 : f32
    %243 = vector.broadcast %cst_53 : f32 to vector<8x8xf32>
    %244 = arith.mulf %243, %240 : vector<8x8xf32>
    %245 = arith.select %242, %240, %244 : vector<8x8xi1>, vector<8x8xf32>
    %246 = vector.broadcast %31 : f32 to vector<8x8xf32>
    %247 = arith.mulf %246, %245 : vector<8x8xf32>
    %248 = arith.addf %235, %247 : vector<8x8xf32>
    %249 = vector.extract_strided_slice %50 {offsets = [0, 15], sizes = [8, 1], strides = [1, 1]} : vector<8x32xf32> to vector<8x1xf32>
    %250 = vector.extract_strided_slice %52 {offsets = [15, 0], sizes = [1, 8], strides = [1, 1]} : vector<32x8xf32> to vector<1x8xf32>
    %251 = vector.broadcast %249 : vector<8x1xf32> to vector<8x8xf32>
    %252 = vector.broadcast %250 : vector<1x8xf32> to vector<8x8xf32>
    %253 = arith.addf %251, %252 : vector<8x8xf32>
    %cst_54 = arith.constant 0.000000e+00 : f32
    %254 = vector.broadcast %cst_54 : f32 to vector<8x8xf32>
    %255 = arith.cmpf oge, %253, %254 : vector<8x8xf32>
    %cst_55 = arith.constant 2.000000e-01 : f32
    %256 = vector.broadcast %cst_55 : f32 to vector<8x8xf32>
    %257 = arith.mulf %256, %253 : vector<8x8xf32>
    %258 = arith.select %255, %253, %257 : vector<8x8xi1>, vector<8x8xf32>
    %259 = vector.broadcast %32 : f32 to vector<8x8xf32>
    %260 = arith.mulf %259, %258 : vector<8x8xf32>
    %261 = arith.addf %248, %260 : vector<8x8xf32>
    %262 = vector.extract_strided_slice %50 {offsets = [0, 16], sizes = [8, 1], strides = [1, 1]} : vector<8x32xf32> to vector<8x1xf32>
    %263 = vector.extract_strided_slice %52 {offsets = [16, 0], sizes = [1, 8], strides = [1, 1]} : vector<32x8xf32> to vector<1x8xf32>
    %264 = vector.broadcast %262 : vector<8x1xf32> to vector<8x8xf32>
    %265 = vector.broadcast %263 : vector<1x8xf32> to vector<8x8xf32>
    %266 = arith.addf %264, %265 : vector<8x8xf32>
    %cst_56 = arith.constant 0.000000e+00 : f32
    %267 = vector.broadcast %cst_56 : f32 to vector<8x8xf32>
    %268 = arith.cmpf oge, %266, %267 : vector<8x8xf32>
    %cst_57 = arith.constant 2.000000e-01 : f32
    %269 = vector.broadcast %cst_57 : f32 to vector<8x8xf32>
    %270 = arith.mulf %269, %266 : vector<8x8xf32>
    %271 = arith.select %268, %266, %270 : vector<8x8xi1>, vector<8x8xf32>
    %272 = vector.broadcast %33 : f32 to vector<8x8xf32>
    %273 = arith.mulf %272, %271 : vector<8x8xf32>
    %274 = arith.addf %261, %273 : vector<8x8xf32>
    %275 = vector.extract_strided_slice %50 {offsets = [0, 17], sizes = [8, 1], strides = [1, 1]} : vector<8x32xf32> to vector<8x1xf32>
    %276 = vector.extract_strided_slice %52 {offsets = [17, 0], sizes = [1, 8], strides = [1, 1]} : vector<32x8xf32> to vector<1x8xf32>
    %277 = vector.broadcast %275 : vector<8x1xf32> to vector<8x8xf32>
    %278 = vector.broadcast %276 : vector<1x8xf32> to vector<8x8xf32>
    %279 = arith.addf %277, %278 : vector<8x8xf32>
    %cst_58 = arith.constant 0.000000e+00 : f32
    %280 = vector.broadcast %cst_58 : f32 to vector<8x8xf32>
    %281 = arith.cmpf oge, %279, %280 : vector<8x8xf32>
    %cst_59 = arith.constant 2.000000e-01 : f32
    %282 = vector.broadcast %cst_59 : f32 to vector<8x8xf32>
    %283 = arith.mulf %282, %279 : vector<8x8xf32>
    %284 = arith.select %281, %279, %283 : vector<8x8xi1>, vector<8x8xf32>
    %285 = vector.broadcast %34 : f32 to vector<8x8xf32>
    %286 = arith.mulf %285, %284 : vector<8x8xf32>
    %287 = arith.addf %274, %286 : vector<8x8xf32>
    %288 = vector.extract_strided_slice %50 {offsets = [0, 18], sizes = [8, 1], strides = [1, 1]} : vector<8x32xf32> to vector<8x1xf32>
    %289 = vector.extract_strided_slice %52 {offsets = [18, 0], sizes = [1, 8], strides = [1, 1]} : vector<32x8xf32> to vector<1x8xf32>
    %290 = vector.broadcast %288 : vector<8x1xf32> to vector<8x8xf32>
    %291 = vector.broadcast %289 : vector<1x8xf32> to vector<8x8xf32>
    %292 = arith.addf %290, %291 : vector<8x8xf32>
    %cst_60 = arith.constant 0.000000e+00 : f32
    %293 = vector.broadcast %cst_60 : f32 to vector<8x8xf32>
    %294 = arith.cmpf oge, %292, %293 : vector<8x8xf32>
    %cst_61 = arith.constant 2.000000e-01 : f32
    %295 = vector.broadcast %cst_61 : f32 to vector<8x8xf32>
    %296 = arith.mulf %295, %292 : vector<8x8xf32>
    %297 = arith.select %294, %292, %296 : vector<8x8xi1>, vector<8x8xf32>
    %298 = vector.broadcast %35 : f32 to vector<8x8xf32>
    %299 = arith.mulf %298, %297 : vector<8x8xf32>
    %300 = arith.addf %287, %299 : vector<8x8xf32>
    %301 = vector.extract_strided_slice %50 {offsets = [0, 19], sizes = [8, 1], strides = [1, 1]} : vector<8x32xf32> to vector<8x1xf32>
    %302 = vector.extract_strided_slice %52 {offsets = [19, 0], sizes = [1, 8], strides = [1, 1]} : vector<32x8xf32> to vector<1x8xf32>
    %303 = vector.broadcast %301 : vector<8x1xf32> to vector<8x8xf32>
    %304 = vector.broadcast %302 : vector<1x8xf32> to vector<8x8xf32>
    %305 = arith.addf %303, %304 : vector<8x8xf32>
    %cst_62 = arith.constant 0.000000e+00 : f32
    %306 = vector.broadcast %cst_62 : f32 to vector<8x8xf32>
    %307 = arith.cmpf oge, %305, %306 : vector<8x8xf32>
    %cst_63 = arith.constant 2.000000e-01 : f32
    %308 = vector.broadcast %cst_63 : f32 to vector<8x8xf32>
    %309 = arith.mulf %308, %305 : vector<8x8xf32>
    %310 = arith.select %307, %305, %309 : vector<8x8xi1>, vector<8x8xf32>
    %311 = vector.broadcast %36 : f32 to vector<8x8xf32>
    %312 = arith.mulf %311, %310 : vector<8x8xf32>
    %313 = arith.addf %300, %312 : vector<8x8xf32>
    %314 = vector.extract_strided_slice %50 {offsets = [0, 20], sizes = [8, 1], strides = [1, 1]} : vector<8x32xf32> to vector<8x1xf32>
    %315 = vector.extract_strided_slice %52 {offsets = [20, 0], sizes = [1, 8], strides = [1, 1]} : vector<32x8xf32> to vector<1x8xf32>
    %316 = vector.broadcast %314 : vector<8x1xf32> to vector<8x8xf32>
    %317 = vector.broadcast %315 : vector<1x8xf32> to vector<8x8xf32>
    %318 = arith.addf %316, %317 : vector<8x8xf32>
    %cst_64 = arith.constant 0.000000e+00 : f32
    %319 = vector.broadcast %cst_64 : f32 to vector<8x8xf32>
    %320 = arith.cmpf oge, %318, %319 : vector<8x8xf32>
    %cst_65 = arith.constant 2.000000e-01 : f32
    %321 = vector.broadcast %cst_65 : f32 to vector<8x8xf32>
    %322 = arith.mulf %321, %318 : vector<8x8xf32>
    %323 = arith.select %320, %318, %322 : vector<8x8xi1>, vector<8x8xf32>
    %324 = vector.broadcast %37 : f32 to vector<8x8xf32>
    %325 = arith.mulf %324, %323 : vector<8x8xf32>
    %326 = arith.addf %313, %325 : vector<8x8xf32>
    %327 = vector.extract_strided_slice %50 {offsets = [0, 21], sizes = [8, 1], strides = [1, 1]} : vector<8x32xf32> to vector<8x1xf32>
    %328 = vector.extract_strided_slice %52 {offsets = [21, 0], sizes = [1, 8], strides = [1, 1]} : vector<32x8xf32> to vector<1x8xf32>
    %329 = vector.broadcast %327 : vector<8x1xf32> to vector<8x8xf32>
    %330 = vector.broadcast %328 : vector<1x8xf32> to vector<8x8xf32>
    %331 = arith.addf %329, %330 : vector<8x8xf32>
    %cst_66 = arith.constant 0.000000e+00 : f32
    %332 = vector.broadcast %cst_66 : f32 to vector<8x8xf32>
    %333 = arith.cmpf oge, %331, %332 : vector<8x8xf32>
    %cst_67 = arith.constant 2.000000e-01 : f32
    %334 = vector.broadcast %cst_67 : f32 to vector<8x8xf32>
    %335 = arith.mulf %334, %331 : vector<8x8xf32>
    %336 = arith.select %333, %331, %335 : vector<8x8xi1>, vector<8x8xf32>
    %337 = vector.broadcast %38 : f32 to vector<8x8xf32>
    %338 = arith.mulf %337, %336 : vector<8x8xf32>
    %339 = arith.addf %326, %338 : vector<8x8xf32>
    %340 = vector.extract_strided_slice %50 {offsets = [0, 22], sizes = [8, 1], strides = [1, 1]} : vector<8x32xf32> to vector<8x1xf32>
    %341 = vector.extract_strided_slice %52 {offsets = [22, 0], sizes = [1, 8], strides = [1, 1]} : vector<32x8xf32> to vector<1x8xf32>
    %342 = vector.broadcast %340 : vector<8x1xf32> to vector<8x8xf32>
    %343 = vector.broadcast %341 : vector<1x8xf32> to vector<8x8xf32>
    %344 = arith.addf %342, %343 : vector<8x8xf32>
    %cst_68 = arith.constant 0.000000e+00 : f32
    %345 = vector.broadcast %cst_68 : f32 to vector<8x8xf32>
    %346 = arith.cmpf oge, %344, %345 : vector<8x8xf32>
    %cst_69 = arith.constant 2.000000e-01 : f32
    %347 = vector.broadcast %cst_69 : f32 to vector<8x8xf32>
    %348 = arith.mulf %347, %344 : vector<8x8xf32>
    %349 = arith.select %346, %344, %348 : vector<8x8xi1>, vector<8x8xf32>
    %350 = vector.broadcast %39 : f32 to vector<8x8xf32>
    %351 = arith.mulf %350, %349 : vector<8x8xf32>
    %352 = arith.addf %339, %351 : vector<8x8xf32>
    %353 = vector.extract_strided_slice %50 {offsets = [0, 23], sizes = [8, 1], strides = [1, 1]} : vector<8x32xf32> to vector<8x1xf32>
    %354 = vector.extract_strided_slice %52 {offsets = [23, 0], sizes = [1, 8], strides = [1, 1]} : vector<32x8xf32> to vector<1x8xf32>
    %355 = vector.broadcast %353 : vector<8x1xf32> to vector<8x8xf32>
    %356 = vector.broadcast %354 : vector<1x8xf32> to vector<8x8xf32>
    %357 = arith.addf %355, %356 : vector<8x8xf32>
    %cst_70 = arith.constant 0.000000e+00 : f32
    %358 = vector.broadcast %cst_70 : f32 to vector<8x8xf32>
    %359 = arith.cmpf oge, %357, %358 : vector<8x8xf32>
    %cst_71 = arith.constant 2.000000e-01 : f32
    %360 = vector.broadcast %cst_71 : f32 to vector<8x8xf32>
    %361 = arith.mulf %360, %357 : vector<8x8xf32>
    %362 = arith.select %359, %357, %361 : vector<8x8xi1>, vector<8x8xf32>
    %363 = vector.broadcast %40 : f32 to vector<8x8xf32>
    %364 = arith.mulf %363, %362 : vector<8x8xf32>
    %365 = arith.addf %352, %364 : vector<8x8xf32>
    %366 = vector.extract_strided_slice %50 {offsets = [0, 24], sizes = [8, 1], strides = [1, 1]} : vector<8x32xf32> to vector<8x1xf32>
    %367 = vector.extract_strided_slice %52 {offsets = [24, 0], sizes = [1, 8], strides = [1, 1]} : vector<32x8xf32> to vector<1x8xf32>
    %368 = vector.broadcast %366 : vector<8x1xf32> to vector<8x8xf32>
    %369 = vector.broadcast %367 : vector<1x8xf32> to vector<8x8xf32>
    %370 = arith.addf %368, %369 : vector<8x8xf32>
    %cst_72 = arith.constant 0.000000e+00 : f32
    %371 = vector.broadcast %cst_72 : f32 to vector<8x8xf32>
    %372 = arith.cmpf oge, %370, %371 : vector<8x8xf32>
    %cst_73 = arith.constant 2.000000e-01 : f32
    %373 = vector.broadcast %cst_73 : f32 to vector<8x8xf32>
    %374 = arith.mulf %373, %370 : vector<8x8xf32>
    %375 = arith.select %372, %370, %374 : vector<8x8xi1>, vector<8x8xf32>
    %376 = vector.broadcast %41 : f32 to vector<8x8xf32>
    %377 = arith.mulf %376, %375 : vector<8x8xf32>
    %378 = arith.addf %365, %377 : vector<8x8xf32>
    %379 = vector.extract_strided_slice %50 {offsets = [0, 25], sizes = [8, 1], strides = [1, 1]} : vector<8x32xf32> to vector<8x1xf32>
    %380 = vector.extract_strided_slice %52 {offsets = [25, 0], sizes = [1, 8], strides = [1, 1]} : vector<32x8xf32> to vector<1x8xf32>
    %381 = vector.broadcast %379 : vector<8x1xf32> to vector<8x8xf32>
    %382 = vector.broadcast %380 : vector<1x8xf32> to vector<8x8xf32>
    %383 = arith.addf %381, %382 : vector<8x8xf32>
    %cst_74 = arith.constant 0.000000e+00 : f32
    %384 = vector.broadcast %cst_74 : f32 to vector<8x8xf32>
    %385 = arith.cmpf oge, %383, %384 : vector<8x8xf32>
    %cst_75 = arith.constant 2.000000e-01 : f32
    %386 = vector.broadcast %cst_75 : f32 to vector<8x8xf32>
    %387 = arith.mulf %386, %383 : vector<8x8xf32>
    %388 = arith.select %385, %383, %387 : vector<8x8xi1>, vector<8x8xf32>
    %389 = vector.broadcast %42 : f32 to vector<8x8xf32>
    %390 = arith.mulf %389, %388 : vector<8x8xf32>
    %391 = arith.addf %378, %390 : vector<8x8xf32>
    %392 = vector.extract_strided_slice %50 {offsets = [0, 26], sizes = [8, 1], strides = [1, 1]} : vector<8x32xf32> to vector<8x1xf32>
    %393 = vector.extract_strided_slice %52 {offsets = [26, 0], sizes = [1, 8], strides = [1, 1]} : vector<32x8xf32> to vector<1x8xf32>
    %394 = vector.broadcast %392 : vector<8x1xf32> to vector<8x8xf32>
    %395 = vector.broadcast %393 : vector<1x8xf32> to vector<8x8xf32>
    %396 = arith.addf %394, %395 : vector<8x8xf32>
    %cst_76 = arith.constant 0.000000e+00 : f32
    %397 = vector.broadcast %cst_76 : f32 to vector<8x8xf32>
    %398 = arith.cmpf oge, %396, %397 : vector<8x8xf32>
    %cst_77 = arith.constant 2.000000e-01 : f32
    %399 = vector.broadcast %cst_77 : f32 to vector<8x8xf32>
    %400 = arith.mulf %399, %396 : vector<8x8xf32>
    %401 = arith.select %398, %396, %400 : vector<8x8xi1>, vector<8x8xf32>
    %402 = vector.broadcast %43 : f32 to vector<8x8xf32>
    %403 = arith.mulf %402, %401 : vector<8x8xf32>
    %404 = arith.addf %391, %403 : vector<8x8xf32>
    %405 = vector.extract_strided_slice %50 {offsets = [0, 27], sizes = [8, 1], strides = [1, 1]} : vector<8x32xf32> to vector<8x1xf32>
    %406 = vector.extract_strided_slice %52 {offsets = [27, 0], sizes = [1, 8], strides = [1, 1]} : vector<32x8xf32> to vector<1x8xf32>
    %407 = vector.broadcast %405 : vector<8x1xf32> to vector<8x8xf32>
    %408 = vector.broadcast %406 : vector<1x8xf32> to vector<8x8xf32>
    %409 = arith.addf %407, %408 : vector<8x8xf32>
    %cst_78 = arith.constant 0.000000e+00 : f32
    %410 = vector.broadcast %cst_78 : f32 to vector<8x8xf32>
    %411 = arith.cmpf oge, %409, %410 : vector<8x8xf32>
    %cst_79 = arith.constant 2.000000e-01 : f32
    %412 = vector.broadcast %cst_79 : f32 to vector<8x8xf32>
    %413 = arith.mulf %412, %409 : vector<8x8xf32>
    %414 = arith.select %411, %409, %413 : vector<8x8xi1>, vector<8x8xf32>
    %415 = vector.broadcast %44 : f32 to vector<8x8xf32>
    %416 = arith.mulf %415, %414 : vector<8x8xf32>
    %417 = arith.addf %404, %416 : vector<8x8xf32>
    %418 = vector.extract_strided_slice %50 {offsets = [0, 28], sizes = [8, 1], strides = [1, 1]} : vector<8x32xf32> to vector<8x1xf32>
    %419 = vector.extract_strided_slice %52 {offsets = [28, 0], sizes = [1, 8], strides = [1, 1]} : vector<32x8xf32> to vector<1x8xf32>
    %420 = vector.broadcast %418 : vector<8x1xf32> to vector<8x8xf32>
    %421 = vector.broadcast %419 : vector<1x8xf32> to vector<8x8xf32>
    %422 = arith.addf %420, %421 : vector<8x8xf32>
    %cst_80 = arith.constant 0.000000e+00 : f32
    %423 = vector.broadcast %cst_80 : f32 to vector<8x8xf32>
    %424 = arith.cmpf oge, %422, %423 : vector<8x8xf32>
    %cst_81 = arith.constant 2.000000e-01 : f32
    %425 = vector.broadcast %cst_81 : f32 to vector<8x8xf32>
    %426 = arith.mulf %425, %422 : vector<8x8xf32>
    %427 = arith.select %424, %422, %426 : vector<8x8xi1>, vector<8x8xf32>
    %428 = vector.broadcast %45 : f32 to vector<8x8xf32>
    %429 = arith.mulf %428, %427 : vector<8x8xf32>
    %430 = arith.addf %417, %429 : vector<8x8xf32>
    %431 = vector.extract_strided_slice %50 {offsets = [0, 29], sizes = [8, 1], strides = [1, 1]} : vector<8x32xf32> to vector<8x1xf32>
    %432 = vector.extract_strided_slice %52 {offsets = [29, 0], sizes = [1, 8], strides = [1, 1]} : vector<32x8xf32> to vector<1x8xf32>
    %433 = vector.broadcast %431 : vector<8x1xf32> to vector<8x8xf32>
    %434 = vector.broadcast %432 : vector<1x8xf32> to vector<8x8xf32>
    %435 = arith.addf %433, %434 : vector<8x8xf32>
    %cst_82 = arith.constant 0.000000e+00 : f32
    %436 = vector.broadcast %cst_82 : f32 to vector<8x8xf32>
    %437 = arith.cmpf oge, %435, %436 : vector<8x8xf32>
    %cst_83 = arith.constant 2.000000e-01 : f32
    %438 = vector.broadcast %cst_83 : f32 to vector<8x8xf32>
    %439 = arith.mulf %438, %435 : vector<8x8xf32>
    %440 = arith.select %437, %435, %439 : vector<8x8xi1>, vector<8x8xf32>
    %441 = vector.broadcast %46 : f32 to vector<8x8xf32>
    %442 = arith.mulf %441, %440 : vector<8x8xf32>
    %443 = arith.addf %430, %442 : vector<8x8xf32>
    %444 = vector.extract_strided_slice %50 {offsets = [0, 30], sizes = [8, 1], strides = [1, 1]} : vector<8x32xf32> to vector<8x1xf32>
    %445 = vector.extract_strided_slice %52 {offsets = [30, 0], sizes = [1, 8], strides = [1, 1]} : vector<32x8xf32> to vector<1x8xf32>
    %446 = vector.broadcast %444 : vector<8x1xf32> to vector<8x8xf32>
    %447 = vector.broadcast %445 : vector<1x8xf32> to vector<8x8xf32>
    %448 = arith.addf %446, %447 : vector<8x8xf32>
    %cst_84 = arith.constant 0.000000e+00 : f32
    %449 = vector.broadcast %cst_84 : f32 to vector<8x8xf32>
    %450 = arith.cmpf oge, %448, %449 : vector<8x8xf32>
    %cst_85 = arith.constant 2.000000e-01 : f32
    %451 = vector.broadcast %cst_85 : f32 to vector<8x8xf32>
    %452 = arith.mulf %451, %448 : vector<8x8xf32>
    %453 = arith.select %450, %448, %452 : vector<8x8xi1>, vector<8x8xf32>
    %454 = vector.broadcast %47 : f32 to vector<8x8xf32>
    %455 = arith.mulf %454, %453 : vector<8x8xf32>
    %456 = arith.addf %443, %455 : vector<8x8xf32>
    %457 = vector.extract_strided_slice %50 {offsets = [0, 31], sizes = [8, 1], strides = [1, 1]} : vector<8x32xf32> to vector<8x1xf32>
    %458 = vector.extract_strided_slice %52 {offsets = [31, 0], sizes = [1, 8], strides = [1, 1]} : vector<32x8xf32> to vector<1x8xf32>
    %459 = vector.broadcast %457 : vector<8x1xf32> to vector<8x8xf32>
    %460 = vector.broadcast %458 : vector<1x8xf32> to vector<8x8xf32>
    %461 = arith.addf %459, %460 : vector<8x8xf32>
    %cst_86 = arith.constant 0.000000e+00 : f32
    %462 = vector.broadcast %cst_86 : f32 to vector<8x8xf32>
    %463 = arith.cmpf oge, %461, %462 : vector<8x8xf32>
    %cst_87 = arith.constant 2.000000e-01 : f32
    %464 = vector.broadcast %cst_87 : f32 to vector<8x8xf32>
    %465 = arith.mulf %464, %461 : vector<8x8xf32>
    %466 = arith.select %463, %461, %465 : vector<8x8xi1>, vector<8x8xf32>
    %467 = vector.broadcast %48 : f32 to vector<8x8xf32>
    %468 = arith.mulf %467, %466 : vector<8x8xf32>
    %469 = arith.addf %456, %468 : vector<8x8xf32>
    %470 = vector.broadcast %49 : f32 to vector<8x8xf32>
    %471 = arith.addf %469, %470 : vector<8x8xf32>
    %cst_88 = arith.constant 0.000000e+00 : f32
    %472 = vector.broadcast %cst_88 : f32 to vector<8x8xf32>
    %473 = arith.cmpf oeq, %1, %472 : vector<8x8xf32>
    %cst_89 = arith.constant -1.000000e+09 : f32
    %474 = vector.broadcast %cst_89 : f32 to vector<8x8xf32>
    %475 = arith.select %473, %474, %471 : vector<8x8xi1>, vector<8x8xf32>
    %cst_90 = arith.constant dense<0xFF800000> : vector<8xf32>
    %476 = vector.multi_reduction <maximumf>, %475, %cst_90 [1] : vector<8x8xf32> to vector<8xf32>
    %477 = vector.shape_cast %476 : vector<8xf32> to vector<8x1xf32>
    %478 = vector.broadcast %477 : vector<8x1xf32> to vector<8x8xf32>
    %479 = arith.subf %475, %478 : vector<8x8xf32>
    %480 = math.exp %479 : vector<8x8xf32>
    %cst_91 = arith.constant dense<0.000000e+00> : vector<8xf32>
    %481 = vector.multi_reduction <add>, %480, %cst_91 [1] : vector<8x8xf32> to vector<8xf32>
    %482 = vector.shape_cast %481 : vector<8xf32> to vector<8x1xf32>
    %483 = tpu.reciprocal %482 : vector<8x1xf32> -> vector<8x1xf32>
    %484 = vector.broadcast %483 : vector<8x1xf32> to vector<8x8xf32>
    %485 = arith.mulf %480, %484 : vector<8x8xf32>
    %c0_92 = arith.constant 0 : index
    %c0_93 = arith.constant 0 : index
    %c0_94 = arith.constant 0 : index
    %c0_95 = arith.constant 0 : index
    %486 = vector.load %arg11[%c0_92, %c0_93, %c0_94, %c0_95] : memref<1x2x8x8xf32, #tpu.memory_space<vmem>>, vector<1x1x8x8xf32>
    %487 = vector.shape_cast %486 : vector<1x1x8x8xf32> to vector<8x8xf32>
    %488 = vector.shape_cast %485 : vector<8x8xf32> to vector<1x1x8x8xf32>
    tpu.vector_store %arg11[%c0_92, %c0_93, %c0_94, %c0_95], %488 {strides = array<i32>} : memref<1x2x8x8xf32, #tpu.memory_space<vmem>>, vector<1x1x8x8xf32>,
    %489 = vector.extract_strided_slice %3 {offsets = [0, 0, 0], sizes = [1, 8, 32], strides = [1, 1, 1]} : vector<2x8x32xf32> to vector<1x8x32xf32>
    %490 = vector.shape_cast %489 : vector<1x8x32xf32> to vector<8x32xf32>
    %cst_96 = arith.constant dense<0.000000e+00> : vector<8x32xf32>
    %491 = tpu.matmul %485, %490, %cst_96 {dimension_numbers = #tpu.dot_dimension_numbers<[1], [0], [0], [1], [0, 0, 1, 1], [], []>} : vector<8x8xf32>, vector<8x32xf32>, vector<8x32xf32> -> vector<8x32xf32>
    %c0_97 = arith.constant 0 : index
    %c0_98 = arith.constant 0 : index
    %c0_99 = arith.constant 0 : index
    %c0_100 = arith.constant 0 : index
    %492 = vector.load %arg10[%c0_97, %c0_98, %c0_99, %c0_100] : memref<1x2x8x32xf32, #tpu.memory_space<vmem>>, vector<1x1x8x32xf32>
    %493 = vector.shape_cast %492 : vector<1x1x8x32xf32> to vector<8x32xf32>
    %494 = vector.shape_cast %491 : vector<8x32xf32> to vector<1x1x8x32xf32>
    tpu.vector_store %arg10[%c0_97, %c0_98, %c0_99, %c0_100], %494 {strides = array<i32>} : memref<1x2x8x32xf32, #tpu.memory_space<vmem>>, vector<1x1x8x32xf32>,
    %495 = vector.extract_strided_slice %11 {offsets = [8, 0], sizes = [8, 32], strides = [1, 1]} : vector<16x32xf32> to vector<8x32xf32>
    %496 = vector.extract_strided_slice %16 {offsets = [8, 0], sizes = [8, 32], strides = [1, 1]} : vector<16x32xf32> to vector<8x32xf32>
    %497 = tpu.transpose %496, [1, 0] : vector<8x32xf32> -> vector<32x8xf32>
    %cst_101 = arith.constant 0.000000e+00 : f32
    %498 = vector.broadcast %cst_101 : f32 to vector<8x8xf32>
    %499 = vector.extract_strided_slice %495 {offsets = [0, 0], sizes = [8, 1], strides = [1, 1]} : vector<8x32xf32> to vector<8x1xf32>
    %500 = vector.extract_strided_slice %497 {offsets = [0, 0], sizes = [1, 8], strides = [1, 1]} : vector<32x8xf32> to vector<1x8xf32>
    %501 = vector.broadcast %499 : vector<8x1xf32> to vector<8x8xf32>
    %502 = vector.broadcast %500 : vector<1x8xf32> to vector<8x8xf32>
    %503 = arith.addf %501, %502 : vector<8x8xf32>
    %cst_102 = arith.constant 0.000000e+00 : f32
    %504 = vector.broadcast %cst_102 : f32 to vector<8x8xf32>
    %505 = arith.cmpf oge, %503, %504 : vector<8x8xf32>
    %cst_103 = arith.constant 2.000000e-01 : f32
    %506 = vector.broadcast %cst_103 : f32 to vector<8x8xf32>
    %507 = arith.mulf %506, %503 : vector<8x8xf32>
    %508 = arith.select %505, %503, %507 : vector<8x8xi1>, vector<8x8xf32>
    %509 = vector.broadcast %17 : f32 to vector<8x8xf32>
    %510 = arith.mulf %509, %508 : vector<8x8xf32>
    %511 = arith.addf %498, %510 : vector<8x8xf32>
    %512 = vector.extract_strided_slice %495 {offsets = [0, 1], sizes = [8, 1], strides = [1, 1]} : vector<8x32xf32> to vector<8x1xf32>
    %513 = vector.extract_strided_slice %497 {offsets = [1, 0], sizes = [1, 8], strides = [1, 1]} : vector<32x8xf32> to vector<1x8xf32>
    %514 = vector.broadcast %512 : vector<8x1xf32> to vector<8x8xf32>
    %515 = vector.broadcast %513 : vector<1x8xf32> to vector<8x8xf32>
    %516 = arith.addf %514, %515 : vector<8x8xf32>
    %cst_104 = arith.constant 0.000000e+00 : f32
    %517 = vector.broadcast %cst_104 : f32 to vector<8x8xf32>
    %518 = arith.cmpf oge, %516, %517 : vector<8x8xf32>
    %cst_105 = arith.constant 2.000000e-01 : f32
    %519 = vector.broadcast %cst_105 : f32 to vector<8x8xf32>
    %520 = arith.mulf %519, %516 : vector<8x8xf32>
    %521 = arith.select %518, %516, %520 : vector<8x8xi1>, vector<8x8xf32>
    %522 = vector.broadcast %18 : f32 to vector<8x8xf32>
    %523 = arith.mulf %522, %521 : vector<8x8xf32>
    %524 = arith.addf %511, %523 : vector<8x8xf32>
    %525 = vector.extract_strided_slice %495 {offsets = [0, 2], sizes = [8, 1], strides = [1, 1]} : vector<8x32xf32> to vector<8x1xf32>
    %526 = vector.extract_strided_slice %497 {offsets = [2, 0], sizes = [1, 8], strides = [1, 1]} : vector<32x8xf32> to vector<1x8xf32>
    %527 = vector.broadcast %525 : vector<8x1xf32> to vector<8x8xf32>
    %528 = vector.broadcast %526 : vector<1x8xf32> to vector<8x8xf32>
    %529 = arith.addf %527, %528 : vector<8x8xf32>
    %cst_106 = arith.constant 0.000000e+00 : f32
    %530 = vector.broadcast %cst_106 : f32 to vector<8x8xf32>
    %531 = arith.cmpf oge, %529, %530 : vector<8x8xf32>
    %cst_107 = arith.constant 2.000000e-01 : f32
    %532 = vector.broadcast %cst_107 : f32 to vector<8x8xf32>
    %533 = arith.mulf %532, %529 : vector<8x8xf32>
    %534 = arith.select %531, %529, %533 : vector<8x8xi1>, vector<8x8xf32>
    %535 = vector.broadcast %19 : f32 to vector<8x8xf32>
    %536 = arith.mulf %535, %534 : vector<8x8xf32>
    %537 = arith.addf %524, %536 : vector<8x8xf32>
    %538 = vector.extract_strided_slice %495 {offsets = [0, 3], sizes = [8, 1], strides = [1, 1]} : vector<8x32xf32> to vector<8x1xf32>
    %539 = vector.extract_strided_slice %497 {offsets = [3, 0], sizes = [1, 8], strides = [1, 1]} : vector<32x8xf32> to vector<1x8xf32>
    %540 = vector.broadcast %538 : vector<8x1xf32> to vector<8x8xf32>
    %541 = vector.broadcast %539 : vector<1x8xf32> to vector<8x8xf32>
    %542 = arith.addf %540, %541 : vector<8x8xf32>
    %cst_108 = arith.constant 0.000000e+00 : f32
    %543 = vector.broadcast %cst_108 : f32 to vector<8x8xf32>
    %544 = arith.cmpf oge, %542, %543 : vector<8x8xf32>
    %cst_109 = arith.constant 2.000000e-01 : f32
    %545 = vector.broadcast %cst_109 : f32 to vector<8x8xf32>
    %546 = arith.mulf %545, %542 : vector<8x8xf32>
    %547 = arith.select %544, %542, %546 : vector<8x8xi1>, vector<8x8xf32>
    %548 = vector.broadcast %20 : f32 to vector<8x8xf32>
    %549 = arith.mulf %548, %547 : vector<8x8xf32>
    %550 = arith.addf %537, %549 : vector<8x8xf32>
    %551 = vector.extract_strided_slice %495 {offsets = [0, 4], sizes = [8, 1], strides = [1, 1]} : vector<8x32xf32> to vector<8x1xf32>
    %552 = vector.extract_strided_slice %497 {offsets = [4, 0], sizes = [1, 8], strides = [1, 1]} : vector<32x8xf32> to vector<1x8xf32>
    %553 = vector.broadcast %551 : vector<8x1xf32> to vector<8x8xf32>
    %554 = vector.broadcast %552 : vector<1x8xf32> to vector<8x8xf32>
    %555 = arith.addf %553, %554 : vector<8x8xf32>
    %cst_110 = arith.constant 0.000000e+00 : f32
    %556 = vector.broadcast %cst_110 : f32 to vector<8x8xf32>
    %557 = arith.cmpf oge, %555, %556 : vector<8x8xf32>
    %cst_111 = arith.constant 2.000000e-01 : f32
    %558 = vector.broadcast %cst_111 : f32 to vector<8x8xf32>
    %559 = arith.mulf %558, %555 : vector<8x8xf32>
    %560 = arith.select %557, %555, %559 : vector<8x8xi1>, vector<8x8xf32>
    %561 = vector.broadcast %21 : f32 to vector<8x8xf32>
    %562 = arith.mulf %561, %560 : vector<8x8xf32>
    %563 = arith.addf %550, %562 : vector<8x8xf32>
    %564 = vector.extract_strided_slice %495 {offsets = [0, 5], sizes = [8, 1], strides = [1, 1]} : vector<8x32xf32> to vector<8x1xf32>
    %565 = vector.extract_strided_slice %497 {offsets = [5, 0], sizes = [1, 8], strides = [1, 1]} : vector<32x8xf32> to vector<1x8xf32>
    %566 = vector.broadcast %564 : vector<8x1xf32> to vector<8x8xf32>
    %567 = vector.broadcast %565 : vector<1x8xf32> to vector<8x8xf32>
    %568 = arith.addf %566, %567 : vector<8x8xf32>
    %cst_112 = arith.constant 0.000000e+00 : f32
    %569 = vector.broadcast %cst_112 : f32 to vector<8x8xf32>
    %570 = arith.cmpf oge, %568, %569 : vector<8x8xf32>
    %cst_113 = arith.constant 2.000000e-01 : f32
    %571 = vector.broadcast %cst_113 : f32 to vector<8x8xf32>
    %572 = arith.mulf %571, %568 : vector<8x8xf32>
    %573 = arith.select %570, %568, %572 : vector<8x8xi1>, vector<8x8xf32>
    %574 = vector.broadcast %22 : f32 to vector<8x8xf32>
    %575 = arith.mulf %574, %573 : vector<8x8xf32>
    %576 = arith.addf %563, %575 : vector<8x8xf32>
    %577 = vector.extract_strided_slice %495 {offsets = [0, 6], sizes = [8, 1], strides = [1, 1]} : vector<8x32xf32> to vector<8x1xf32>
    %578 = vector.extract_strided_slice %497 {offsets = [6, 0], sizes = [1, 8], strides = [1, 1]} : vector<32x8xf32> to vector<1x8xf32>
    %579 = vector.broadcast %577 : vector<8x1xf32> to vector<8x8xf32>
    %580 = vector.broadcast %578 : vector<1x8xf32> to vector<8x8xf32>
    %581 = arith.addf %579, %580 : vector<8x8xf32>
    %cst_114 = arith.constant 0.000000e+00 : f32
    %582 = vector.broadcast %cst_114 : f32 to vector<8x8xf32>
    %583 = arith.cmpf oge, %581, %582 : vector<8x8xf32>
    %cst_115 = arith.constant 2.000000e-01 : f32
    %584 = vector.broadcast %cst_115 : f32 to vector<8x8xf32>
    %585 = arith.mulf %584, %581 : vector<8x8xf32>
    %586 = arith.select %583, %581, %585 : vector<8x8xi1>, vector<8x8xf32>
    %587 = vector.broadcast %23 : f32 to vector<8x8xf32>
    %588 = arith.mulf %587, %586 : vector<8x8xf32>
    %589 = arith.addf %576, %588 : vector<8x8xf32>
    %590 = vector.extract_strided_slice %495 {offsets = [0, 7], sizes = [8, 1], strides = [1, 1]} : vector<8x32xf32> to vector<8x1xf32>
    %591 = vector.extract_strided_slice %497 {offsets = [7, 0], sizes = [1, 8], strides = [1, 1]} : vector<32x8xf32> to vector<1x8xf32>
    %592 = vector.broadcast %590 : vector<8x1xf32> to vector<8x8xf32>
    %593 = vector.broadcast %591 : vector<1x8xf32> to vector<8x8xf32>
    %594 = arith.addf %592, %593 : vector<8x8xf32>
    %cst_116 = arith.constant 0.000000e+00 : f32
    %595 = vector.broadcast %cst_116 : f32 to vector<8x8xf32>
    %596 = arith.cmpf oge, %594, %595 : vector<8x8xf32>
    %cst_117 = arith.constant 2.000000e-01 : f32
    %597 = vector.broadcast %cst_117 : f32 to vector<8x8xf32>
    %598 = arith.mulf %597, %594 : vector<8x8xf32>
    %599 = arith.select %596, %594, %598 : vector<8x8xi1>, vector<8x8xf32>
    %600 = vector.broadcast %24 : f32 to vector<8x8xf32>
    %601 = arith.mulf %600, %599 : vector<8x8xf32>
    %602 = arith.addf %589, %601 : vector<8x8xf32>
    %603 = vector.extract_strided_slice %495 {offsets = [0, 8], sizes = [8, 1], strides = [1, 1]} : vector<8x32xf32> to vector<8x1xf32>
    %604 = vector.extract_strided_slice %497 {offsets = [8, 0], sizes = [1, 8], strides = [1, 1]} : vector<32x8xf32> to vector<1x8xf32>
    %605 = vector.broadcast %603 : vector<8x1xf32> to vector<8x8xf32>
    %606 = vector.broadcast %604 : vector<1x8xf32> to vector<8x8xf32>
    %607 = arith.addf %605, %606 : vector<8x8xf32>
    %cst_118 = arith.constant 0.000000e+00 : f32
    %608 = vector.broadcast %cst_118 : f32 to vector<8x8xf32>
    %609 = arith.cmpf oge, %607, %608 : vector<8x8xf32>
    %cst_119 = arith.constant 2.000000e-01 : f32
    %610 = vector.broadcast %cst_119 : f32 to vector<8x8xf32>
    %611 = arith.mulf %610, %607 : vector<8x8xf32>
    %612 = arith.select %609, %607, %611 : vector<8x8xi1>, vector<8x8xf32>
    %613 = vector.broadcast %25 : f32 to vector<8x8xf32>
    %614 = arith.mulf %613, %612 : vector<8x8xf32>
    %615 = arith.addf %602, %614 : vector<8x8xf32>
    %616 = vector.extract_strided_slice %495 {offsets = [0, 9], sizes = [8, 1], strides = [1, 1]} : vector<8x32xf32> to vector<8x1xf32>
    %617 = vector.extract_strided_slice %497 {offsets = [9, 0], sizes = [1, 8], strides = [1, 1]} : vector<32x8xf32> to vector<1x8xf32>
    %618 = vector.broadcast %616 : vector<8x1xf32> to vector<8x8xf32>
    %619 = vector.broadcast %617 : vector<1x8xf32> to vector<8x8xf32>
    %620 = arith.addf %618, %619 : vector<8x8xf32>
    %cst_120 = arith.constant 0.000000e+00 : f32
    %621 = vector.broadcast %cst_120 : f32 to vector<8x8xf32>
    %622 = arith.cmpf oge, %620, %621 : vector<8x8xf32>
    %cst_121 = arith.constant 2.000000e-01 : f32
    %623 = vector.broadcast %cst_121 : f32 to vector<8x8xf32>
    %624 = arith.mulf %623, %620 : vector<8x8xf32>
    %625 = arith.select %622, %620, %624 : vector<8x8xi1>, vector<8x8xf32>
    %626 = vector.broadcast %26 : f32 to vector<8x8xf32>
    %627 = arith.mulf %626, %625 : vector<8x8xf32>
    %628 = arith.addf %615, %627 : vector<8x8xf32>
    %629 = vector.extract_strided_slice %495 {offsets = [0, 10], sizes = [8, 1], strides = [1, 1]} : vector<8x32xf32> to vector<8x1xf32>
    %630 = vector.extract_strided_slice %497 {offsets = [10, 0], sizes = [1, 8], strides = [1, 1]} : vector<32x8xf32> to vector<1x8xf32>
    %631 = vector.broadcast %629 : vector<8x1xf32> to vector<8x8xf32>
    %632 = vector.broadcast %630 : vector<1x8xf32> to vector<8x8xf32>
    %633 = arith.addf %631, %632 : vector<8x8xf32>
    %cst_122 = arith.constant 0.000000e+00 : f32
    %634 = vector.broadcast %cst_122 : f32 to vector<8x8xf32>
    %635 = arith.cmpf oge, %633, %634 : vector<8x8xf32>
    %cst_123 = arith.constant 2.000000e-01 : f32
    %636 = vector.broadcast %cst_123 : f32 to vector<8x8xf32>
    %637 = arith.mulf %636, %633 : vector<8x8xf32>
    %638 = arith.select %635, %633, %637 : vector<8x8xi1>, vector<8x8xf32>
    %639 = vector.broadcast %27 : f32 to vector<8x8xf32>
    %640 = arith.mulf %639, %638 : vector<8x8xf32>
    %641 = arith.addf %628, %640 : vector<8x8xf32>
    %642 = vector.extract_strided_slice %495 {offsets = [0, 11], sizes = [8, 1], strides = [1, 1]} : vector<8x32xf32> to vector<8x1xf32>
    %643 = vector.extract_strided_slice %497 {offsets = [11, 0], sizes = [1, 8], strides = [1, 1]} : vector<32x8xf32> to vector<1x8xf32>
    %644 = vector.broadcast %642 : vector<8x1xf32> to vector<8x8xf32>
    %645 = vector.broadcast %643 : vector<1x8xf32> to vector<8x8xf32>
    %646 = arith.addf %644, %645 : vector<8x8xf32>
    %cst_124 = arith.constant 0.000000e+00 : f32
    %647 = vector.broadcast %cst_124 : f32 to vector<8x8xf32>
    %648 = arith.cmpf oge, %646, %647 : vector<8x8xf32>
    %cst_125 = arith.constant 2.000000e-01 : f32
    %649 = vector.broadcast %cst_125 : f32 to vector<8x8xf32>
    %650 = arith.mulf %649, %646 : vector<8x8xf32>
    %651 = arith.select %648, %646, %650 : vector<8x8xi1>, vector<8x8xf32>
    %652 = vector.broadcast %28 : f32 to vector<8x8xf32>
    %653 = arith.mulf %652, %651 : vector<8x8xf32>
    %654 = arith.addf %641, %653 : vector<8x8xf32>
    %655 = vector.extract_strided_slice %495 {offsets = [0, 12], sizes = [8, 1], strides = [1, 1]} : vector<8x32xf32> to vector<8x1xf32>
    %656 = vector.extract_strided_slice %497 {offsets = [12, 0], sizes = [1, 8], strides = [1, 1]} : vector<32x8xf32> to vector<1x8xf32>
    %657 = vector.broadcast %655 : vector<8x1xf32> to vector<8x8xf32>
    %658 = vector.broadcast %656 : vector<1x8xf32> to vector<8x8xf32>
    %659 = arith.addf %657, %658 : vector<8x8xf32>
    %cst_126 = arith.constant 0.000000e+00 : f32
    %660 = vector.broadcast %cst_126 : f32 to vector<8x8xf32>
    %661 = arith.cmpf oge, %659, %660 : vector<8x8xf32>
    %cst_127 = arith.constant 2.000000e-01 : f32
    %662 = vector.broadcast %cst_127 : f32 to vector<8x8xf32>
    %663 = arith.mulf %662, %659 : vector<8x8xf32>
    %664 = arith.select %661, %659, %663 : vector<8x8xi1>, vector<8x8xf32>
    %665 = vector.broadcast %29 : f32 to vector<8x8xf32>
    %666 = arith.mulf %665, %664 : vector<8x8xf32>
    %667 = arith.addf %654, %666 : vector<8x8xf32>
    %668 = vector.extract_strided_slice %495 {offsets = [0, 13], sizes = [8, 1], strides = [1, 1]} : vector<8x32xf32> to vector<8x1xf32>
    %669 = vector.extract_strided_slice %497 {offsets = [13, 0], sizes = [1, 8], strides = [1, 1]} : vector<32x8xf32> to vector<1x8xf32>
    %670 = vector.broadcast %668 : vector<8x1xf32> to vector<8x8xf32>
    %671 = vector.broadcast %669 : vector<1x8xf32> to vector<8x8xf32>
    %672 = arith.addf %670, %671 : vector<8x8xf32>
    %cst_128 = arith.constant 0.000000e+00 : f32
    %673 = vector.broadcast %cst_128 : f32 to vector<8x8xf32>
    %674 = arith.cmpf oge, %672, %673 : vector<8x8xf32>
    %cst_129 = arith.constant 2.000000e-01 : f32
    %675 = vector.broadcast %cst_129 : f32 to vector<8x8xf32>
    %676 = arith.mulf %675, %672 : vector<8x8xf32>
    %677 = arith.select %674, %672, %676 : vector<8x8xi1>, vector<8x8xf32>
    %678 = vector.broadcast %30 : f32 to vector<8x8xf32>
    %679 = arith.mulf %678, %677 : vector<8x8xf32>
    %680 = arith.addf %667, %679 : vector<8x8xf32>
    %681 = vector.extract_strided_slice %495 {offsets = [0, 14], sizes = [8, 1], strides = [1, 1]} : vector<8x32xf32> to vector<8x1xf32>
    %682 = vector.extract_strided_slice %497 {offsets = [14, 0], sizes = [1, 8], strides = [1, 1]} : vector<32x8xf32> to vector<1x8xf32>
    %683 = vector.broadcast %681 : vector<8x1xf32> to vector<8x8xf32>
    %684 = vector.broadcast %682 : vector<1x8xf32> to vector<8x8xf32>
    %685 = arith.addf %683, %684 : vector<8x8xf32>
    %cst_130 = arith.constant 0.000000e+00 : f32
    %686 = vector.broadcast %cst_130 : f32 to vector<8x8xf32>
    %687 = arith.cmpf oge, %685, %686 : vector<8x8xf32>
    %cst_131 = arith.constant 2.000000e-01 : f32
    %688 = vector.broadcast %cst_131 : f32 to vector<8x8xf32>
    %689 = arith.mulf %688, %685 : vector<8x8xf32>
    %690 = arith.select %687, %685, %689 : vector<8x8xi1>, vector<8x8xf32>
    %691 = vector.broadcast %31 : f32 to vector<8x8xf32>
    %692 = arith.mulf %691, %690 : vector<8x8xf32>
    %693 = arith.addf %680, %692 : vector<8x8xf32>
    %694 = vector.extract_strided_slice %495 {offsets = [0, 15], sizes = [8, 1], strides = [1, 1]} : vector<8x32xf32> to vector<8x1xf32>
    %695 = vector.extract_strided_slice %497 {offsets = [15, 0], sizes = [1, 8], strides = [1, 1]} : vector<32x8xf32> to vector<1x8xf32>
    %696 = vector.broadcast %694 : vector<8x1xf32> to vector<8x8xf32>
    %697 = vector.broadcast %695 : vector<1x8xf32> to vector<8x8xf32>
    %698 = arith.addf %696, %697 : vector<8x8xf32>
    %cst_132 = arith.constant 0.000000e+00 : f32
    %699 = vector.broadcast %cst_132 : f32 to vector<8x8xf32>
    %700 = arith.cmpf oge, %698, %699 : vector<8x8xf32>
    %cst_133 = arith.constant 2.000000e-01 : f32
    %701 = vector.broadcast %cst_133 : f32 to vector<8x8xf32>
    %702 = arith.mulf %701, %698 : vector<8x8xf32>
    %703 = arith.select %700, %698, %702 : vector<8x8xi1>, vector<8x8xf32>
    %704 = vector.broadcast %32 : f32 to vector<8x8xf32>
    %705 = arith.mulf %704, %703 : vector<8x8xf32>
    %706 = arith.addf %693, %705 : vector<8x8xf32>
    %707 = vector.extract_strided_slice %495 {offsets = [0, 16], sizes = [8, 1], strides = [1, 1]} : vector<8x32xf32> to vector<8x1xf32>
    %708 = vector.extract_strided_slice %497 {offsets = [16, 0], sizes = [1, 8], strides = [1, 1]} : vector<32x8xf32> to vector<1x8xf32>
    %709 = vector.broadcast %707 : vector<8x1xf32> to vector<8x8xf32>
    %710 = vector.broadcast %708 : vector<1x8xf32> to vector<8x8xf32>
    %711 = arith.addf %709, %710 : vector<8x8xf32>
    %cst_134 = arith.constant 0.000000e+00 : f32
    %712 = vector.broadcast %cst_134 : f32 to vector<8x8xf32>
    %713 = arith.cmpf oge, %711, %712 : vector<8x8xf32>
    %cst_135 = arith.constant 2.000000e-01 : f32
    %714 = vector.broadcast %cst_135 : f32 to vector<8x8xf32>
    %715 = arith.mulf %714, %711 : vector<8x8xf32>
    %716 = arith.select %713, %711, %715 : vector<8x8xi1>, vector<8x8xf32>
    %717 = vector.broadcast %33 : f32 to vector<8x8xf32>
    %718 = arith.mulf %717, %716 : vector<8x8xf32>
    %719 = arith.addf %706, %718 : vector<8x8xf32>
    %720 = vector.extract_strided_slice %495 {offsets = [0, 17], sizes = [8, 1], strides = [1, 1]} : vector<8x32xf32> to vector<8x1xf32>
    %721 = vector.extract_strided_slice %497 {offsets = [17, 0], sizes = [1, 8], strides = [1, 1]} : vector<32x8xf32> to vector<1x8xf32>
    %722 = vector.broadcast %720 : vector<8x1xf32> to vector<8x8xf32>
    %723 = vector.broadcast %721 : vector<1x8xf32> to vector<8x8xf32>
    %724 = arith.addf %722, %723 : vector<8x8xf32>
    %cst_136 = arith.constant 0.000000e+00 : f32
    %725 = vector.broadcast %cst_136 : f32 to vector<8x8xf32>
    %726 = arith.cmpf oge, %724, %725 : vector<8x8xf32>
    %cst_137 = arith.constant 2.000000e-01 : f32
    %727 = vector.broadcast %cst_137 : f32 to vector<8x8xf32>
    %728 = arith.mulf %727, %724 : vector<8x8xf32>
    %729 = arith.select %726, %724, %728 : vector<8x8xi1>, vector<8x8xf32>
    %730 = vector.broadcast %34 : f32 to vector<8x8xf32>
    %731 = arith.mulf %730, %729 : vector<8x8xf32>
    %732 = arith.addf %719, %731 : vector<8x8xf32>
    %733 = vector.extract_strided_slice %495 {offsets = [0, 18], sizes = [8, 1], strides = [1, 1]} : vector<8x32xf32> to vector<8x1xf32>
    %734 = vector.extract_strided_slice %497 {offsets = [18, 0], sizes = [1, 8], strides = [1, 1]} : vector<32x8xf32> to vector<1x8xf32>
    %735 = vector.broadcast %733 : vector<8x1xf32> to vector<8x8xf32>
    %736 = vector.broadcast %734 : vector<1x8xf32> to vector<8x8xf32>
    %737 = arith.addf %735, %736 : vector<8x8xf32>
    %cst_138 = arith.constant 0.000000e+00 : f32
    %738 = vector.broadcast %cst_138 : f32 to vector<8x8xf32>
    %739 = arith.cmpf oge, %737, %738 : vector<8x8xf32>
    %cst_139 = arith.constant 2.000000e-01 : f32
    %740 = vector.broadcast %cst_139 : f32 to vector<8x8xf32>
    %741 = arith.mulf %740, %737 : vector<8x8xf32>
    %742 = arith.select %739, %737, %741 : vector<8x8xi1>, vector<8x8xf32>
    %743 = vector.broadcast %35 : f32 to vector<8x8xf32>
    %744 = arith.mulf %743, %742 : vector<8x8xf32>
    %745 = arith.addf %732, %744 : vector<8x8xf32>
    %746 = vector.extract_strided_slice %495 {offsets = [0, 19], sizes = [8, 1], strides = [1, 1]} : vector<8x32xf32> to vector<8x1xf32>
    %747 = vector.extract_strided_slice %497 {offsets = [19, 0], sizes = [1, 8], strides = [1, 1]} : vector<32x8xf32> to vector<1x8xf32>
    %748 = vector.broadcast %746 : vector<8x1xf32> to vector<8x8xf32>
    %749 = vector.broadcast %747 : vector<1x8xf32> to vector<8x8xf32>
    %750 = arith.addf %748, %749 : vector<8x8xf32>
    %cst_140 = arith.constant 0.000000e+00 : f32
    %751 = vector.broadcast %cst_140 : f32 to vector<8x8xf32>
    %752 = arith.cmpf oge, %750, %751 : vector<8x8xf32>
    %cst_141 = arith.constant 2.000000e-01 : f32
    %753 = vector.broadcast %cst_141 : f32 to vector<8x8xf32>
    %754 = arith.mulf %753, %750 : vector<8x8xf32>
    %755 = arith.select %752, %750, %754 : vector<8x8xi1>, vector<8x8xf32>
    %756 = vector.broadcast %36 : f32 to vector<8x8xf32>
    %757 = arith.mulf %756, %755 : vector<8x8xf32>
    %758 = arith.addf %745, %757 : vector<8x8xf32>
    %759 = vector.extract_strided_slice %495 {offsets = [0, 20], sizes = [8, 1], strides = [1, 1]} : vector<8x32xf32> to vector<8x1xf32>
    %760 = vector.extract_strided_slice %497 {offsets = [20, 0], sizes = [1, 8], strides = [1, 1]} : vector<32x8xf32> to vector<1x8xf32>
    %761 = vector.broadcast %759 : vector<8x1xf32> to vector<8x8xf32>
    %762 = vector.broadcast %760 : vector<1x8xf32> to vector<8x8xf32>
    %763 = arith.addf %761, %762 : vector<8x8xf32>
    %cst_142 = arith.constant 0.000000e+00 : f32
    %764 = vector.broadcast %cst_142 : f32 to vector<8x8xf32>
    %765 = arith.cmpf oge, %763, %764 : vector<8x8xf32>
    %cst_143 = arith.constant 2.000000e-01 : f32
    %766 = vector.broadcast %cst_143 : f32 to vector<8x8xf32>
    %767 = arith.mulf %766, %763 : vector<8x8xf32>
    %768 = arith.select %765, %763, %767 : vector<8x8xi1>, vector<8x8xf32>
    %769 = vector.broadcast %37 : f32 to vector<8x8xf32>
    %770 = arith.mulf %769, %768 : vector<8x8xf32>
    %771 = arith.addf %758, %770 : vector<8x8xf32>
    %772 = vector.extract_strided_slice %495 {offsets = [0, 21], sizes = [8, 1], strides = [1, 1]} : vector<8x32xf32> to vector<8x1xf32>
    %773 = vector.extract_strided_slice %497 {offsets = [21, 0], sizes = [1, 8], strides = [1, 1]} : vector<32x8xf32> to vector<1x8xf32>
    %774 = vector.broadcast %772 : vector<8x1xf32> to vector<8x8xf32>
    %775 = vector.broadcast %773 : vector<1x8xf32> to vector<8x8xf32>
    %776 = arith.addf %774, %775 : vector<8x8xf32>
    %cst_144 = arith.constant 0.000000e+00 : f32
    %777 = vector.broadcast %cst_144 : f32 to vector<8x8xf32>
    %778 = arith.cmpf oge, %776, %777 : vector<8x8xf32>
    %cst_145 = arith.constant 2.000000e-01 : f32
    %779 = vector.broadcast %cst_145 : f32 to vector<8x8xf32>
    %780 = arith.mulf %779, %776 : vector<8x8xf32>
    %781 = arith.select %778, %776, %780 : vector<8x8xi1>, vector<8x8xf32>
    %782 = vector.broadcast %38 : f32 to vector<8x8xf32>
    %783 = arith.mulf %782, %781 : vector<8x8xf32>
    %784 = arith.addf %771, %783 : vector<8x8xf32>
    %785 = vector.extract_strided_slice %495 {offsets = [0, 22], sizes = [8, 1], strides = [1, 1]} : vector<8x32xf32> to vector<8x1xf32>
    %786 = vector.extract_strided_slice %497 {offsets = [22, 0], sizes = [1, 8], strides = [1, 1]} : vector<32x8xf32> to vector<1x8xf32>
    %787 = vector.broadcast %785 : vector<8x1xf32> to vector<8x8xf32>
    %788 = vector.broadcast %786 : vector<1x8xf32> to vector<8x8xf32>
    %789 = arith.addf %787, %788 : vector<8x8xf32>
    %cst_146 = arith.constant 0.000000e+00 : f32
    %790 = vector.broadcast %cst_146 : f32 to vector<8x8xf32>
    %791 = arith.cmpf oge, %789, %790 : vector<8x8xf32>
    %cst_147 = arith.constant 2.000000e-01 : f32
    %792 = vector.broadcast %cst_147 : f32 to vector<8x8xf32>
    %793 = arith.mulf %792, %789 : vector<8x8xf32>
    %794 = arith.select %791, %789, %793 : vector<8x8xi1>, vector<8x8xf32>
    %795 = vector.broadcast %39 : f32 to vector<8x8xf32>
    %796 = arith.mulf %795, %794 : vector<8x8xf32>
    %797 = arith.addf %784, %796 : vector<8x8xf32>
    %798 = vector.extract_strided_slice %495 {offsets = [0, 23], sizes = [8, 1], strides = [1, 1]} : vector<8x32xf32> to vector<8x1xf32>
    %799 = vector.extract_strided_slice %497 {offsets = [23, 0], sizes = [1, 8], strides = [1, 1]} : vector<32x8xf32> to vector<1x8xf32>
    %800 = vector.broadcast %798 : vector<8x1xf32> to vector<8x8xf32>
    %801 = vector.broadcast %799 : vector<1x8xf32> to vector<8x8xf32>
    %802 = arith.addf %800, %801 : vector<8x8xf32>
    %cst_148 = arith.constant 0.000000e+00 : f32
    %803 = vector.broadcast %cst_148 : f32 to vector<8x8xf32>
    %804 = arith.cmpf oge, %802, %803 : vector<8x8xf32>
    %cst_149 = arith.constant 2.000000e-01 : f32
    %805 = vector.broadcast %cst_149 : f32 to vector<8x8xf32>
    %806 = arith.mulf %805, %802 : vector<8x8xf32>
    %807 = arith.select %804, %802, %806 : vector<8x8xi1>, vector<8x8xf32>
    %808 = vector.broadcast %40 : f32 to vector<8x8xf32>
    %809 = arith.mulf %808, %807 : vector<8x8xf32>
    %810 = arith.addf %797, %809 : vector<8x8xf32>
    %811 = vector.extract_strided_slice %495 {offsets = [0, 24], sizes = [8, 1], strides = [1, 1]} : vector<8x32xf32> to vector<8x1xf32>
    %812 = vector.extract_strided_slice %497 {offsets = [24, 0], sizes = [1, 8], strides = [1, 1]} : vector<32x8xf32> to vector<1x8xf32>
    %813 = vector.broadcast %811 : vector<8x1xf32> to vector<8x8xf32>
    %814 = vector.broadcast %812 : vector<1x8xf32> to vector<8x8xf32>
    %815 = arith.addf %813, %814 : vector<8x8xf32>
    %cst_150 = arith.constant 0.000000e+00 : f32
    %816 = vector.broadcast %cst_150 : f32 to vector<8x8xf32>
    %817 = arith.cmpf oge, %815, %816 : vector<8x8xf32>
    %cst_151 = arith.constant 2.000000e-01 : f32
    %818 = vector.broadcast %cst_151 : f32 to vector<8x8xf32>
    %819 = arith.mulf %818, %815 : vector<8x8xf32>
    %820 = arith.select %817, %815, %819 : vector<8x8xi1>, vector<8x8xf32>
    %821 = vector.broadcast %41 : f32 to vector<8x8xf32>
    %822 = arith.mulf %821, %820 : vector<8x8xf32>
    %823 = arith.addf %810, %822 : vector<8x8xf32>
    %824 = vector.extract_strided_slice %495 {offsets = [0, 25], sizes = [8, 1], strides = [1, 1]} : vector<8x32xf32> to vector<8x1xf32>
    %825 = vector.extract_strided_slice %497 {offsets = [25, 0], sizes = [1, 8], strides = [1, 1]} : vector<32x8xf32> to vector<1x8xf32>
    %826 = vector.broadcast %824 : vector<8x1xf32> to vector<8x8xf32>
    %827 = vector.broadcast %825 : vector<1x8xf32> to vector<8x8xf32>
    %828 = arith.addf %826, %827 : vector<8x8xf32>
    %cst_152 = arith.constant 0.000000e+00 : f32
    %829 = vector.broadcast %cst_152 : f32 to vector<8x8xf32>
    %830 = arith.cmpf oge, %828, %829 : vector<8x8xf32>
    %cst_153 = arith.constant 2.000000e-01 : f32
    %831 = vector.broadcast %cst_153 : f32 to vector<8x8xf32>
    %832 = arith.mulf %831, %828 : vector<8x8xf32>
    %833 = arith.select %830, %828, %832 : vector<8x8xi1>, vector<8x8xf32>
    %834 = vector.broadcast %42 : f32 to vector<8x8xf32>
    %835 = arith.mulf %834, %833 : vector<8x8xf32>
    %836 = arith.addf %823, %835 : vector<8x8xf32>
    %837 = vector.extract_strided_slice %495 {offsets = [0, 26], sizes = [8, 1], strides = [1, 1]} : vector<8x32xf32> to vector<8x1xf32>
    %838 = vector.extract_strided_slice %497 {offsets = [26, 0], sizes = [1, 8], strides = [1, 1]} : vector<32x8xf32> to vector<1x8xf32>
    %839 = vector.broadcast %837 : vector<8x1xf32> to vector<8x8xf32>
    %840 = vector.broadcast %838 : vector<1x8xf32> to vector<8x8xf32>
    %841 = arith.addf %839, %840 : vector<8x8xf32>
    %cst_154 = arith.constant 0.000000e+00 : f32
    %842 = vector.broadcast %cst_154 : f32 to vector<8x8xf32>
    %843 = arith.cmpf oge, %841, %842 : vector<8x8xf32>
    %cst_155 = arith.constant 2.000000e-01 : f32
    %844 = vector.broadcast %cst_155 : f32 to vector<8x8xf32>
    %845 = arith.mulf %844, %841 : vector<8x8xf32>
    %846 = arith.select %843, %841, %845 : vector<8x8xi1>, vector<8x8xf32>
    %847 = vector.broadcast %43 : f32 to vector<8x8xf32>
    %848 = arith.mulf %847, %846 : vector<8x8xf32>
    %849 = arith.addf %836, %848 : vector<8x8xf32>
    %850 = vector.extract_strided_slice %495 {offsets = [0, 27], sizes = [8, 1], strides = [1, 1]} : vector<8x32xf32> to vector<8x1xf32>
    %851 = vector.extract_strided_slice %497 {offsets = [27, 0], sizes = [1, 8], strides = [1, 1]} : vector<32x8xf32> to vector<1x8xf32>
    %852 = vector.broadcast %850 : vector<8x1xf32> to vector<8x8xf32>
    %853 = vector.broadcast %851 : vector<1x8xf32> to vector<8x8xf32>
    %854 = arith.addf %852, %853 : vector<8x8xf32>
    %cst_156 = arith.constant 0.000000e+00 : f32
    %855 = vector.broadcast %cst_156 : f32 to vector<8x8xf32>
    %856 = arith.cmpf oge, %854, %855 : vector<8x8xf32>
    %cst_157 = arith.constant 2.000000e-01 : f32
    %857 = vector.broadcast %cst_157 : f32 to vector<8x8xf32>
    %858 = arith.mulf %857, %854 : vector<8x8xf32>
    %859 = arith.select %856, %854, %858 : vector<8x8xi1>, vector<8x8xf32>
    %860 = vector.broadcast %44 : f32 to vector<8x8xf32>
    %861 = arith.mulf %860, %859 : vector<8x8xf32>
    %862 = arith.addf %849, %861 : vector<8x8xf32>
    %863 = vector.extract_strided_slice %495 {offsets = [0, 28], sizes = [8, 1], strides = [1, 1]} : vector<8x32xf32> to vector<8x1xf32>
    %864 = vector.extract_strided_slice %497 {offsets = [28, 0], sizes = [1, 8], strides = [1, 1]} : vector<32x8xf32> to vector<1x8xf32>
    %865 = vector.broadcast %863 : vector<8x1xf32> to vector<8x8xf32>
    %866 = vector.broadcast %864 : vector<1x8xf32> to vector<8x8xf32>
    %867 = arith.addf %865, %866 : vector<8x8xf32>
    %cst_158 = arith.constant 0.000000e+00 : f32
    %868 = vector.broadcast %cst_158 : f32 to vector<8x8xf32>
    %869 = arith.cmpf oge, %867, %868 : vector<8x8xf32>
    %cst_159 = arith.constant 2.000000e-01 : f32
    %870 = vector.broadcast %cst_159 : f32 to vector<8x8xf32>
    %871 = arith.mulf %870, %867 : vector<8x8xf32>
    %872 = arith.select %869, %867, %871 : vector<8x8xi1>, vector<8x8xf32>
    %873 = vector.broadcast %45 : f32 to vector<8x8xf32>
    %874 = arith.mulf %873, %872 : vector<8x8xf32>
    %875 = arith.addf %862, %874 : vector<8x8xf32>
    %876 = vector.extract_strided_slice %495 {offsets = [0, 29], sizes = [8, 1], strides = [1, 1]} : vector<8x32xf32> to vector<8x1xf32>
    %877 = vector.extract_strided_slice %497 {offsets = [29, 0], sizes = [1, 8], strides = [1, 1]} : vector<32x8xf32> to vector<1x8xf32>
    %878 = vector.broadcast %876 : vector<8x1xf32> to vector<8x8xf32>
    %879 = vector.broadcast %877 : vector<1x8xf32> to vector<8x8xf32>
    %880 = arith.addf %878, %879 : vector<8x8xf32>
    %cst_160 = arith.constant 0.000000e+00 : f32
    %881 = vector.broadcast %cst_160 : f32 to vector<8x8xf32>
    %882 = arith.cmpf oge, %880, %881 : vector<8x8xf32>
    %cst_161 = arith.constant 2.000000e-01 : f32
    %883 = vector.broadcast %cst_161 : f32 to vector<8x8xf32>
    %884 = arith.mulf %883, %880 : vector<8x8xf32>
    %885 = arith.select %882, %880, %884 : vector<8x8xi1>, vector<8x8xf32>
    %886 = vector.broadcast %46 : f32 to vector<8x8xf32>
    %887 = arith.mulf %886, %885 : vector<8x8xf32>
    %888 = arith.addf %875, %887 : vector<8x8xf32>
    %889 = vector.extract_strided_slice %495 {offsets = [0, 30], sizes = [8, 1], strides = [1, 1]} : vector<8x32xf32> to vector<8x1xf32>
    %890 = vector.extract_strided_slice %497 {offsets = [30, 0], sizes = [1, 8], strides = [1, 1]} : vector<32x8xf32> to vector<1x8xf32>
    %891 = vector.broadcast %889 : vector<8x1xf32> to vector<8x8xf32>
    %892 = vector.broadcast %890 : vector<1x8xf32> to vector<8x8xf32>
    %893 = arith.addf %891, %892 : vector<8x8xf32>
    %cst_162 = arith.constant 0.000000e+00 : f32
    %894 = vector.broadcast %cst_162 : f32 to vector<8x8xf32>
    %895 = arith.cmpf oge, %893, %894 : vector<8x8xf32>
    %cst_163 = arith.constant 2.000000e-01 : f32
    %896 = vector.broadcast %cst_163 : f32 to vector<8x8xf32>
    %897 = arith.mulf %896, %893 : vector<8x8xf32>
    %898 = arith.select %895, %893, %897 : vector<8x8xi1>, vector<8x8xf32>
    %899 = vector.broadcast %47 : f32 to vector<8x8xf32>
    %900 = arith.mulf %899, %898 : vector<8x8xf32>
    %901 = arith.addf %888, %900 : vector<8x8xf32>
    %902 = vector.extract_strided_slice %495 {offsets = [0, 31], sizes = [8, 1], strides = [1, 1]} : vector<8x32xf32> to vector<8x1xf32>
    %903 = vector.extract_strided_slice %497 {offsets = [31, 0], sizes = [1, 8], strides = [1, 1]} : vector<32x8xf32> to vector<1x8xf32>
    %904 = vector.broadcast %902 : vector<8x1xf32> to vector<8x8xf32>
    %905 = vector.broadcast %903 : vector<1x8xf32> to vector<8x8xf32>
    %906 = arith.addf %904, %905 : vector<8x8xf32>
    %cst_164 = arith.constant 0.000000e+00 : f32
    %907 = vector.broadcast %cst_164 : f32 to vector<8x8xf32>
    %908 = arith.cmpf oge, %906, %907 : vector<8x8xf32>
    %cst_165 = arith.constant 2.000000e-01 : f32
    %909 = vector.broadcast %cst_165 : f32 to vector<8x8xf32>
    %910 = arith.mulf %909, %906 : vector<8x8xf32>
    %911 = arith.select %908, %906, %910 : vector<8x8xi1>, vector<8x8xf32>
    %912 = vector.broadcast %48 : f32 to vector<8x8xf32>
    %913 = arith.mulf %912, %911 : vector<8x8xf32>
    %914 = arith.addf %901, %913 : vector<8x8xf32>
    %915 = vector.broadcast %49 : f32 to vector<8x8xf32>
    %916 = arith.addf %914, %915 : vector<8x8xf32>
    %cst_166 = arith.constant 0.000000e+00 : f32
    %917 = vector.broadcast %cst_166 : f32 to vector<8x8xf32>
    %918 = arith.cmpf oeq, %1, %917 : vector<8x8xf32>
    %cst_167 = arith.constant -1.000000e+09 : f32
    %919 = vector.broadcast %cst_167 : f32 to vector<8x8xf32>
    %920 = arith.select %918, %919, %916 : vector<8x8xi1>, vector<8x8xf32>
    %cst_168 = arith.constant dense<0xFF800000> : vector<8xf32>
    %921 = vector.multi_reduction <maximumf>, %920, %cst_168 [1] : vector<8x8xf32> to vector<8xf32>
    %922 = vector.shape_cast %921 : vector<8xf32> to vector<8x1xf32>
    %923 = vector.broadcast %922 : vector<8x1xf32> to vector<8x8xf32>
    %924 = arith.subf %920, %923 : vector<8x8xf32>
    %925 = math.exp %924 : vector<8x8xf32>
    %cst_169 = arith.constant dense<0.000000e+00> : vector<8xf32>
    %926 = vector.multi_reduction <add>, %925, %cst_169 [1] : vector<8x8xf32> to vector<8xf32>
    %927 = vector.shape_cast %926 : vector<8xf32> to vector<8x1xf32>
    %928 = tpu.reciprocal %927 : vector<8x1xf32> -> vector<8x1xf32>
    %929 = vector.broadcast %928 : vector<8x1xf32> to vector<8x8xf32>
    %930 = arith.mulf %925, %929 : vector<8x8xf32>
    %c0_170 = arith.constant 0 : index
    %c1_171 = arith.constant 1 : index
    %c0_172 = arith.constant 0 : index
    %c0_173 = arith.constant 0 : index
    %931 = vector.load %arg11[%c0_170, %c1_171, %c0_172, %c0_173] : memref<1x2x8x8xf32, #tpu.memory_space<vmem>>, vector<1x1x8x8xf32>
    %932 = vector.shape_cast %931 : vector<1x1x8x8xf32> to vector<8x8xf32>
    %933 = vector.shape_cast %930 : vector<8x8xf32> to vector<1x1x8x8xf32>
    tpu.vector_store %arg11[%c0_170, %c1_171, %c0_172, %c0_173], %933 {strides = array<i32>} : memref<1x2x8x8xf32, #tpu.memory_space<vmem>>, vector<1x1x8x8xf32>,
    %934 = vector.extract_strided_slice %3 {offsets = [1, 0, 0], sizes = [1, 8, 32], strides = [1, 1, 1]} : vector<2x8x32xf32> to vector<1x8x32xf32>
    %935 = vector.shape_cast %934 : vector<1x8x32xf32> to vector<8x32xf32>
    %cst_174 = arith.constant dense<0.000000e+00> : vector<8x32xf32>
    %936 = tpu.matmul %930, %935, %cst_174 {dimension_numbers = #tpu.dot_dimension_numbers<[1], [0], [0], [1], [0, 0, 1, 1], [], []>} : vector<8x8xf32>, vector<8x32xf32>, vector<8x32xf32> -> vector<8x32xf32>
    %c0_175 = arith.constant 0 : index
    %c1_176 = arith.constant 1 : index
    %c0_177 = arith.constant 0 : index
    %c0_178 = arith.constant 0 : index
    %937 = vector.load %arg10[%c0_175, %c1_176, %c0_177, %c0_178] : memref<1x2x8x32xf32, #tpu.memory_space<vmem>>, vector<1x1x8x32xf32>
    %938 = vector.shape_cast %937 : vector<1x1x8x32xf32> to vector<8x32xf32>
    %939 = vector.shape_cast %936 : vector<8x32xf32> to vector<1x1x8x32xf32>
    tpu.vector_store %arg10[%c0_175, %c1_176, %c0_177, %c0_178], %939 {strides = array<i32>} : memref<1x2x8x32xf32, #tpu.memory_space<vmem>>, vector<1x1x8x32xf32>,
    return
  }
  func.func @transform_0(%arg0: i32) -> (i32, i32, i32, i32) {
    %c0_i32 = arith.constant 0 : i32
    %c0_i32_0 = arith.constant 0 : i32
    %c0_i32_1 = arith.constant 0 : i32
    %c0_i32_2 = arith.constant 0 : i32
    return %arg0, %c0_i32, %c0_i32_0, %c0_i32_1 : i32, i32, i32, i32
  }
  func.func @transform_1(%arg0: i32) -> (i32, i32, i32, i32) {
    %c0_i32 = arith.constant 0 : i32
    %c0_i32_0 = arith.constant 0 : i32
    %c0_i32_1 = arith.constant 0 : i32
    %c0_i32_2 = arith.constant 0 : i32
    return %arg0, %c0_i32, %c0_i32_0, %c0_i32_1 : i32, i32, i32, i32
  }
  func.func @transform_2(%arg0: i32) -> (i32, i32, i32, i32) {
    %c0_i32 = arith.constant 0 : i32
    %c0_i32_0 = arith.constant 0 : i32
    %c0_i32_1 = arith.constant 0 : i32
    %c0_i32_2 = arith.constant 0 : i32
    return %arg0, %c0_i32, %c0_i32_0, %c0_i32_1 : i32, i32, i32, i32
  }
  func.func @transform_3(%arg0: i32) -> (i32, i32, i32) {
    %c0_i32 = arith.constant 0 : i32
    %c0_i32_0 = arith.constant 0 : i32
    %c0_i32_1 = arith.constant 0 : i32
    return %arg0, %c0_i32, %c0_i32_0 : i32, i32, i32
  }
  func.func @transform_4(%arg0: i32) -> (i32, i32) {
    %c0_i32 = arith.constant 0 : i32
    %c0_i32_0 = arith.constant 0 : i32
    %c0_i32_1 = arith.constant 0 : i32
    return %c0_i32, %c0_i32_0 : i32, i32
  }
  func.func @transform_5(%arg0: i32) -> (i32, i32) {
    %c0_i32 = arith.constant 0 : i32
    %c0_i32_0 = arith.constant 0 : i32
    %c0_i32_1 = arith.constant 0 : i32
    return %c0_i32, %c0_i32_0 : i32, i32
  }
  func.func @transform_6(%arg0: i32) -> (i32, i32) {
    %c0_i32 = arith.constant 0 : i32
    %c0_i32_0 = arith.constant 0 : i32
    %c0_i32_1 = arith.constant 0 : i32
    return %c0_i32, %c0_i32_0 : i32, i32
  }
  func.func @transform_7(%arg0: i32) -> i32 {
    %c0_i32 = arith.constant 0 : i32
    %c0_i32_0 = arith.constant 0 : i32
    return %c0_i32 : i32
  }
  func.func @transform_8(%arg0: i32) -> i32 {
    %c0_i32 = arith.constant 0 : i32
    %c0_i32_0 = arith.constant 0 : i32
    return %c0_i32 : i32
  }
  func.func @transform_9(%arg0: i32) -> (i32, i32, i32, i32) {
    %c0_i32 = arith.constant 0 : i32
    %c0_i32_0 = arith.constant 0 : i32
    %c0_i32_1 = arith.constant 0 : i32
    %c0_i32_2 = arith.constant 0 : i32
    return %arg0, %c0_i32, %c0_i32_0, %c0_i32_1 : i32, i32, i32, i32
  }
  func.func @transform_10(%arg0: i32) -> (i32, i32, i32, i32) {
    %c0_i32 = arith.constant 0 : i32
    %c0_i32_0 = arith.constant 0 : i32
    %c0_i32_1 = arith.constant 0 : i32
    %c0_i32_2 = arith.constant 0 : i32
    return %arg0, %c0_i32, %c0_i32_0, %c0_i32_1 : i32, i32, i32, i32
  }
}

</mosaic_0001>

<bundles_post_ra>
// kernel: tpu_custom_call.1
= control target key start
LH: loop header
LB: loop body
LE: loop exit
PB: predicated region body
PF: predicated region fallthrough
CT: control target
= control target key end

     0   :  { %s4097_s0 = inlined_call_operand.hbm [shape: f32[2,2,8,32], index: 0, kind: input, shape index: {}]   ;;  %s4098_s1 = inlined_call_operand.hbm [shape: f32[2,2,8,32], index: 1, kind: input, shape index: {}]   ;;  %s4099_s2 = inlined_call_operand.hbm [shape: f32[2,2,8,32], index: 2, kind: input, shape index: {}]   ;;  %s4100_s3 = inlined_call_operand.hbm [shape: f32[2,8,8], index: 3, kind: input, shape index: {}]   ;;  %s4101_s4 = inlined_call_operand.hbm [shape: f32[32,32], index: 4, kind: input, shape index: {}]   ;;  %s4102_s5 = inlined_call_operand.hbm [shape: f32[32,32], index: 5, kind: input, shape index: {}]   ;;  %s4103_s6 = inlined_call_operand.vmem [shape: f32[1,32], index: 6, kind: input, shape index: {}]   ;;  %s4104_s7 = inlined_call_operand.vmem [shape: f32[32], index: 7, kind: input, shape index: {}]   ;;  %s4105_s8 = inlined_call_operand.<no memory space> [shape: f32[1], index: 8, kind: input, shape index: {}]   ;;  %s4106_s9 = inlined_call_operand.hbm [shape: f32[2,2,8,32], index: 9, kind: output, shape index: {0}]   ;;  %s4107_s10 = inlined_call_operand.hbm [shape: f32[2,2,8,8], index: 10, kind: output, shape index: {1}]  }
   0x1   :  { %4165 = sst [smem:[#allocation40_spill]] %s4097_s0 }
   0x2   :  { %4166 = sst [smem:[#allocation41_spill]] %s4098_s1 }
   0x3   :  { %4167 = sst [smem:[#allocation42_spill]] %s4099_s2 }
   0x4   :  { %4168 = sst [smem:[#allocation43_spill]] %s4100_s3 }
   0x5   :  { %4169 = sst [smem:[#allocation44_spill]] %s4101_s4 }
   0x6   :  { %4170 = sst [smem:[#allocation45_spill]] %s4102_s5 }
   0x7   :  { %4171 = sst [smem:[#allocation46_spill]] %s4103_s6 }
   0x8   :  { %4172 = sst [smem:[#allocation47_spill]] %s4104_s7 }
   0x9   :  { %4173 = sst [smem:[#allocation48_spill]] %s4106_s9 }
   0xa   :  { %4174 = sst [smem:[#allocation49_spill]] %s4107_s10 }
   0xb   :  { %16 = sst [smem:[#allocation2]] %s4105_s8 }
   0xc   :  { %17 = vsyncpa [#allocation4], 0 }
   0xd   :  { %19 = vsyncpa [#allocation4 + $0x1], 0 }
   0xe   :  { %20 = vsyncpa [#allocation8], 0 }
   0xf   :  { %22 = vsyncpa [#allocation8 + $0x1], 0 }
  0x10   :  { %23 = vsyncpa [#allocation11], 0 }
  0x11   :  { %25 = vsyncpa [#allocation11 + $0x1], 0 }
  0x12   :  { %26 = vsyncpa [#allocation14], 0 }
  0x13   :  { %27 = vsyncpa [#allocation6], 0 }
  0x14   :  { %28 = vsyncpa [#allocation5], 0 }
  0x15   :  { %30 = vsyncpa [#allocation5 + $0x1], 0 }
  0x16   :  { %31 = vsyncpa [#allocation18], 0 }
  0x17   :  { %33 = vsyncpa [#allocation18 + $0x1], 0  ;;  %s2943_s15 = smov 0   ;;  %s2945_s16 = smov 0  }
  0x18   :  { %s2947_s17 = smov 0   ;;  %s2949_s18 = smov 0  }
  0x19 LB: > { %4175 = sst [smem:[#allocation27_spill]] %s2824_s15  ;;  %s2964_s8 = sadd.s32 4294967295, %s2836_s18   ;;  %s2836_s18 = sphi %s2949_s18, %s4285_s18   ;;  %s2832_s17 = sphi %s2947_s17, %s4288_s17   ;;  %s2828_s16 = sphi %s2945_s16, %s4287_s16   ;;  %s2824_s15 = sphi %s2943_s15, %s4286_s15  }
  0x1a   : > { %4176 = sst [smem:[#allocation28_spill]] %s2828_s16  ;;  %s2177_s19 = sadd.s32 4294967294, %s2836_s18  }
  0x1b   : > { %4177 = sst [smem:[#allocation29_spill]] %s2832_s17  ;;  %s2968_s20 = sadd.s32 1, %s2836_s18  }
  0x1c   : > { %4178 = sst [smem:[#allocation30_spill]] %s2836_s18  ;;  %s46_s21 = sadd.s32 1, %s2832_s17 }
  0x1d   : > { %4179 = sst [smem:[#allocation31_spill]] %s2964_s8  ;;  %s43_s22 = ssub.s32 %s2836_s18, %s2968_s20 }
  0x1e   : > { %4180 = sst [smem:[#allocation32_spill]] %s2968_s20  ;;  %p53_p0 = scmp.ne.s32.totalorder %s2832_s17, %s2828_s16 }
  0x1f   : > { %p44_p1 = scmp.eq.s32.totalorder %s43_s22, 0  ;;  %p54_p2 = scmp.eq.s32.totalorder %s2836_s18, 0 }
  0x20   : > { %p59_p3 = scmp.ne.s32.totalorder %s2828_s16, %s2824_s15  ;;  %p4111_p4 = scmp.eq.s32.totalorder %s2964_s8, 0 }
  0x21   : > { %s2980_s23 = scalar_select %p44_p1, %s2832_s17, %s46_s21  }
  0x22   : > { %p2982_p5 = por %p54_p2, %p53_p0  ;;  %p2988_p6 = por %p4111_p4, %p59_p3 }
  0x23   : > { %4181 = sst [smem:[#allocation33_spill]] %s2980_s23  ;;  %p266_p7 = scmp.eq.s32.totalorder %s2964_s8, 1 }
  0x24   : > { %s4182_s24 = scalar_select %p2982_p5, 1, 0 }
  0x25   : > { %s4183_s25 = scalar_select %p2988_p6, 1, 0 }
  0x26   : > { %p272_p8 = scmp.eq.s32.totalorder %s2177_s19, 1  ;;  %p2178_p9 = scmp.ge.s32.totalorder %s2836_s18, 1 }
  0x27   : > { %p305_p10 = scmp.lt.s32.totalorder %s2836_s18, 3  ;;  %p2995_p11 = por %p266_p7, %p53_p0 }
  0x28   : > { %p2999_p12 = por %p272_p8, %p59_p3  ;;  %s2838_s29 = smov [#allocation12]  }
  0x29   : > { %s4184_s26 = scalar_select %p2995_p11, 1, 0 }
  0x2a   : > { %s4186_s27 = scalar_select %p2999_p12, 1, 0 }
  0x2b   : > { %4185 = sst [smem:[#allocation34_spill]] %s4184_s26  ;;  %p3003_p13 = pnand %p2178_p9, %p305_p10 }
  0x2c   : > { %4187 = sst [smem:[#allocation35_spill]] %s4186_s27  ;;  %s317_s30 = sshll.u32 %s2838_s29, 4  ;;  %s318_s30 = int_to_ptr.vmem [resolvable:$true] %s317_s30 }
  0x2d   : > { %s4188_s28 = scalar_select %p3003_p13, 1, 0 }
  0x2e   : > { %p2345_p1 = pneg %p3003_p13  ;;  %s3018_s12 = sand.u32 1, %s2832_s17  }
  0x2f   : > { %s3021_s13 = sshll.u32 %s3018_s12, 4  ;;  %s4190_s4 = sld [smem:[#allocation44_spill]] }
  0x30   : > { %p3011_p2 = pnand %p2345_p1, %p4111_p4 }
  0x32   : > { %s4189_s11 = scalar_select %p3011_p2, 1, 0 }
  0x33   : > { %p3031_p8 = pneg %p3011_p2 }
  0x35   : > { %s2527_s21 = scalar_lea.hbm %s4190_s4, 512 }
  0x36   : > { %p2528_p7 = scmp.ne.s32.totalorder %s4190_s4, %s2527_s21  ;;  %p2534_p1 = scmp.lt.u32.totalorder %s2527_s21, %s4190_s4 }
  0x37   : > { %s4191_s23 = scalar_select %p3031_p8, 1, 0 }
  0x38   : > { %p2530_p9 = pnand %p3031_p8, %p2528_p7 }
  0x3a   : > { %p2531_p10 = pneg %p2530_p9 }
  0x3c   : > { %p2536_p0 = pnand %p2534_p1, %p2531_p10 }
  0x3e   : > { %2539 = shalt.err (!%p2536_p0)
}
  0x3f   : > { %s2540_s14 = scalar_lea.vmem %s318_s30, 512  ;;  %p2548_p11 = scmp.lt.s32.totalorder %s318_s30, %s318_s30 }
  0x40   : > { %p2541_p4 = scmp.ne.s32.totalorder %s318_s30, %s2540_s14  ;;  %p2549_p6 = scmp.lt.s32.totalorder %s2540_s14, %s2540_s14 }
  0x42   : > { %p2543_p3 = pnand %p2541_p4, %p3031_p8  ;;  %p2550_p13 = por %p2549_p6, %p2548_p11 }
  0x44   : > { %p2544_p12 = pneg %p2543_p3 }
  0x46   : > { %p2551_p5 = pnand %p2550_p13, %p2544_p12 }
  0x48   : > { %2554 = shalt.err (!%p2551_p5)
}
  0x49   : > { %s4118_s19 = smov 128   ;;  %s4120_s17 = smov 8  }
  0x4a   : > { %2348 = dma.hbm_to_vmem [thread:$0]  (!%p3011_p2), %s4190_s4, 512, %s318_s30, [#allocation11], %s4118_s19, %s4118_s19, %s4120_s17  }
  0x4b   : > { %s3051_s22 = sshll.u32 %s2836_s18, 8  ;;  %p4192_p4 = scmp.ne.s32.totalorder %s4182_s24, 0 }
  0x4c   : > { %p4193_p5 = scmp.lt.s32.totalorder %s2836_s18, 2  ;;  %s4122_s14 = sand.u32 1, %s2836_s18  }
  0x4d   : > { %s4195_s1 = sld [smem:[#allocation41_spill]]  ;;  %s386_s30 = scalar_lea.vmem [#allocation7], %s3021_s13 }
  0x4e   : > { %p3057_p6 = pnand %p4193_p5, %p4192_p4  ;;  %s393_s20 = sshll.u32 %s386_s30, 4  ;;  %s3069_s20 = int_to_ptr.vmem [resolvable:$true] %s393_s20 }
  0x4f   : > { %s3073_s24 = scalar_lea.sflag [#allocation8], %s4122_s14 }
  0x50   : > { %s4194_s29 = scalar_select %p3057_p6, 1, 0 }
  0x51   : > { %p3079_p12 = pneg %p3057_p6 }
  0x53   : > { %s3066_s9 = scalar_lea.hbm %s4195_s1, %s3051_s22  ;;  %s2560_s30 = scalar_lea.hbm %s4195_s1, 512 }
  0x54   : > { %s2555_s21 = scalar_lea.hbm %s3066_s9, 256  ;;  %p2561_p3 = scmp.lt.u32.totalorder %s3066_s9, %s4195_s1 }
  0x55   : > { %p2556_p11 = scmp.ne.s32.totalorder %s3066_s9, %s2555_s21  ;;  %p2562_p7 = scmp.lt.u32.totalorder %s2560_s30, %s2555_s21 }
  0x56   : > { %p2564_p10 = scmp.lt.u32.totalorder %s2555_s21, %s3066_s9 }
  0x57   : > { %p2558_p13 = pnand %p3079_p12, %p2556_p11  ;;  %p2563_p9 = por %p2562_p7, %p2561_p3 }
  0x59   : > { %p2559_p0 = pneg %p2558_p13  ;;  %p2565_p1 = por %p2564_p10, %p2563_p9 }
  0x5b   : > { %p2566_p4 = pnand %p2565_p1, %p2559_p0 }
  0x5d   : > { %2569 = shalt.err (!%p2566_p4)
}
  0x5e   : > { %s2570_s14 = scalar_lea.vmem %s3069_s20, 256  ;;  %s2841_s15 = smov [#allocation7]  }
  0x5f   : > { %p2571_p5 = scmp.ne.s32.totalorder %s3069_s20, %s2570_s14  ;;  %s2575_s27 = sshll.u32 %s2841_s15, 4  ;;  %s2576_s27 = int_to_ptr.vmem [resolvable:$false] %s2575_s27 }
  0x60   : > { %s2577_s4 = scalar_lea.vmem %s2576_s27, 512  ;;  %p2578_p2 = scmp.lt.s32.totalorder %s3069_s20, %s2576_s27 }
  0x61   : > { %p2573_p11 = pnand %p2571_p5, %p3079_p12  ;;  %p2579_p8 = scmp.lt.s32.totalorder %s2577_s4, %s2570_s14 }
  0x63   : > { %p2574_p13 = pneg %p2573_p11  ;;  %p2580_p3 = por %p2579_p8, %p2578_p2 }
  0x65   : > { %p2581_p7 = pnand %p2580_p3, %p2574_p13 }
  0x67   : > { %2584 = shalt.err (!%p2581_p7)
}
  0x68   : > { %s4197_s17 = smov 8   ;;  %s4198_s21 = smov 128  }
  0x69   : > { %2361 = dma.hbm_to_vmem [thread:$0]  (!%p3057_p6), %s3066_s9, 256, %s3069_s20, %s3073_s24, %s4198_s21, %s4198_s21, %s4197_s17  }
  0x6a   : > { %s2842_s30 = smov [#allocation13]   ;;  %s4199_s7 = sld [smem:[#allocation47_spill]] }
  0x6b   : > { %s330_s1 = sshll.u32 %s2842_s30, 4  ;;  %s4200_s5 = sld [smem:[#allocation45_spill]]  ;;  %s331_s1 = int_to_ptr.vmem [resolvable:$true] %s330_s1 }
  0x6c   : > { %p4201_p8 = scmp.ne.s32.totalorder %s4191_s23, 0 }
  0x70   : > { %s347_s27 = sshll.u32 %s4199_s7, 4  ;;  %s348_s27 = int_to_ptr.vmem [resolvable:$true] %s347_s27 }
  0x71   : > { %s2585_s26 = scalar_lea.hbm %s4200_s5, 512 }
  0x72   : > { %p2586_p2 = scmp.ne.s32.totalorder %s4200_s5, %s2585_s26  ;;  %p2592_p10 = scmp.lt.u32.totalorder %s2585_s26, %s4200_s5 }
  0x74   : > { %p2588_p0 = pnand %p2586_p2, %p4201_p8 }
  0x76   : > { %p2589_p9 = pneg %p2588_p0 }
  0x78   : > { %p2594_p1 = pnand %p2592_p10, %p2589_p9 }
  0x7a   : > { %2597 = shalt.err (!%p2594_p1)
}
  0x7b   : > { %s2598_s10 = scalar_lea.vmem %s331_s1, 512  ;;  %p2606_p13 = scmp.lt.s32.totalorder %s331_s1, %s331_s1 }
  0x7c   : > { %p2599_p4 = scmp.ne.s32.totalorder %s331_s1, %s2598_s10  ;;  %p2607_p3 = scmp.lt.s32.totalorder %s2598_s10, %s2598_s10 }
  0x7e   : > { %p2601_p5 = pnand %p2599_p4, %p4201_p8  ;;  %p2608_p7 = por %p2607_p3, %p2606_p13 }
  0x80   : > { %p2602_p11 = pneg %p2601_p5 }
  0x82   : > { %p2609_p6 = pnand %p2608_p7, %p2602_p11 }
  0x84   : > { %2612 = shalt.err (!%p2609_p6)
}
  0x85   : > { %p4202_p2 = scmp.ne.s32.totalorder %s4189_s11, 0  ;;  %s2613_s26 = scalar_lea.vmem %s348_s27, 16 }
  0x86   : > { %p2614_p0 = scmp.ne.s32.totalorder %s348_s27, %s2613_s26  ;;  %p2621_p1 = scmp.lt.s32.totalorder %s348_s27, %s348_s27 }
  0x87   : > { %2351 = dma.hbm_to_vmem [thread:$0]  (!%p4202_p2), %s4200_s5, 512, %s331_s1, [#allocation14], %s4198_s21, %s4198_s21, %s4197_s17  }
  0x88   : > { %p2616_p9 = pnand %p2614_p0, %p4201_p8  ;;  %p2622_p4 = scmp.lt.s32.totalorder %s2613_s26, %s2613_s26 }
  0x8a   : > { %p2617_p10 = pneg %p2616_p9  ;;  %p2623_p5 = por %p2622_p4, %p2621_p1 }
  0x8c   : > { %p2624_p11 = pnand %p2623_p5, %p2617_p10 }
  0x8e   : > { %2627 = shalt.err (!%p2624_p11)
}
  0x8f   : > { %s2843_s30 = smov [#allocation15]   ;;  %s4203_s0 = sld [smem:[#allocation40_spill]] }
  0x90   : > { %2354 = dma.vmem_to_smem (!%p4202_p2), %s348_s27, 16, %s2843_s30, [#allocation6]  }
  0x91   : > { %s365_s14 = scalar_lea.vmem [#allocation3], %s3021_s13  ;;  %s4204_s2 = sld [smem:[#allocation42_spill]] }
  0x92   : > { %s372_s4 = sshll.u32 %s365_s14, 4  ;;  %s362_s10 = scalar_lea.sflag [#allocation4], %s3018_s12  ;;  %s3141_s4 = int_to_ptr.vmem [resolvable:$true] %s372_s4 }
  0x95   : > { %s3138_s23 = scalar_lea.hbm %s4203_s0, %s3051_s22  ;;  %s2633_s26 = scalar_lea.hbm %s4203_s0, 512 }
  0x96   : > { %s2628_s27 = scalar_lea.hbm %s3138_s23, 256  ;;  %p2634_p3 = scmp.lt.u32.totalorder %s3138_s23, %s4203_s0 }
  0x97   : > { %s3147_s20 = scalar_lea.hbm %s4204_s2, %s3051_s22  ;;  %p2629_p6 = scmp.ne.s32.totalorder %s3138_s23, %s2628_s27 }
  0x98   : > { %p2635_p7 = scmp.lt.u32.totalorder %s2633_s26, %s2628_s27  ;;  %p2637_p0 = scmp.lt.u32.totalorder %s2628_s27, %s3138_s23 }
  0x99   : > { %p2631_p8 = pnand %p2629_p6, %p3079_p12 }
  0x9a   : > { %p2636_p2 = por %p2635_p7, %p2634_p3 }
  0x9b   : > { %p2632_p13 = pneg %p2631_p8 }
  0x9c   : > { %p2638_p9 = por %p2637_p0, %p2636_p2 }
  0x9e   : > { %p2639_p10 = pnand %p2638_p9, %p2632_p13 }
  0xa0   : > { %2642 = shalt.err (!%p2639_p10)
}
  0xa1   : > { %s2643_s22 = scalar_lea.vmem %s3141_s4, 256  ;;  %s2844_s15 = smov [#allocation3]  }
  0xa2   : > { %p2644_p1 = scmp.ne.s32.totalorder %s3141_s4, %s2643_s22  ;;  %s2648_s14 = sshll.u32 %s2844_s15, 4  ;;  %s2649_s14 = int_to_ptr.vmem [resolvable:$false] %s2648_s14 }
  0xa3   : > { %s2650_s11 = scalar_lea.vmem %s2649_s14, 512  ;;  %p2651_p11 = scmp.lt.s32.totalorder %s3141_s4, %s2649_s14 }
  0xa4   : > { %p2646_p4 = pnand %p2644_p1, %p3079_p12  ;;  %p2652_p6 = scmp.lt.s32.totalorder %s2650_s11, %s2643_s22 }
  0xa6   : > { %p2647_p5 = pneg %p2646_p4  ;;  %p2653_p8 = por %p2652_p6, %p2651_p11 }
  0xa8   : > { %p2654_p3 = pnand %p2653_p8, %p2647_p5 }
  0xaa   : > { %2657 = shalt.err (!%p2654_p3)
}
  0xab   : > { %p4205_p13 = scmp.ne.s32.totalorder %s4194_s29, 0  ;;  %s407_s9 = scalar_lea.vmem [#allocation9], %s3021_s13 }
  0xac   : > { %s414_s27 = sshll.u32 %s407_s9, 4  ;;  %s2192_s6 = sshll.u32 %s3018_s12, 3  ;;  %s3177_s27 = int_to_ptr.vmem [resolvable:$true] %s414_s27 }
  0xad   : > { %2358 = dma.hbm_to_vmem [thread:$0]  (!%p4205_p13), %s3138_s23, 256, %s3141_s4, %s362_s10, %s4198_s21, %s4198_s21, %s4197_s17  }
  0xae   : > { %s2658_s8 = scalar_lea.hbm %s3147_s20, 256  ;;  %s2663_s1 = scalar_lea.hbm %s4204_s2, 512 }
  0xaf   : > { %p2659_p7 = scmp.ne.s32.totalorder %s3147_s20, %s2658_s8  ;;  %p2664_p9 = scmp.lt.u32.totalorder %s3147_s20, %s4204_s2 }
  0xb0   : > { %p2665_p10 = scmp.lt.u32.totalorder %s2663_s1, %s2658_s8  ;;  %p2667_p4 = scmp.lt.u32.totalorder %s2658_s8, %s3147_s20 }
  0xb1   : > { %p2661_p2 = pnand %p2659_p7, %p3079_p12 }
  0xb2   : > { %p2666_p1 = por %p2665_p10, %p2664_p9 }
  0xb3   : > { %p2662_p0 = pneg %p2661_p2 }
  0xb4   : > { %p2668_p5 = por %p2667_p4, %p2666_p1 }
  0xb6   : > { %p2669_p11 = pnand %p2668_p5, %p2662_p0 }
  0xb8   : > { %2672 = shalt.err (!%p2669_p11)
}
  0xb9   : > { %s2673_s13 = scalar_lea.vmem %s3177_s27, 256  ;;  %s2845_s23 = smov [#allocation9]  }
  0xba   : > { %p2674_p6 = scmp.ne.s32.totalorder %s3177_s27, %s2673_s13  ;;  %s2678_s4 = sshll.u32 %s2845_s23, 4  ;;  %s2679_s4 = int_to_ptr.vmem [resolvable:$false] %s2678_s4 }
  0xbb   : > { %s2680_s10 = scalar_lea.vmem %s2679_s4, 512  ;;  %p2681_p7 = scmp.lt.s32.totalorder %s3177_s27, %s2679_s4 }
  0xbc   : > { %p2676_p8 = pnand %p2674_p6, %p3079_p12  ;;  %p2682_p2 = scmp.lt.s32.totalorder %s2680_s10, %s2673_s13 }
  0xbe   : > { %p2677_p3 = pneg %p2676_p8  ;;  %p2683_p9 = por %p2682_p2, %p2681_p7 }
  0xc0   : > { %p2684_p10 = pnand %p2683_p9, %p2677_p3 }
  0xc2   : > { %2687 = shalt.err (!%p2684_p10)
}
  0xc3   : > { %2364 = dma.hbm_to_vmem [thread:$0]  (!%p4205_p13), %s3147_s20, 256, %s3177_s27, %s3073_s24, %s4198_s21, %s4198_s21, %s4197_s17  }
  0xc4   : > { %s2193_s14 = sshll.u32 %s2836_s18, 7  ;;  %s4206_s3 = sld [smem:[#allocation43_spill]] }
  0xc5   : > { %s428_s26 = scalar_lea.vmem [#allocation10], %s2192_s6  ;;  %s4207_s1 = sand.u32 1, %s2836_s18  }
  0xc6   : > { %s435_s30 = sshll.u32 %s428_s26, 4  ;;  %s425_s22 = scalar_lea.sflag [#allocation11], %s4207_s1  ;;  %s436_s30 = int_to_ptr.vmem [resolvable:$true] %s435_s30 }
  0xca   : > { %s3209_s8 = scalar_lea.hbm %s4206_s3, %s2193_s14  ;;  %s2693_s21 = scalar_lea.hbm %s4206_s3, 256 }
  0xcb   : > { %s2688_s15 = scalar_lea.hbm %s3209_s8, 128  ;;  %p2694_p5 = scmp.lt.u32.totalorder %s3209_s8, %s4206_s3 }
  0xcc   : > { %p2689_p0 = scmp.ne.s32.totalorder %s3209_s8, %s2688_s15  ;;  %p2695_p11 = scmp.lt.u32.totalorder %s2693_s21, %s2688_s15 }
  0xcd   : > { %p2697_p8 = scmp.lt.u32.totalorder %s2688_s15, %s3209_s8 }
  0xce   : > { %p2691_p1 = pnand %p2689_p0, %p3079_p12  ;;  %p2696_p6 = por %p2695_p11, %p2694_p5 }
  0xd0   : > { %p2692_p4 = pneg %p2691_p1  ;;  %p2698_p3 = por %p2697_p8, %p2696_p6 }
  0xd2   : > { %p2699_p7 = pnand %p2698_p3, %p2692_p4 }
  0xd4   : > { %2702 = shalt.err (!%p2699_p7)
}
  0xd5   : > { %s2703_s27 = scalar_lea.vmem %s436_s30, 128  ;;  %s2846_s6 = smov [#allocation10]  }
  0xd6   : > { %p2704_p2 = scmp.ne.s32.totalorder %s436_s30, %s2703_s27  ;;  %s2708_s13 = sshll.u32 %s2846_s6, 4  ;;  %s2709_s13 = int_to_ptr.vmem [resolvable:$false] %s2708_s13 }
  0xd7   : > { %s2710_s23 = scalar_lea.vmem %s2709_s13, 256  ;;  %p2711_p0 = scmp.lt.s32.totalorder %s436_s30, %s2709_s13 }
  0xd8   : > { %p2706_p9 = pnand %p2704_p2, %p3079_p12  ;;  %p2712_p1 = scmp.lt.s32.totalorder %s2710_s23, %s2703_s27 }
  0xda   : > { %p2707_p10 = pneg %p2706_p9  ;;  %p2713_p13 = por %p2712_p1, %p2711_p0 }
  0xdc   : > { %p2714_p5 = pnand %p2713_p13, %p2707_p10 }
  0xde   : > { %2717 = shalt.err (!%p2714_p5)
}
  0xdf   : > { %p4208_p11 = scmp.ne.s32.totalorder %s4194_s29, 0  ;;  %p4209_p4 = scmp.ne.s32.totalorder %s4188_s28, 0 }
  0xe1   : > { %2367 = dma.hbm_to_vmem [thread:$0]  (!%p4208_p11), %s3209_s8, 128, %s436_s30, %s425_s22  }
  0xe2   : > { %444 = sbr.rel (%p4209_p4) target bundleno = 1463 (0x5b7), region = 56 }
  0xe9   : > { %s3235_s19 = sand.u32 1, %s2828_s16   ;;  %p4212_p12 = scmp.ne.s32.totalorder %s4183_s25, 0 }
  0xea   : > { %4210 = sst [smem:[#allocation36_spill]] %s3235_s19  ;;  %s3238_s4 = sshll.u32 %s3235_s19, 4 }
  0xeb   : > { %4211 = sst [smem:[#allocation37_spill]] %s3238_s4  ;;  %s447_s10 = scalar_lea.sflag [#allocation4], %s3235_s19 }
  0xec   : > { %s450_s14 = scalar_lea.vmem [#allocation3], %s3238_s4 }
  0xed   : > { %2791 = dma.done.wait (%p4212_p12), %s447_s10, 256  }
  0xee   : > { %2793 = vsyncadd (%p4212_p12), %s447_s10, 4294967040  ;;  %s4213_s29 = sld [smem:[#allocation31_spill]]  ;;  %s459_s9 = scalar_lea.vmem [#allocation7], %s3238_s4 }
  0xf4   : > { %s455_s28 = sand.u32 1, %s4213_s29  }
  0xf5   : > { %s456_s11 = scalar_lea.sflag [#allocation8], %s455_s28 }
  0xf6   : > { %2795 = dma.done.wait (%p4212_p12), %s456_s11, 512  }
  0xf7   : > { %2797 = vsyncadd (%p4212_p12), %s456_s11, 4294966784  ;;  %s2198_s8 = sshll.u32 %s3235_s19, 3  ;;  %s474_s30 = scalar_lea.sflag [#allocation11], %s455_s28 }
  0xf8   : > { %s3254_s1 = scalar_lea.vmem [#allocation10], %s2198_s8 }
  0xf9   : > { %2799 = dma.done.wait (%p4212_p12), %s474_s30, 128  }
  0xfa   : > { %2801 = vsyncadd (%p4212_p12), %s474_s30, 4294967168  ;;  %p4214_p13 = scmp.eq.s32.totalorder %s4213_s29, 0 }
  0xfc   : > { %2803 = dma.done.wait (%p4214_p13), [#allocation11], 512   ;;  %p4215_p6 = pmov %p4214_p13 }
  0xfe   : > { %2805 = vsyncadd (%p4215_p6), [#allocation11], 4294966784  ;;  %p4216_p8 = pmov %p4215_p6 }
  0xff   : > { %p4217_p3 = pmov %p4215_p6 }
 0x100   : > { %2807 = dma.done.wait (%p4216_p8), [#allocation14], 512  }
 0x101   : > { %2809 = vsyncadd (%p4217_p3), [#allocation14], 4294966784  ;;  %p4218_p7 = pmov %p4217_p3 }
 0x102   : > { %p4219_p2 = pmov %p4217_p3 }
 0x103   : > { %2811 = dma.done.wait (%p4218_p7), [#allocation6], 16  }
 0x104   : > { %2813 = vsyncadd (%p4219_p2), [#allocation6], 4294967280 }
 0x105   : > { %494 = sfence }
 0x106   : > { %v554_v0 = vld [vmem:[#allocation12] sm:$0xff]  ;;  %v555_v1 = vld [vmem:[#allocation12 + $0x8] sm:$0xff]  ;;  %v556_v2 = vld [vmem:[#allocation12 + $0x10] sm:$0xff]  ;;  %vm558_vm0 = vcmask 261120   ;;  %v2847_v6 = vmov 2   ;;  %v2848_v7 = vmov 0  }
 0x107   : > { %v2305_v3 = vpack.c.bf16 %v555_v1, %v554_v0  ;;  %v557_v4 = vld [vmem:[#allocation12 + $0x18] sm:$0xff]  ;;  %v550_v5 = vld [vmem:[%s450_s14] sm:$0xff]  ;;  %2458 = vset.pattern.permute.xlu0 %v2847_v6  ;;  %2456 = vset.pattern.permute.xlu1 %v2848_v7  ;;  %v641_v10 = vld [vmem:[#allocation13 + $0x8] sm:$0xff]  ;;  %v2849_v21 = vmov 5   ;;  %v2850_v22 = vmov 1   ;;  %v2851_v23 = vmov 8  }
 0x108   : > { %v2309_v8 = vpack.c.bf16 %v557_v4, %v556_v2  ;;  %2281 = vmatprep.mubr.msk.f32.mxu0 %vm558_vm0, %v550_v5  ;;  %v640_v9 = vld [vmem:[#allocation13] sm:$0xff]  ;;  %v642_v11 = vld [vmem:[#allocation13 + $0x10] sm:$0xff]  ;;  %v643_v13 = vld [vmem:[#allocation13 + $0x18] sm:$0xff]  ;;  %v2852_v24 = vmov 3   ;;  %v2853_v25 = vmov 11   ;;  %v2854_v26 = vmov 4  }
 0x109   : > { %2306 = vmatprep.subr.bf16.mxu0 %v2305_v3  ;;  %v2313_v12 = vpack.c.bf16 %v641_v10, %v640_v9  ;;  %v552_v14 = vld [vmem:[%s459_s9] sm:$0xff]  ;;  %v2317_v15 = vpack.c.bf16 %v643_v13, %v642_v11  ;;  %v551_v16 = vld [vmem:[%s450_s14 + $0x8] sm:$0xff]  ;;  %v2855_v27 = vmov 14   ;;  %v2856_v28 = vmov 6   ;;  %s4220_s15 = sld [smem:[#allocation46_spill]]  ;;  %s3484_s24 = sld [smem:[#allocation15]] }
 0x10a   : > { %2308 = vmatpush3.bf16.msra.mxu0 %v2305_v3  ;;  %2292 = vmatprep.mubr.msk.f32.mxu1 %vm558_vm0, %v552_v14  ;;  %v553_v17 = vld [vmem:[%s459_s9 + $0x8] sm:$0xff]  ;;  %v2857_v29 = vmov 18   ;;  %v2858_v30 = vmov 7   ;;  %v2859_v31 = vmov 21   ;;  %v2860_v32 = vmov 9   ;;  %s3486_s17 = sld [smem:[#allocation15 + $0x1]] }
 0x10b   : > { %2310 = vmatprep.subr.bf16.mxu0 %v2309_v8  ;;  %2314 = vmatprep.subr.bf16.mxu1 %v2313_v12  ;;  %v2861_v33 = vmov 24   ;;  %v2862_v34 = vmov 10   ;;  %v2863_v35 = vmov 12   ;;  %v2864_v36 = vmov 13   ;;  %s3497_s21 = sld [smem:[#allocation15 + $0x2]]  ;;  %s3507_s20 = sld [smem:[#allocation15 + $0x3]] }
 0x10c   : > { %2316 = vmatpush3.bf16.msra.mxu1 %v2313_v12  ;;  %v2865_v37 = vmov 15   ;;  %v2866_v38 = vmov 16   ;;  %v2867_v39 = vmov 17   ;;  %v2868_v40 = vmov 19   ;;  %s3522_s12 = sld [smem:[#allocation15 + $0x4]]  ;;  %s3532_s27 = sld [smem:[#allocation15 + $0x5]] }
 0x10d   : > { %2318 = vmatprep.subr.bf16.mxu1 %v2317_v15  ;;  %v2869_v41 = vmov 20   ;;  %v2870_v42 = vmov 22   ;;  %v2871_v43 = vmov 23   ;;  %v2872_v44 = vmov 25   ;;  %s3545_s6 = sld [smem:[#allocation15 + $0x6]]  ;;  %s3557_s13 = sld [smem:[#allocation15 + $0x7]] }
 0x10e   : > { %2312 = vmatpush3.bf16.msra.mxu0 %v2309_v8  ;;  %v2873_v46 = vmov 26   ;;  %v2874_v59 = vmov 27   ;;  %v2875_v1 = vmov 29   ;;  %v2876_v3 = vmov 28   ;;  %s3568_s23 = sld [smem:[#allocation15 + $0x8]]  ;;  %s3578_s10 = sld [smem:[#allocation15 + $0x9]] }
 0x10f   : > { %v3355_v47 = vld [vmem:[%s4220_s15] ss:$0 sm:$0xff]  ;;  %v4136_v4 = vmov 30   ;;  %s3587_s14 = sld [smem:[#allocation15 + $0xa]]  ;;  %s3593_s28 = sld [smem:[#allocation15 + $0xb]] }
 0x110   : > { %2320 = vmatpush3.bf16.msra.mxu1 %v2317_v15  ;;  %s3606_s11 = sld [smem:[#allocation15 + $0xc]]  ;;  %s3616_s9 = sld [smem:[#allocation15 + $0xd]] }
 0x111   : > { %2282 = vmatmul.mubr.msk.f32.vlgmr.msra.gmra.mrb[0].mxu0 %vm558_vm0, %v551_v16  ;;  %s3627_s8 = sld [smem:[#allocation15 + $0xe]]  ;;  %s3633_s30 = sld [smem:[#allocation15 + $0xf]] }
 0x112   : > { %s3643_s25 = sld [smem:[#allocation15 + $0x10]]  ;;  %s3651_s22 = sld [smem:[#allocation15 + $0x11]] }
 0x113   : > { %2293 = vmatmul.mubr.msk.f32.vlgmr.msra.gmra.mrb[0].mxu1 %vm558_vm0, %v553_v17  ;;  %s3653_s15 = sld [smem:[#allocation15 + $0x12]]  ;;  %s3655_s26 = sld [smem:[#allocation15 + $0x13]] }
 0x114   : > { %s3665_s0 = sld [smem:[#allocation15 + $0x14]]  ;;  %s3667_s2 = sld [smem:[#allocation15 + $0x15]] }
 0x115   : > { %s3669_s3 = sld [smem:[#allocation15 + $0x16]]  ;;  %s3671_s5 = sld [smem:[#allocation15 + $0x17]] }
 0x116   : > { %s3699_s7 = sld [smem:[#allocation15 + $0x18]]  ;;  %s3701_s16 = sld [smem:[#allocation15 + $0x19]] }
 0x117   : > { %s3709_s18 = sld [smem:[#allocation15 + $0x1a]]  ;;  %s3712_s19 = sld [smem:[#allocation15 + $0x1b]] }
 0x118   : > { %s3720_s29 = sld [smem:[#allocation15 + $0x1c]]  ;;  %s3722_s4 = sld [smem:[#allocation15 + $0x1d]] }
 0x1e4   : > { %v3286_v18 = vpop.f32.mrb[0].mxu0 }
 0x1e5   : > { %1431 = vperm.xlu0 %2458, %v3286_v18   ;;  %1403 = vperm.xlu1 %2456, %v3286_v18   ;;  %v3290_v19 = vpop.f32.mrb[1].mxu0 }
 0x1e6   : > { %v3292_v20 = vpop.f32.mrb[0].mxu1 }
 0x1e7   : > { %v3338_v45 = vpop.f32.mrb[1].mxu1  ;;  %v729_v48 = vadd.f32 %v3292_v20, %v3355_v47 }
 0x1e8   : > { %v724_v20 = vadd.f32 %v3355_v47, %v3338_v45 }
 0x1e9   : > { %2461 = vset.pattern.permute.xlu0 %v2849_v21  ;;  %2457 = vset.pattern.permute.xlu1 %v2850_v22 }
 0x1ea   : > { %1473 = vperm.xlu0 %2461, %v3286_v18   ;;  %1417 = vperm.xlu1 %2457, %v3286_v18  }
 0x1ee   : > { %2464 = vset.pattern.permute.xlu0 %v2851_v23  ;;  %2459 = vset.pattern.permute.xlu1 %v2852_v24 }
 0x1ef   : > { %1515 = vperm.xlu0 %2464, %v3286_v18   ;;  %1445 = vperm.xlu1 %2459, %v3286_v18  }
 0x1f3   : > { %2467 = vset.pattern.permute.xlu0 %v2853_v25  ;;  %2460 = vset.pattern.permute.xlu1 %v2854_v26 }
 0x1f4   : > { %1557 = vperm.xlu0 %2467, %v3286_v18   ;;  %1459 = vperm.xlu1 %2460, %v3286_v18  }
 0x1f8   : > { %2470 = vset.pattern.permute.xlu0 %v2855_v27  ;;  %2462 = vset.pattern.permute.xlu1 %v2856_v28 }
 0x1f9   : > { %1599 = vperm.xlu0 %2470, %v3286_v18   ;;  %1487 = vperm.xlu1 %2462, %v3286_v18  }
 0x1fd   : > { %2474 = vset.pattern.permute.xlu0 %v2857_v29  ;;  %2463 = vset.pattern.permute.xlu1 %v2858_v30 }
 0x1fe   : > { %1655 = vperm.xlu0 %2474, %v3286_v18   ;;  %1501 = vperm.xlu1 %2463, %v3286_v18  }
 0x202   : > { %2477 = vset.pattern.permute.xlu0 %v2859_v31  ;;  %2465 = vset.pattern.permute.xlu1 %v2860_v32 }
 0x203   : > { %1697 = vperm.xlu0 %2477, %v3286_v18   ;;  %1529 = vperm.xlu1 %2465, %v3286_v18  }
 0x207   : > { %2480 = vset.pattern.permute.xlu0 %v2861_v33  ;;  %2466 = vset.pattern.permute.xlu1 %v2862_v34 }
 0x208   : > { %1739 = vperm.xlu0 %2480, %v3286_v18   ;;  %1543 = vperm.xlu1 %2466, %v3286_v18  }
 0x20c   : > { %2483 = vset.pattern.permute.xlu0 %v2848_v7  ;;  %2468 = vset.pattern.permute.xlu1 %v2863_v35  ;;  %v4135_v7 = vmov 31  }
 0x20d   : > { %1571 = vperm.xlu1 %2468, %v3286_v18   ;;  %799 = vperm.xlu0 %2483, %v3290_v19  }
 0x211   : > { %2469 = vset.pattern.permute.xlu1 %v2864_v36  ;;  %2484 = vset.pattern.permute.xlu0 %v2850_v22 }
 0x212   : > { %1585 = vperm.xlu1 %2469, %v3286_v18   ;;  %814 = vperm.xlu0 %2484, %v3290_v19  }
 0x216   : > { %2471 = vset.pattern.permute.xlu1 %v2865_v37  ;;  %2487 = vset.pattern.permute.xlu0 %v2854_v26 }
 0x217   : > { %1613 = vperm.xlu1 %2471, %v3286_v18   ;;  %859 = vperm.xlu0 %2487, %v3290_v19  }
 0x21b   : > { %2472 = vset.pattern.permute.xlu1 %v2866_v38  ;;  %2490 = vset.pattern.permute.xlu0 %v2858_v30 }
 0x21c   : > { %1627 = vperm.xlu1 %2472, %v3286_v18   ;;  %904 = vperm.xlu0 %2490, %v3290_v19  }
 0x220   : > { %2473 = vset.pattern.permute.xlu1 %v2867_v39  ;;  %2493 = vset.pattern.permute.xlu0 %v2862_v34 }
 0x221   : > { %1641 = vperm.xlu1 %2473, %v3286_v18   ;;  %949 = vperm.xlu0 %2493, %v3290_v19  }
 0x225   : > { %2475 = vset.pattern.permute.xlu1 %v2868_v40  ;;  %2496 = vset.pattern.permute.xlu0 %v2864_v36 }
 0x226   : > { %1669 = vperm.xlu1 %2475, %v3286_v18   ;;  %994 = vperm.xlu0 %2496, %v3290_v19  }
 0x22a   : > { %2476 = vset.pattern.permute.xlu1 %v2869_v41  ;;  %2498 = vset.pattern.permute.xlu0 %v2865_v37 }
 0x22b   : > { %1683 = vperm.xlu1 %2476, %v3286_v18   ;;  %1024 = vperm.xlu0 %2498, %v3290_v19  }
 0x22f   : > { %2478 = vset.pattern.permute.xlu1 %v2870_v42  ;;  %2499 = vset.pattern.permute.xlu0 %v2866_v38 }
 0x230   : > { %1711 = vperm.xlu1 %2478, %v3286_v18   ;;  %1039 = vperm.xlu0 %2499, %v3290_v19  }
 0x234   : > { %2479 = vset.pattern.permute.xlu1 %v2871_v43  ;;  %2503 = vset.pattern.permute.xlu0 %v2869_v41 }
 0x235   : > { %1725 = vperm.xlu1 %2479, %v3286_v18   ;;  %1099 = vperm.xlu0 %2503, %v3290_v19  }
 0x239   : > { %2481 = vset.pattern.permute.xlu1 %v2872_v44  ;;  %2506 = vset.pattern.permute.xlu0 %v2871_v43 }
 0x23a   : > { %1753 = vperm.xlu1 %2481, %v3286_v18   ;;  %1144 = vperm.xlu0 %2506, %v3290_v19  }
 0x23e   : > { %2482 = vset.pattern.permute.xlu1 %v2873_v46  ;;  %2509 = vset.pattern.permute.xlu0 %v2873_v46 }
 0x23f   : > { %1767 = vperm.xlu1 %2482, %v3286_v18   ;;  %1189 = vperm.xlu0 %2509, %v3290_v19  }
 0x243   : > { %2485 = vset.pattern.permute.xlu1 %v2847_v6 }
 0x244   : > { %829 = vperm.xlu1 %2485, %v3290_v19  }
 0x248   : > { %2486 = vset.pattern.permute.xlu1 %v2852_v24 }
 0x249   : > { %844 = vperm.xlu1 %2486, %v3290_v19  }
 0x24d   : > { %2488 = vset.pattern.permute.xlu1 %v2849_v21 }
 0x24e   : > { %874 = vperm.xlu1 %2488, %v3290_v19  }
 0x252   : > { %2489 = vset.pattern.permute.xlu1 %v2856_v28 }
 0x253   : > { %889 = vperm.xlu1 %2489, %v3290_v19  }
 0x257   : > { %2491 = vset.pattern.permute.xlu1 %v2851_v23 }
 0x258   : > { %919 = vperm.xlu1 %2491, %v3290_v19  }
 0x25c   : > { %2492 = vset.pattern.permute.xlu1 %v2860_v32 }
 0x25d   : > { %934 = vperm.xlu1 %2492, %v3290_v19   ;;  %1369 = vxpose.xlu0.b32.start.end [1/1] (short) (narrow) %v729_v48, 32 }
 0x261   : > { %2494 = vset.pattern.permute.xlu1 %v2853_v25 }
 0x262   : > { %964 = vperm.xlu1 %2494, %v3290_v19  }
 0x264   : > { %v3365_v49 = vpop.permute.xlu1 %1403  ;;  %v3376_v52 = vpop.permute.xlu0 %1431 }
 0x266   : > { %2495 = vset.pattern.permute.xlu1 %v2863_v35 }
 0x267   : > { %979 = vperm.xlu1 %2495, %v3290_v19  }
 0x269   : > { %v3370_v50 = vpop.permute.xlu1 %1417  ;;  %v3382_v54 = vpop.permute.xlu0 %1473 }
 0x26b   : > { %2497 = vset.pattern.permute.xlu1 %v2855_v27 }
 0x26c   : > { %1009 = vperm.xlu1 %2497, %v3290_v19  }
 0x26e   : > { %v3374_v51 = vpop.permute.xlu1 %1445  ;;  %v3388_v56 = vpop.permute.xlu0 %1515 }
 0x270   : > { %2500 = vset.pattern.permute.xlu1 %v2867_v39 }
 0x271   : > { %1054 = vperm.xlu1 %2500, %v3290_v19  }
 0x273   : > { %v3380_v53 = vpop.permute.xlu1 %1459  ;;  %v3394_v58 = vpop.permute.xlu0 %1557 }
 0x275   : > { %2501 = vset.pattern.permute.xlu1 %v2857_v29 }
 0x276   : > { %1069 = vperm.xlu1 %2501, %v3290_v19  }
 0x278   : > { %v3385_v55 = vpop.permute.xlu1 %1487  ;;  %v3400_v61 = vpop.permute.xlu0 %1599 }
 0x27a   : > { %2502 = vset.pattern.permute.xlu1 %v2868_v40 }
 0x27b   : > { %1084 = vperm.xlu1 %2502, %v3290_v19  }
 0x27d   : > { %v3391_v57 = vpop.permute.xlu1 %1501  ;;  %v3405_v63 = vpop.permute.xlu0 %1655 }
 0x27f   : > { %2504 = vset.pattern.permute.xlu1 %v2859_v31  ;;  %v802_v31 = vlaneseq }
 0x280   : > { %1114 = vperm.xlu1 %2504, %v3290_v19  }
 0x282   : > { %v3397_v60 = vpop.permute.xlu1 %1529  ;;  %v3412_v2 = vpop.permute.xlu0 %1697 }
 0x284   : > { %2505 = vset.pattern.permute.xlu1 %v2870_v42 }
 0x285   : > { %1129 = vperm.xlu1 %2505, %v3290_v19  }
 0x286   : > { %2511 = vset.pattern.permute.xlu0 %v2874_v59 }
 0x287   : > { %v3403_v62 = vpop.permute.xlu1 %1543  ;;  %v3419_v6 = vpop.permute.xlu0 %1739 }
 0x289   : > { %2507 = vset.pattern.permute.xlu1 %v2861_v33  ;;  %v803_v33 = vshrl.u32 %v802_v31, 7  ;;  %v4138_v31 = vstv %s3486_s17 }
 0x28a   : > { %1159 = vperm.xlu1 %2507, %v3290_v19  }
 0x28b   : > { %v3468_v35 = vsub.s32 0, %v803_v33  ;;  %v3470_v36 = vsub.s32 1, %v803_v33  ;;  %v3480_v41 = vsub.s32 2, %v803_v33  ;;  %v3491_v45 = vsub.s32 3, %v803_v33 }
 0x28c   : > { %v3409_v0 = vpop.permute.xlu1 %1571  ;;  %v3424_v9 = vpop.permute.xlu0 %799 }
 0x28e   : > { %2508 = vset.pattern.permute.xlu1 %v2872_v44 }
 0x28f   : > { %1174 = vperm.xlu1 %2508, %v3290_v19  }
 0x291   : > { %v3416_v5 = vpop.permute.xlu1 %1585  ;;  %v3428_v11 = vpop.permute.xlu0 %814 }
 0x292   : > { %1781 = vperm.xlu0 %2511, %v3286_v18  }
 0x293   : > { %2510 = vset.pattern.permute.xlu1 %v2874_v59 }
 0x294   : > { %1204 = vperm.xlu1 %2510, %v3290_v19  }
 0x296   : > { %2513 = vset.pattern.permute.xlu0 %v2875_v1  ;;  %v3422_v8 = vpop.permute.xlu1 %1613  ;;  %v3432_v13 = vpop.permute.xlu0 %859 }
 0x297   : > { %1234 = vperm.xlu0 %2513, %v3290_v19  }
 0x298   : > { %2512 = vset.pattern.permute.xlu1 %v2876_v3 }
 0x299   : > { %1219 = vperm.xlu1 %2512, %v3290_v19  }
 0x29b   : > { %2516 = vset.pattern.permute.xlu0 %v4136_v4  ;;  %v3426_v10 = vpop.permute.xlu1 %1627  ;;  %v3436_v15 = vpop.permute.xlu0 %904 }
 0x29c   : > { %1823 = vperm.xlu0 %2516, %v3286_v18  }
 0x2a0   : > { %2518 = vset.pattern.permute.xlu0 %v4135_v7  ;;  %v3430_v12 = vpop.permute.xlu1 %1641  ;;  %v3440_v17 = vpop.permute.xlu0 %949  ;;  %v3509_v7 = vsub.s32 5, %v803_v33 }
 0x2a5   : > { %v3434_v14 = vpop.permute.xlu1 %1669  ;;  %v3446_v22 = vpop.permute.xlu0 %994 }
 0x2aa   : > { %v3438_v16 = vpop.permute.xlu1 %1683  ;;  %v3450_v24 = vpop.permute.xlu0 %1024 }
 0x2af   : > { %v3444_v21 = vpop.permute.xlu1 %1711  ;;  %v3454_v26 = vpop.permute.xlu0 %1039 }
 0x2b4   : > { %v3448_v23 = vpop.permute.xlu1 %1725  ;;  %v3458_v28 = vpop.permute.xlu0 %1099 }
 0x2b9   : > { %v3452_v25 = vpop.permute.xlu1 %1753  ;;  %v3462_v30 = vpop.permute.xlu0 %1144 }
 0x2ba   : > { %4221 = vst [vmem:[#allocation38_spill] sm:$0xff] %v3462_v30 }
 0x2be   : > { %v3456_v27 = vpop.permute.xlu1 %1767  ;;  %v3466_v34 = vpop.permute.xlu0 %1189 }
 0x2bf   : > { %4222 = vst [vmem:[#allocation39_spill] sm:$0xff] %v3466_v34 }
 0x2c2   : > { %765 = vxpose.xlu1.b32.start.end [1/1] (short) (narrow) %v724_v20, 32  ;;  %v4137_v20 = vstv %s3484_s24 }
 0x2c3   : > { %v3460_v29 = vpop.permute.xlu1 %829 }
 0x2c8   : > { %v3464_v32 = vpop.permute.xlu1 %844 }
 0x2cd   : > { %v3472_v37 = vpop.permute.xlu1 %874 }
 0x2d2   : > { %v3482_v42 = vpop.permute.xlu1 %889 }
 0x2d7   : > { %v3495_v59 = vpop.permute.xlu1 %919 }
 0x2dc   : > { %v3515_v34 = vpop.permute.xlu1 %934 }
 0x2dd   : > { %v3474_v38 = vpop.trf.xlu0 }
 0x2de   : > { %v1409_v39 = vrot.slane %v3474_v38, %v3468_v35  ;;  %v1423_v40 = vrot.slane %v3474_v38, %v3470_v36  ;;  %v1437_v46 = vrot.slane %v3474_v38, %v3480_v41  ;;  %v1451_v3 = vrot.slane %v3474_v38, %v3491_v45 }
 0x2e0   : > { %v1410_v43 = vadd.f32 %v1409_v39, %v3365_v49  ;;  %v1424_v44 = vadd.f32 %v1423_v40, %v3370_v50  ;;  %v3499_v49 = vsub.s32 4, %v803_v33  ;;  %v1438_v50 = vadd.f32 %v1437_v46, %v3376_v52 }
 0x2e1   : > { %v1452_v4 = vadd.f32 %v1451_v3, %v3374_v51  ;;  %v4223_v46 = vmov 30   ;;  %v3525_v51 = vsub.s32 6, %v803_v33 }
 0x2e2   : > { %v1412_v47 = vmul.f32 0.2, %v1410_v43  ;;  %v1426_v48 = vmul.f32 0.2, %v1424_v44  ;;  %vm1411_vm1 = vcmp.ge.f32.partialorder %v1410_v43, 0.0  ;;  %vm1425_vm2 = vcmp.ge.f32.partialorder %v1424_v44, 0.0 }
 0x2e3   : > { %v1465_v52 = vrot.slane %v3474_v38, %v3499_v49  ;;  %vm1439_vm3 = vcmp.ge.f32.partialorder %v1438_v50, 0.0  ;;  %vm1453_vm4 = vcmp.ge.f32.partialorder %v1452_v4, 0.0 }
 0x2e4   : > { %v1413_v39 = vsel %vm1411_vm1, %v1410_v43, %v1412_v47  ;;  %v1427_v40 = vsel %vm1425_vm2, %v1424_v44, %v1426_v48  ;;  %v4139_v44 = vstv %s3497_s21  ;;  %v1454_v48 = vmul.f32 0.2, %v1452_v4 }
 0x2e5   : > { %v1414_v30 = vmul.f32 %v1413_v39, %v4137_v20  ;;  %v1428_v43 = vmul.f32 %v1427_v40, %v4138_v31  ;;  %v1466_v3 = vadd.f32 %v1465_v52, %v3380_v53  ;;  %v4224_v20 = vmov 31  }
 0x2e6   : > { %v4140_v40 = vstv %s3507_s20  ;;  %v3535_v31 = vsub.s32 7, %v803_v33  ;;  %v1455_v53 = vsel %vm1453_vm4, %v1452_v4, %v1454_v48 }
 0x2e7   : > { %v1429_v39 = vadd.f32 %v1428_v43, %v1414_v30  ;;  %v1468_v52 = vmul.f32 0.2, %v1466_v3  ;;  %v1493_v43 = vrot.slane %v3474_v38, %v3525_v51  ;;  %vm1467_vm5 = vcmp.ge.f32.partialorder %v1466_v3, 0.0 }
 0x2e8   : > { %v1456_v33 = vmul.f32 %v1455_v53, %v4140_v40 }
 0x2e9   : > { %v1494_v4 = vadd.f32 %v1493_v43, %v3385_v55  ;;  %v4142_v43 = vstv %s3545_s6 }
 0x2eb   : > { %v1496_v53 = vmul.f32 0.2, %v1494_v4  ;;  %vm1495_vm7 = vcmp.ge.f32.partialorder %v1494_v4, 0.0 }
 0x2ec   : > { %1795 = vperm.xlu1 %2512, %v3286_v18  }
 0x2ed   : > { %v1497_v40 = vsel %vm1495_vm7, %v1494_v4, %v1496_v53 }
 0x2f0   : > { %2514 = vset.pattern.permute.xlu1 %v2875_v1  ;;  %v1440_v1 = vmul.f32 0.2, %v1438_v50 }
 0x2f1   : > { %1809 = vperm.xlu1 %2514, %v3286_v18  }
 0x2f2   : > { %v1441_v47 = vsel %vm1439_vm3, %v1438_v50, %v1440_v1  ;;  %v3539_v1 = vpop.permute.xlu1 %964 }
 0x2f3   : > { %v1442_v50 = vmul.f32 %v1441_v47, %v4139_v44  ;;  %v1469_v47 = vsel %vm1467_vm5, %v1466_v3, %v1468_v52 }
 0x2f5   : > { %2515 = vset.pattern.permute.xlu1 %v4223_v46  ;;  %v1479_v46 = vrot.slane %v3474_v38, %v3509_v7 }
 0x2f6   : > { %1249 = vperm.xlu1 %2515, %v3290_v19  }
 0x2f7   : > { %v1480_v30 = vadd.f32 %v1479_v46, %v3382_v54  ;;  %v1507_v54 = vrot.slane %v3474_v38, %v3535_v31  ;;  %v3553_v46 = vpop.trf.xlu0 }
 0x2f8   : > { %v1521_v38 = vrot.slane %v3553_v46, %v3468_v35 }
 0x2f9   : > { %v1482_v44 = vmul.f32 0.2, %v1480_v30  ;;  %vm1481_vm6 = vcmp.ge.f32.partialorder %v1480_v30, 0.0  ;;  %v1508_v55 = vadd.f32 %v1507_v54, %v3391_v57  ;;  %v1535_v57 = vrot.slane %v3553_v46, %v3470_v36 }
 0x2fa   : > { %2517 = vset.pattern.permute.xlu1 %v4224_v20  ;;  %v1443_v20 = vadd.f32 %v1442_v50, %v1429_v39  ;;  %v3555_v39 = vpop.permute.xlu1 %979  ;;  %v4141_v54 = vstv %s3557_s13 }
 0x2fb   : > { %1264 = vperm.xlu1 %2517, %v3290_v19   ;;  %v4155_v19 = vstv %s3522_s12  ;;  %v1483_v3 = vsel %vm1481_vm6, %v1480_v30, %v1482_v44  ;;  %v1510_v44 = vmul.f32 0.2, %v1508_v55  ;;  %v1522_v30 = vadd.f32 %v1521_v38, %v3388_v56 }
 0x2fc   : > { %v1457_v48 = vadd.f32 %v1456_v33, %v1443_v20  ;;  %v1470_v50 = vmul.f32 %v1469_v47, %v4155_v19  ;;  %vm1509_vm8 = vcmp.ge.f32.partialorder %v1508_v55, 0.0  ;;  %v1536_v4 = vadd.f32 %v1535_v57, %v3397_v60 }
 0x2fd   : > { %v1549_v56 = vrot.slane %v3553_v46, %v3480_v41  ;;  %vm1523_vm9 = vcmp.ge.f32.partialorder %v1522_v30, 0.0  ;;  %v1563_v60 = vrot.slane %v3553_v46, %v3491_v45 }
 0x2fe   : > { %v1471_v52 = vadd.f32 %v1470_v50, %v1457_v48  ;;  %v3570_v33 = vpop.permute.xlu1 %1009  ;;  %v1498_v48 = vmul.f32 %v1497_v40, %v4142_v43  ;;  %v1511_v50 = vsel %vm1509_vm8, %v1508_v55, %v1510_v44  ;;  %v4143_v40 = vstv %s3568_s23 }
 0x2ff   : > { %1837 = vperm.xlu1 %2517, %v3286_v18   ;;  %v4151_v18 = vstv %s3532_s27  ;;  %v1538_v55 = vmul.f32 0.2, %v1536_v4  ;;  %v1550_v44 = vadd.f32 %v1549_v56, %v3403_v62  ;;  %vm1537_vm10 = vcmp.ge.f32.partialorder %v1536_v4, 0.0 }
 0x300   : > { %v1484_v20 = vmul.f32 %v1483_v3, %v4151_v18  ;;  %v1524_v3 = vmul.f32 0.2, %v1522_v30  ;;  %v1577_v62 = vrot.slane %v3553_v46, %v3499_v49 }
 0x301   : > { %vm1551_vm11 = vcmp.ge.f32.partialorder %v1550_v44, 0.0 }
 0x302   : > { %v1485_v47 = vadd.f32 %v1484_v20, %v1471_v52  ;;  %v3583_v38 = vpop.permute.xlu1 %1054  ;;  %v1512_v52 = vmul.f32 %v1511_v50, %v4141_v54  ;;  %v1525_v20 = vsel %vm1523_vm9, %v1522_v30, %v1524_v3  ;;  %v1539_v54 = vsel %vm1537_vm10, %v1536_v4, %v1538_v55 }
 0x303   : > { %v1552_v30 = vmul.f32 0.2, %v1550_v44  ;;  %v1564_v3 = vadd.f32 %v1563_v60, %v3394_v58  ;;  %v1578_v4 = vadd.f32 %v1577_v62, %v3409_v0  ;;  %v1591_v55 = vrot.slane %v3553_v46, %v3509_v7 }
 0x304   : > { %v1499_v53 = vadd.f32 %v1498_v48, %v1485_v47  ;;  %v4150_v47 = vstv %s3578_s10  ;;  %v1526_v48 = vmul.f32 %v1525_v20, %v4143_v40  ;;  %v4144_v60 = vstv %s3593_s28 }
 0x305   : > { %v1553_v43 = vsel %vm1551_vm11, %v1550_v44, %v1552_v30  ;;  %v1566_v20 = vmul.f32 0.2, %v1564_v3  ;;  %vm1565_vm12 = vcmp.ge.f32.partialorder %v1564_v3, 0.0  ;;  %v1592_v44 = vadd.f32 %v1591_v55, %v3416_v5  ;;  %v3631_v55 = vpop.trf.xlu0 }
 0x306   : > { %v1513_v57 = vadd.f32 %v1512_v52, %v1499_v53  ;;  %v3598_v50 = vpop.permute.xlu1 %1069  ;;  %v4145_v53 = vstv %s3587_s14  ;;  %v1540_v52 = vmul.f32 %v1539_v54, %v4150_v47  ;;  %v1605_v0 = vrot.slane %v3553_v46, %v3525_v51 }
 0x307   : > { %v1567_v54 = vsel %vm1565_vm12, %v1564_v3, %v1566_v20  ;;  %vm1579_vm13 = vcmp.ge.f32.partialorder %v1578_v4, 0.0  ;;  %v1594_v20 = vmul.f32 0.2, %v1592_v44  ;;  %vm1593_vm14 = vcmp.ge.f32.partialorder %v1592_v44, 0.0 }
 0x308   : > { %v1527_v56 = vadd.f32 %v1526_v48, %v1513_v57  ;;  %v1554_v57 = vmul.f32 %v1553_v43, %v4145_v53  ;;  %v1580_v48 = vmul.f32 0.2, %v1578_v4  ;;  %v1568_v62 = vmul.f32 %v1567_v54, %v4144_v60 }
 0x309   : > { %v4149_v43 = vstv %s3606_s11  ;;  %v1606_v5 = vadd.f32 %v1605_v0, %v3400_v61  ;;  %v1633_v54 = vrot.slane %v3631_v55, %v3468_v35  ;;  %v4148_v60 = vstv %s3616_s9 }
 0x30a   : > { %v1541_v40 = vadd.f32 %v1540_v52, %v1527_v56  ;;  %v3611_v58 = vpop.permute.xlu1 %1084  ;;  %v1619_v56 = vrot.slane %v3553_v46, %v3535_v31  ;;  %v1581_v3 = vsel %vm1579_vm13, %v1578_v4, %v1580_v48  ;;  %v1595_v4 = vsel %vm1593_vm14, %v1592_v44, %v1594_v20 }
 0x30b   : > { %v1608_v48 = vmul.f32 0.2, %v1606_v5  ;;  %vm1607_vm15 = vcmp.ge.f32.partialorder %v1606_v5, 0.0  ;;  %v1596_v0 = vmul.f32 %v1595_v4, %v4148_v60  ;;  %v4146_v20 = vstv %s3633_s30 }
 0x30c   : > { %v1555_v30 = vadd.f32 %v1554_v57, %v1541_v40  ;;  %v1582_v57 = vmul.f32 %v1581_v3, %v4149_v43  ;;  %v1620_v46 = vadd.f32 %v1619_v56, %v3422_v8  ;;  %v1647_v8 = vrot.slane %v3631_v55, %v3470_v36 }
 0x30d   : > { %v4147_v56 = vstv %s3627_s8  ;;  %v1609_v3 = vsel %vm1607_vm15, %v1606_v5, %v1608_v48 }
 0x30e   : > { %v3625_v52 = vpop.permute.xlu1 %1114  ;;  %v1569_v40 = vadd.f32 %v1568_v62, %v1555_v30  ;;  %v1622_v30 = vmul.f32 0.2, %v1620_v46  ;;  %v1634_v62 = vadd.f32 %v1633_v54, %v3426_v10  ;;  %vm1621_vm1 = vcmp.ge.f32.partialorder %v1620_v46, 0.0 }
 0x30f   : > { %v1610_v10 = vmul.f32 %v1609_v3, %v4147_v56  ;;  %v1648_v5 = vadd.f32 %v1647_v8, %v3430_v12  ;;  %v1689_v3 = vrot.slane %v3631_v55, %v3499_v49  ;;  %v4162_v56 = vstv %s3653_s15 }
 0x310   : > { %v1583_v53 = vadd.f32 %v1582_v57, %v1569_v40  ;;  %v1661_v40 = vrot.slane %v3631_v55, %v3480_v41  ;;  %v1623_v57 = vsel %vm1621_vm1, %v1620_v46, %v1622_v30  ;;  %v1636_v54 = vmul.f32 0.2, %v1634_v62 }
 0x311   : > { %vm1635_vm2 = vcmp.ge.f32.partialorder %v1634_v62, 0.0  ;;  %v1624_v48 = vmul.f32 %v1623_v57, %v4146_v20  ;;  %v4154_v46 = vstv %s3643_s25  ;;  %v1650_v8 = vmul.f32 0.2, %v1648_v5 }
 0x312   : > { %v3641_v61 = vpop.permute.xlu1 %1129  ;;  %v1597_v44 = vadd.f32 %v1596_v0, %v1583_v53  ;;  %v1662_v12 = vadd.f32 %v1661_v40, %v3405_v63  ;;  %v1675_v0 = vrot.slane %v3631_v55, %v3491_v45  ;;  %v1637_v30 = vsel %vm1635_vm2, %v1634_v62, %v1636_v54 }
 0x313   : > { %vm1649_vm3 = vcmp.ge.f32.partialorder %v1648_v5, 0.0  ;;  %v1717_v57 = vrot.slane %v3631_v55, %v3525_v51  ;;  %v1731_v63 = vrot.slane %v3631_v55, %v3535_v31  ;;  %v4161_v20 = vstv %s3651_s22 }
 0x314   : > { %v1611_v53 = vadd.f32 %v1610_v10, %v1597_v44  ;;  %v1703_v44 = vrot.slane %v3631_v55, %v3509_v7  ;;  %v3683_v10 = vpop.trf.xlu0  ;;  %v1638_v60 = vmul.f32 %v1637_v30, %v4154_v46  ;;  %v1664_v43 = vmul.f32 0.2, %v1662_v12 }
 0x315   : > { %v1676_v47 = vadd.f32 %v1675_v0, %v3434_v14  ;;  %v1745_v18 = vrot.slane %v3683_v10, %v3468_v35  ;;  %v1651_v55 = vsel %vm1649_vm3, %v1648_v5, %v1650_v8  ;;  %vm1663_vm4 = vcmp.ge.f32.partialorder %v1662_v12, 0.0 }
 0x316   : > { %v3663_v4 = vpop.permute.xlu1 %1159  ;;  %v1625_v40 = vadd.f32 %v1624_v48, %v1611_v53  ;;  %v1690_v53 = vadd.f32 %v1689_v3, %v3438_v16  ;;  %v1704_v48 = vadd.f32 %v1703_v44, %v3412_v2  ;;  %v1718_v30 = vadd.f32 %v1717_v57, %v3444_v21 }
 0x317   : > { %v1732_v14 = vadd.f32 %v1731_v63, %v3448_v23  ;;  %v1759_v0 = vrot.slane %v3683_v10, %v3470_v36  ;;  %v4164_v46 = vstv %s3665_s0  ;;  %v1652_v16 = vmul.f32 %v1651_v55, %v4161_v20 }
 0x318   : > { %v1639_v19 = vadd.f32 %v1638_v60, %v1625_v40  ;;  %v1665_v3 = vsel %vm1663_vm4, %v1662_v12, %v1664_v43  ;;  %v1678_v2 = vmul.f32 0.2, %v1676_v47  ;;  %v1746_v21 = vadd.f32 %v1745_v18, %v3419_v6 }
 0x319   : > { %vm1677_vm5 = vcmp.ge.f32.partialorder %v1676_v47, 0.0  ;;  %vm1691_vm6 = vcmp.ge.f32.partialorder %v1690_v53, 0.0  ;;  %v1692_v23 = vmul.f32 0.2, %v1690_v53  ;;  %v1706_v60 = vmul.f32 0.2, %v1704_v48 }
 0x31a   : > { %v3691_v62 = vpop.permute.xlu1 %1174  ;;  %vm1705_vm7 = vcmp.ge.f32.partialorder %v1704_v48, 0.0  ;;  %v1720_v57 = vmul.f32 0.2, %v1718_v30  ;;  %v1734_v43 = vmul.f32 0.2, %v1732_v14  ;;  %v1760_v12 = vadd.f32 %v1759_v0, %v3452_v25 }
 0x31b   : > { %v1653_v6 = vadd.f32 %v1652_v16, %v1639_v19  ;;  %vm1719_vm8 = vcmp.ge.f32.partialorder %v1718_v30, 0.0  ;;  %vm1733_vm9 = vcmp.ge.f32.partialorder %v1732_v14, 0.0  ;;  %v1773_v18 = vrot.slane %v3683_v10, %v3480_v41 }
 0x31c   : > { %v1666_v63 = vmul.f32 %v1665_v3, %v4162_v56  ;;  %v4163_v40 = vstv %s3699_s7  ;;  %v1748_v20 = vmul.f32 0.2, %v1746_v21  ;;  %v1679_v8 = vsel %vm1677_vm5, %v1676_v47, %v1678_v2 }
 0x31d   : > { %v1693_v5 = vsel %vm1691_vm6, %v1690_v53, %v1692_v23  ;;  %v1707_v25 = vsel %vm1705_vm7, %v1704_v48, %v1706_v60  ;;  %vm1747_vm10 = vcmp.ge.f32.partialorder %v1746_v21, 0.0  ;;  %v1721_v0 = vsel %vm1719_vm8, %v1718_v30, %v1720_v57 }
 0x31e   : > { %v3724_v44 = vpop.permute.xlu1 %1204  ;;  %v1735_v16 = vsel %vm1733_vm9, %v1732_v14, %v1734_v43  ;;  %v1762_v54 = vmul.f32 0.2, %v1760_v12  ;;  %v1667_v56 = vadd.f32 %v1666_v63, %v1653_v6  ;;  %vm1761_vm11 = vcmp.ge.f32.partialorder %v1760_v12, 0.0 }
 0x31f   : > { %v3738_v55 = vadd.f32 %v1773_v18, %v3456_v27  ;;  %v4225_v53 = vstv %s3655_s26  ;;  %v1694_v48 = vmul.f32 %v1693_v5, %v4164_v46  ;;  %v4226_v23 = vstv %s3667_s2 }
 0x320   : > { %v1680_v2 = vmul.f32 %v1679_v8, %v4225_v53  ;;  %v3748_v60 = vmul.f32 %v1707_v25, %v4226_v23  ;;  %v1749_v30 = vsel %vm1747_vm10, %v1746_v21, %v1748_v20  ;;  %v4227_v14 = vstv %s3669_s3 }
 0x321   : > { %v3752_v57 = vmul.f32 %v1721_v0, %v4227_v14  ;;  %v4228_v43 = vstv %s3671_s5  ;;  %v3762_v63 = vsel %vm1761_vm11, %v1760_v12, %v1762_v54  ;;  %v3770_v21 = vmul.f32 %v1749_v30, %v4163_v40 }
 0x322   : > { %v3740_v47 = vpop.permute.xlu1 %1219  ;;  %v3756_v6 = vmul.f32 %v1735_v16, %v4228_v43  ;;  %v1681_v20 = vadd.f32 %v1680_v2, %v1667_v56  ;;  %v3773_v0 = vmul.f32 0.2, %v3738_v55  ;;  %vm1775_vm2 = vcmp.ge.f32.partialorder %v3738_v55, 0.0 }
 0x323   : > { %v4232_v19 = vstv %s3507_s20 }
 0x342   : > { %v781_v16 = vpop.trf.xlu1 }
 0x343   : > { %v805_v23 = vrot.slane %v781_v16, %v3468_v35  ;;  %v820_v54 = vrot.slane %v781_v16, %v3470_v36  ;;  %v835_v12 = vrot.slane %v781_v16, %v3480_v41  ;;  %v850_v14 = vrot.slane %v781_v16, %v3491_v45 }
 0x344   : > { %v865_v56 = vrot.slane %v781_v16, %v3499_v49  ;;  %v880_v2 = vrot.slane %v781_v16, %v3509_v7  ;;  %v895_v30 = vrot.slane %v781_v16, %v3525_v51  ;;  %v910_v43 = vrot.slane %v781_v16, %v3535_v31 }
 0x345   : > { %v806_v25 = vadd.f32 %v805_v23, %v3424_v9  ;;  %v821_v8 = vadd.f32 %v820_v54, %v3428_v11  ;;  %v836_v40 = vadd.f32 %v835_v12, %v3460_v29  ;;  %v851_v53 = vadd.f32 %v850_v14, %v3464_v32 }
 0x346   : > { %v866_v5 = vadd.f32 %v865_v56, %v3432_v13  ;;  %v881_v46 = vadd.f32 %v880_v2, %v3472_v37  ;;  %v896_v18 = vadd.f32 %v895_v30, %v3482_v42  ;;  %v911_v3 = vadd.f32 %v910_v43, %v3436_v15  ;;  %v3798_v56 = vpop.trf.xlu1 }
 0x347   : > { %vm807_vm12 = vcmp.ge.f32.partialorder %v806_v25, 0.0  ;;  %v808_v16 = vmul.f32 0.2, %v806_v25  ;;  %vm822_vm13 = vcmp.ge.f32.partialorder %v821_v8, 0.0  ;;  %v823_v9 = vmul.f32 0.2, %v821_v8 }
 0x348   : > { %vm837_vm14 = vcmp.ge.f32.partialorder %v836_v40, 0.0  ;;  %v838_v11 = vmul.f32 0.2, %v836_v40  ;;  %vm852_vm15 = vcmp.ge.f32.partialorder %v851_v53, 0.0  ;;  %v853_v29 = vmul.f32 0.2, %v851_v53 }
 0x349   : > { %v809_v32 = vsel %vm807_vm12, %v806_v25, %v808_v16  ;;  %v824_v13 = vsel %vm822_vm13, %v821_v8, %v823_v9  ;;  %vm867_vm1 = vcmp.ge.f32.partialorder %v866_v5, 0.0  ;;  %v868_v37 = vmul.f32 0.2, %v866_v5 }
 0x34a   : > { %v4229_v42 = vstv %s3484_s24  ;;  %v4230_v54 = vstv %s3486_s17  ;;  %v839_v12 = vsel %vm837_vm14, %v836_v40, %v838_v11  ;;  %v854_v14 = vsel %vm852_vm15, %v851_v53, %v853_v29  ;;  %s4276_s17 = sld [smem:[#allocation49_spill]] }
 0x34b   : > { %v811_v23 = vmul.f32 %v4229_v42, %v809_v32  ;;  %v826_v15 = vmul.f32 %v4230_v54, %v824_v13  ;;  %v1695_v2 = vadd.f32 %v1694_v48, %v1681_v20  ;;  %v4231_v30 = vstv %s3497_s21 }
 0x34c   : > { %v841_v43 = vmul.f32 %v4231_v30, %v839_v12  ;;  %v856_v27 = vmul.f32 %v4232_v19, %v854_v14  ;;  %vm882_vm3 = vcmp.ge.f32.partialorder %v881_v46, 0.0  ;;  %v869_v25 = vsel %vm867_vm1, %v866_v5, %v868_v37 }
 0x34d   : > { %v827_v8 = vadd.f32 %v826_v15, %v811_v23  ;;  %v883_v16 = vmul.f32 0.2, %v881_v46  ;;  %vm897_vm4 = vcmp.ge.f32.partialorder %v896_v18, 0.0  ;;  %v898_v9 = vmul.f32 0.2, %v896_v18 }
 0x34e   : > { %vm912_vm5 = vcmp.ge.f32.partialorder %v911_v3, 0.0  ;;  %v913_v32 = vmul.f32 0.2, %v911_v3  ;;  %v925_v40 = vrot.slane %v3798_v56, %v3468_v35  ;;  %v940_v48 = vrot.slane %v3798_v56, %v3470_v36 }
 0x34f   : > { %v842_v53 = vadd.f32 %v841_v43, %v827_v8  ;;  %v884_v11 = vsel %vm882_vm3, %v881_v46, %v883_v16  ;;  %v955_v19 = vrot.slane %v3798_v56, %v3480_v41  ;;  %v1709_v20 = vadd.f32 %v3748_v60, %v1695_v2  ;;  %v1782_v2 = vpop.permute.xlu0 %1781 }
 0x350   : > { %v4233_v29 = vstv %s3522_s12  ;;  %v4234_v13 = vstv %s3532_s27  ;;  %v926_v42 = vadd.f32 %v925_v40, %v3495_v59  ;;  %v899_v54 = vsel %vm897_vm4, %v896_v18, %v898_v9  ;;  %s4277_s21 = smov %s4276_s17 }
 0x351   : > { %v871_v5 = vmul.f32 %v4233_v29, %v869_v25  ;;  %v886_v37 = vmul.f32 %v4234_v13, %v884_v11  ;;  %v857_v23 = vadd.f32 %v856_v27, %v842_v53  ;;  %v914_v15 = vsel %vm912_vm5, %v911_v3, %v913_v32 }
 0x352   : > { %v941_v46 = vadd.f32 %v940_v48, %v3515_v34  ;;  %vm927_vm6 = vcmp.ge.f32.partialorder %v926_v42, 0.0  ;;  %v928_v12 = vmul.f32 0.2, %v926_v42  ;;  %v956_v14 = vadd.f32 %v955_v19, %v3440_v17 }
 0x353   : > { %v970_v60 = vrot.slane %v3798_v56, %v3491_v45  ;;  %v872_v30 = vadd.f32 %v871_v5, %v857_v23  ;;  %v985_v59 = vrot.slane %v3798_v56, %v3499_v49  ;;  %v4235_v18 = vstv %s3701_s16 }
 0x354   : > { %vm942_vm7 = vcmp.ge.f32.partialorder %v941_v46, 0.0  ;;  %v943_v43 = vmul.f32 0.2, %v941_v46  ;;  %v929_v3 = vsel %vm927_vm6, %v926_v42, %v928_v12  ;;  %vm957_vm8 = vcmp.ge.f32.partialorder %v956_v14, 0.0 }
 0x355   : > { %v958_v34 = vmul.f32 0.2, %v956_v14  ;;  %v971_v27 = vadd.f32 %v970_v60, %v3539_v1  ;;  %v3826_v17 = vmul.f32 %v3762_v63, %v4235_v18  ;;  %v887_v8 = vadd.f32 %v886_v37, %v872_v30  ;;  %v3841_v63 = vpop.trf.xlu1 }
 0x356   : > { %v4236_v25 = vstv %s3545_s6  ;;  %v986_v9 = vadd.f32 %v985_v59, %v3555_v39  ;;  %v1723_v32 = vadd.f32 %v3752_v57, %v1709_v20  ;;  %v1777_v40 = vsel %vm1775_vm2, %v3738_v55, %v3773_v0 }
 0x357   : > { %v901_v16 = vmul.f32 %v4236_v25, %v899_v54  ;;  %v4237_v53 = vrot.slane %v3683_v10, %v3491_v45  ;;  %v4238_v11 = vstv %s3557_s13  ;;  %v4239_v29 = vstv %s3568_s23  ;;  %s2881_s13 = smov [#allocation17]  }
 0x358   : > { %v916_v48 = vmul.f32 %v4238_v11, %v914_v15  ;;  %v931_v5 = vmul.f32 %v4239_v29, %v929_v3  ;;  %v944_v39 = vsel %vm942_vm7, %v941_v46, %v943_v43  ;;  %v959_v57 = vsel %vm957_vm8, %v956_v14, %v958_v34  ;;  %s2722_s23 = sshll.u32 %s2881_s13, 4  ;;  %s2723_s23 = int_to_ptr.vmem [resolvable:$false] %s2722_s23 }
 0x359   : > { %v1788_v1 = vadd.f32 %v4237_v53, %v1782_v2  ;;  %v902_v19 = vadd.f32 %v901_v16, %v887_v8  ;;  %v973_v20 = vmul.f32 0.2, %v971_v27  ;;  %v1000_v55 = vrot.slane %v3798_v56, %v3509_v7 }
 0x35a   : > { %v1015_v0 = vrot.slane %v3798_v56, %v3525_v51  ;;  %v1030_v13 = vrot.slane %v3798_v56, %v3535_v31  ;;  %vm972_vm9 = vcmp.ge.f32.partialorder %v971_v27, 0.0  ;;  %v988_v42 = vmul.f32 0.2, %v986_v9 }
 0x35b   : > { %v917_v37 = vadd.f32 %v916_v48, %v902_v19  ;;  %v1045_v23 = vrot.slane %v3841_v63, %v3468_v35  ;;  %vm987_vm10 = vcmp.ge.f32.partialorder %v986_v9, 0.0  ;;  %v1001_v54 = vadd.f32 %v1000_v55, %v3446_v22 }
 0x35c   : > { %v1016_v15 = vadd.f32 %v1015_v0, %v3570_v33  ;;  %v1031_v46 = vadd.f32 %v1030_v13, %v3450_v24  ;;  %v1737_v12 = vadd.f32 %v3756_v6, %v1723_v32  ;;  %v4240_v60 = vstv %s3578_s10  ;;  %s2724_s10 = scalar_lea.vmem %s2723_s23, 512 }
 0x35d   : > { %v932_v14 = vadd.f32 %v931_v5, %v917_v37  ;;  %v946_v2 = vmul.f32 %v4240_v60, %v944_v39  ;;  %v1060_v56 = vrot.slane %v3841_v63, %v3470_v36  ;;  %v4241_v30 = vstv %s3587_s14 }
 0x35e   : > { %v961_v43 = vmul.f32 %v4241_v30, %v959_v57  ;;  %v974_v59 = vsel %vm972_vm9, %v971_v27, %v973_v20  ;;  %v1003_v3 = vmul.f32 0.2, %v1001_v54  ;;  %v1046_v22 = vadd.f32 %v1045_v23, %v3454_v26 }
 0x35f   : > { %v947_v34 = vadd.f32 %v946_v2, %v932_v14  ;;  %v989_v33 = vsel %vm987_vm10, %v986_v9, %v988_v42  ;;  %vm1002_vm11 = vcmp.ge.f32.partialorder %v1001_v54, 0.0  ;;  %v1018_v24 = vmul.f32 0.2, %v1016_v15 }
 0x360   : > { %vm1017_vm12 = vcmp.ge.f32.partialorder %v1016_v15, 0.0  ;;  %v1033_v6 = vmul.f32 0.2, %v1031_v46  ;;  %v1061_v18 = vadd.f32 %v1060_v56, %v3583_v38  ;;  %v1075_v8 = vrot.slane %v3841_v63, %v3480_v41 }
 0x361   : > { %vm1789_vm13 = vcmp.ge.f32.partialorder %v1788_v1, 0.0  ;;  %v962_v25 = vadd.f32 %v961_v43, %v947_v34  ;;  %v4242_v16 = vstv %s3593_s28  ;;  %vm1032_vm14 = vcmp.ge.f32.partialorder %v1031_v46, 0.0  ;;  %v3894_v43 = vpop.trf.xlu1 }
 0x362   : > { %v976_v27 = vmul.f32 %v4242_v16, %v974_v59  ;;  %v1790_v32 = vmul.f32 0.2, %v1788_v1  ;;  %v4243_v53 = vstv %s3606_s11  ;;  %v1004_v9 = vsel %vm1002_vm11, %v1001_v54, %v1003_v3 }
 0x363   : > { %v991_v26 = vmul.f32 %v4243_v53, %v989_v33  ;;  %vm1047_vm15 = vcmp.ge.f32.partialorder %v1046_v22, 0.0  ;;  %v1019_v48 = vsel %vm1017_vm12, %v1016_v15, %v1018_v24  ;;  %v1048_v19 = vmul.f32 0.2, %v1046_v22 }
 0x364   : > { %v977_v11 = vadd.f32 %v976_v27, %v962_v25  ;;  %v1090_v38 = vrot.slane %v3841_v63, %v3491_v45  ;;  %v1034_v29 = vsel %vm1032_vm14, %v1031_v46, %v1033_v6  ;;  %v1063_v5 = vmul.f32 0.2, %v1061_v18  ;;  %v3888_v46 = vpop.permute.xlu0 %1234 }
 0x365   : > { %v1076_v39 = vadd.f32 %v1075_v8, %v3598_v50  ;;  %v1105_v57 = vrot.slane %v3841_v63, %v3499_v49  ;;  %v4244_v55 = vstv %s3616_s9  ;;  %vm1062_vm1 = vcmp.ge.f32.partialorder %v1061_v18, 0.0 }
 0x366   : > { %v992_v20 = vadd.f32 %v991_v26, %v977_v11  ;;  %v1006_v0 = vmul.f32 %v4244_v55, %v1004_v9  ;;  %v1120_v13 = vrot.slane %v3841_v63, %v3509_v7  ;;  %v1751_v37 = vadd.f32 %v3770_v21, %v1737_v12 }
 0x367   : > { %v4245_v42 = vstv %s3709_s18  ;;  %v1091_v54 = vadd.f32 %v1090_v38, %v3611_v58  ;;  %v1135_v15 = vrot.slane %v3841_v63, %v3525_v51  ;;  %v1791_v50 = vsel %vm1789_vm13, %v1788_v1, %v1790_v32 }
 0x368   : > { %v1778_v23 = vmul.f32 %v1777_v40, %v4245_v42  ;;  %v1007_v14 = vadd.f32 %v1006_v0, %v992_v20  ;;  %v4246_v60 = vstv %s3627_s8  ;;  %v4247_v56 = vstv %s3633_s30  ;;  %v1824_v32 = vpop.permute.xlu0 %1823 }
 0x369   : > { %v1021_v2 = vmul.f32 %v4246_v60, %v1019_v48  ;;  %v1036_v30 = vmul.f32 %v4247_v56, %v1034_v29  ;;  %v1049_v21 = vsel %vm1047_vm15, %v1046_v22, %v1048_v19  ;;  %v1064_v58 = vsel %vm1062_vm1, %v1061_v18, %v1063_v5 }
 0x36a   : > { %v1078_v40 = vmul.f32 0.2, %v1076_v39  ;;  %v1106_v12 = vadd.f32 %v1105_v57, %v3458_v28  ;;  %vm1077_vm2 = vcmp.ge.f32.partialorder %v1076_v39, 0.0  ;;  %v1121_v1 = vadd.f32 %v1120_v13, %v3625_v52 }
 0x36b   : > { %v1022_v59 = vadd.f32 %v1021_v2, %v1007_v14  ;;  %v1150_v3 = vrot.slane %v3841_v63, %v3535_v31  ;;  %v1765_v34 = vadd.f32 %v3826_v17, %v1751_v37  ;;  %v1093_v33 = vmul.f32 0.2, %v1091_v54  ;;  %v1796_v19 = vpop.permute.xlu1 %1795 }
 0x36c   : > { %v1136_v24 = vadd.f32 %v1135_v15, %v3641_v61  ;;  %v1165_v22 = vrot.slane %v3894_v43, %v3468_v35  ;;  %v4248_v6 = vstv %s3712_s19  ;;  %v4249_v25 = vstv %s3643_s25  ;;  %v4251_v61 = vld [vmem:[#allocation38_spill] sm:$0xff] }
 0x36d   : > { %v1792_v18 = vmul.f32 %v1791_v50, %v4248_v6  ;;  %v1037_v8 = vadd.f32 %v1036_v30, %v1022_v59  ;;  %v1051_v28 = vmul.f32 %v4249_v25, %v1049_v21  ;;  %vm1092_vm3 = vcmp.ge.f32.partialorder %v1091_v54, 0.0 }
 0x36e   : > { %v4250_v16 = vstv %s3651_s22  ;;  %v1079_v52 = vsel %vm1077_vm2, %v1076_v39, %v1078_v40  ;;  %vm1107_vm4 = vcmp.ge.f32.partialorder %v1106_v12, 0.0  ;;  %v1108_v63 = vmul.f32 0.2, %v1106_v12  ;;  %v4257_v40 = vld [vmem:[#allocation39_spill] sm:$0xff] }
 0x36f   : > { %v1066_v27 = vmul.f32 %v4250_v16, %v1064_v58  ;;  %v1052_v17 = vadd.f32 %v1051_v28, %v1037_v8  ;;  %vm1122_vm5 = vcmp.ge.f32.partialorder %v1121_v1, 0.0  ;;  %v1123_v53 = vmul.f32 0.2, %v1121_v1 }
 0x370   : > { %v1151_v26 = vadd.f32 %v1150_v3, %v4251_v61  ;;  %v1094_v35 = vsel %vm1092_vm3, %v1091_v54, %v1093_v33  ;;  %v1138_v9 = vmul.f32 0.2, %v1136_v24  ;;  %v1166_v11 = vadd.f32 %v1165_v22, %v3663_v4 }
 0x371   : > { %v1180_v48 = vrot.slane %v3894_v43, %v3470_v36  ;;  %v1779_v38 = vadd.f32 %v1778_v23, %v1765_v34  ;;  %v1067_v29 = vadd.f32 %v1066_v27, %v1052_v17  ;;  %v4252_v5 = vstv %s3653_s15 }
 0x372   : > { %v1081_v39 = vmul.f32 %v4252_v5, %v1079_v52  ;;  %vm1137_vm6 = vcmp.ge.f32.partialorder %v1136_v24, 0.0  ;;  %v4253_v57 = vrot.slane %v3683_v10, %v3525_v51  ;;  %v1109_v55 = vsel %vm1107_vm4, %v1106_v12, %v1108_v63 }
 0x373   : > { %v1195_v4 = vrot.slane %v3894_v43, %v3480_v41  ;;  %v1210_v36 = vrot.slane %v3894_v43, %v3491_v45  ;;  %v4254_v13 = vstv %s3655_s26  ;;  %v1124_v42 = vsel %vm1122_vm5, %v1121_v1, %v1123_v53  ;;  %v1810_v45 = vpop.permute.xlu1 %1809 }
 0x374   : > { %v3920_v20 = vadd.f32 %v4253_v57, %v1824_v32  ;;  %v1082_v0 = vadd.f32 %v1081_v39, %v1067_v29  ;;  %v1096_v37 = vmul.f32 %v4254_v13, %v1094_v35  ;;  %v1153_v23 = vmul.f32 0.2, %v1151_v26 }
 0x375   : > { %v1181_v54 = vadd.f32 %v1180_v48, %v3691_v62  ;;  %v1139_v15 = vsel %vm1137_vm6, %v1136_v24, %v1138_v9  ;;  %v1168_v50 = vmul.f32 0.2, %v1166_v11  ;;  %vm1152_vm7 = vcmp.ge.f32.partialorder %v1151_v26, 0.0 }
 0x376   : > { %v4255_v14 = vstv %s3665_s0  ;;  %vm1167_vm8 = vcmp.ge.f32.partialorder %v1166_v11, 0.0  ;;  %v1225_v41 = vrot.slane %v3894_v43, %v3499_v49  ;;  %v1097_v2 = vadd.f32 %v1096_v37, %v1082_v0  ;;  %s3949_s0 = sld [smem:[#allocation15 + $0x1e]] }
 0x377   : > { %v1111_v60 = vmul.f32 %v4255_v14, %v1109_v55  ;;  %v1793_v56 = vadd.f32 %v1792_v18, %v1779_v38  ;;  %v4256_v30 = vstv %s3667_s2  ;;  %v1211_v58 = vadd.f32 %v1210_v36, %v3724_v44  ;;  %v1250_v63 = vpop.permute.xlu1 %1249  ;;  %s3967_s2 = sld [smem:[#allocation15 + $0x1f]] }
 0x378   : > { %v1126_v21 = vmul.f32 %v4256_v30, %v1124_v42  ;;  %v1196_v12 = vadd.f32 %v1195_v4, %v4257_v40  ;;  %v4258_v59 = vstv %s3669_s3  ;;  %v1154_v3 = vsel %vm1152_vm7, %v1151_v26, %v1153_v23  ;;  %s3976_s3 = sld [smem:[#allocation2]] }
 0x379   : > { %v1141_v62 = vmul.f32 %v4258_v59, %v1139_v15  ;;  %v1112_v1 = vadd.f32 %v1111_v60, %v1097_v2  ;;  %v4259_v34 = vrot.slane %v3683_v10, %v3499_v49  ;;  %v1169_v24 = vsel %vm1167_vm8, %v1166_v11, %v1168_v50 }
 0x37a   : > { %v1183_v22 = vmul.f32 0.2, %v1181_v54  ;;  %v1240_v6 = vrot.slane %v3894_v43, %v3509_v7  ;;  %v4260_v18 = vrot.slane %v3683_v10, %v3509_v7  ;;  %vm1831_vm9 = vcmp.ge.f32.partialorder %v3920_v20, 0.0 }
 0x37b   : > { %v1802_v33 = vadd.f32 %v4259_v34, %v1796_v19  ;;  %vm1182_vm10 = vcmp.ge.f32.partialorder %v1181_v54, 0.0  ;;  %v1226_v8 = vadd.f32 %v1225_v41, %v3740_v47  ;;  %v1127_v25 = vadd.f32 %v1126_v21, %v1112_v1  ;;  %v1265_v55 = vpop.permute.xlu1 %1264 }
 0x37c   : > { %v1816_v44 = vadd.f32 %v4260_v18, %v1810_v45  ;;  %v1213_v49 = vmul.f32 0.2, %v1211_v58  ;;  %v4261_v28 = vstv %s3671_s5  ;;  %v1198_v27 = vmul.f32 0.2, %v1196_v12  ;;  %s4270_s5 = sld [smem:[#allocation37_spill]] }
 0x37d   : > { %vm1803_vm11 = vcmp.ge.f32.partialorder %v1802_v33, 0.0  ;;  %v1156_v16 = vmul.f32 %v4261_v28, %v1154_v3  ;;  %v1804_v52 = vmul.f32 0.2, %v1802_v33  ;;  %v1142_v32 = vadd.f32 %v1141_v62, %v1127_v25  ;;  %v547_v25 = vld [vmem:[%s3254_s1] sm:$0xff] }
 0x37e   : > { %vm1197_vm12 = vcmp.ge.f32.partialorder %v1196_v12, 0.0  ;;  %vm1817_vm13 = vcmp.ge.f32.partialorder %v1816_v44, 0.0  ;;  %v1818_v7 = vmul.f32 0.2, %v1816_v44  ;;  %v1184_v17 = vsel %vm1182_vm10, %v1181_v54, %v1183_v22 }
 0x37f   : > { %v1805_v53 = vsel %vm1803_vm11, %v1802_v33, %v1804_v52  ;;  %v1241_v61 = vadd.f32 %v1240_v6, %v3888_v46  ;;  %v1255_v47 = vrot.slane %v3894_v43, %v3525_v51  ;;  %v4262_v26 = vstv %s3699_s7  ;;  %v1838_v21 = vpop.permute.xlu1 %1837 }
 0x380   : > { %v1171_v35 = vmul.f32 %v4262_v26, %v1169_v24  ;;  %vm1212_vm14 = vcmp.ge.f32.partialorder %v1211_v58, 0.0  ;;  %v1228_v9 = vmul.f32 0.2, %v1226_v8  ;;  %v1157_v11 = vadd.f32 %v1156_v16, %v1142_v32 }
 0x381   : > { %v1199_v48 = vsel %vm1197_vm12, %v1196_v12, %v1198_v27  ;;  %v1819_v19 = vsel %vm1817_vm13, %v1816_v44, %v1818_v7  ;;  %v1256_v38 = vadd.f32 %v1255_v47, %v1250_v63  ;;  %v1270_v29 = vrot.slane %v3894_v43, %v3535_v31 }
 0x382   : > { %v4263_v5 = vstv %s3701_s16  ;;  %vm1227_vm15 = vcmp.ge.f32.partialorder %v1226_v8, 0.0  ;;  %v1172_v46 = vadd.f32 %v1171_v35, %v1157_v11  ;;  %v4264_v57 = vstv %s3720_s29  ;;  %s4271_s7 = scalar_lea.vmem [#allocation9], %s4270_s5  ;;  %s546_s29 = scalar_lea.vmem [#allocation17], %s4270_s5 }
 0x383   : > { %v1186_v39 = vmul.f32 %v4263_v5, %v1184_v17  ;;  %v1806_v51 = vmul.f32 %v1805_v53, %v4264_v57  ;;  %v1832_v4 = vmul.f32 0.2, %v3920_v20  ;;  %v1214_v36 = vsel %vm1212_vm14, %v1211_v58, %v1213_v49  ;;  %s4272_s16 = smov %s4271_s7  ;;  %s1975_s12 = sshll.u32 %s546_s29, 4  ;;  %s4011_s12 = int_to_ptr.vmem [resolvable:$true] %s1975_s12 }
 0x384   : > { %v1243_v0 = vmul.f32 0.2, %v1241_v61  ;;  %v1271_v13 = vadd.f32 %v1270_v29, %v1265_v55  ;;  %v4265_v42 = vstv %s3709_s18  ;;  %vm1242_vm1 = vcmp.ge.f32.partialorder %v1241_v61, 0.0  ;;  %s4273_s18 = sld [smem:[#allocation31_spill]]  ;;  %s2718_s6 = scalar_lea.vmem %s4011_s12, 256 }
 0x385   : > { %v1187_v37 = vadd.f32 %v1186_v39, %v1172_v46  ;;  %v1201_v23 = vmul.f32 %v4265_v42, %v1199_v48  ;;  %v4266_v43 = vstv %s3722_s4  ;;  %v1260_v15 = vstv %s3949_s0  ;;  %s4275_s4 = sld [smem:[#allocation34_spill]]  ;;  %p2719_p9 = scmp.ne.s32.totalorder %s4011_s12, %s2718_s6 }
 0x386   : > { %v1820_v54 = vmul.f32 %v1819_v19, %v4266_v43  ;;  %v1229_v50 = vsel %vm1227_vm15, %v1226_v8, %v1228_v9  ;;  %v1258_v14 = vmul.f32 0.2, %v1256_v38  ;;  %v1843_v60 = vrot.slane %v3683_v10, %v3535_v31  ;;  %p2725_p5 = scmp.lt.s32.totalorder %s4011_s12, %s2723_s23  ;;  %p2726_p11 = scmp.lt.s32.totalorder %s2724_s10, %s2718_s6 }
 0x387   : > { %v4267_v41 = vstv %s3712_s19  ;;  %v1202_v45 = vadd.f32 %v1201_v23, %v1187_v37  ;;  %v1807_v30 = vadd.f32 %v1806_v51, %v1793_v56  ;;  %vm1257_vm2 = vcmp.ge.f32.partialorder %v1256_v38, 0.0  ;;  %v549_v51 = vld [vmem:[%s4272_s16 + $0x8] sm:$0xff]  ;;  %s4274_s19 = sld [smem:[#allocation36_spill]] }
 0x388   : > { %v1216_v2 = vmul.f32 %v4267_v41, %v1214_v36  ;;  %v1833_v58 = vsel %vm1831_vm9, %v3920_v20, %v1832_v4  ;;  %v1244_v40 = vsel %vm1242_vm1, %v1241_v61, %v1243_v0  ;;  %v1273_v12 = vmul.f32 0.2, %v1271_v13  ;;  %p2727_p4 = por %p2726_p11, %p2725_p5 }
 0x389   : > { %v1844_v59 = vadd.f32 %v1843_v60, %v1838_v21  ;;  %v4268_v62 = vmov %v4264_v57  ;;  %v1821_v1 = vadd.f32 %v1820_v54, %v1807_v30  ;;  %vm1272_vm3 = vcmp.ge.f32.partialorder %v1271_v13, 0.0  ;;  %v548_v57 = vld [vmem:[%s4271_s7] sm:$0xff] }
 0x38a   : > { %v1231_v31 = vmul.f32 %v4268_v62, %v1229_v50  ;;  %v1217_v10 = vadd.f32 %v1216_v2, %v1202_v45  ;;  %v1259_v3 = vsel %vm1257_vm2, %v1256_v38, %v1258_v14  ;;  %v1834_v34 = vmul.f32 %v1833_v58, %v1260_v15  ;;  %s2255_s26 = sshll.u32 %s4273_s18, 8 }
 0x38b   : > { %vm1845_vm4 = vcmp.ge.f32.partialorder %v1844_v59, 0.0  ;;  %v1846_v56 = vmul.f32 0.2, %v1844_v59  ;;  %v4269_v24 = vmov %v4266_v43  ;;  %v1275_v6 = vstv %s3967_s2  ;;  %s4009_s20 = scalar_lea.hbm %s4276_s17, %s2255_s26  ;;  %p4278_p10 = scmp.ne.s32.totalorder %s4275_s4, 0 }
 0x38c   : > { %v1232_v33 = vadd.f32 %v1231_v31, %v1217_v10  ;;  %v1246_v22 = vmul.f32 %v4269_v24, %v1244_v40  ;;  %v1274_v18 = vsel %vm1272_vm3, %v1271_v13, %v1273_v12  ;;  %v1261_v44 = vmul.f32 %v1260_v15, %v1259_v3 }
 0x38d   : > { %v1847_v20 = vsel %vm1845_vm4, %v1844_v59, %v1846_v56  ;;  %v1835_v49 = vadd.f32 %v1834_v34, %v1821_v1  ;;  %v1278_v16 = vstv %s3976_s3  ;;  %v1276_v27 = vmul.f32 %v1275_v6, %v1274_v18  ;;  %s1946_s27 = scalar_lea.sflag [#allocation18], %s4274_s19  ;;  %p2720_p0 = pnand %p2719_p9, %p4278_p10 }
 0x38e   : > { %v1848_v8 = vmul.f32 %v1847_v20, %v1275_v6  ;;  %v1247_v28 = vadd.f32 %v1246_v22, %v1232_v33  ;;  %vm1280_vm5 = vcmp.eq.f32.partialorder %v547_v25, 0.0  ;;  %vm1282_vm6 = vcmask 64512  }
 0x38f   : > { %v2879_v55 = vmov 0.0   ;;  %vm2880_vm7 = vmmov 0   ;;  %p2721_p1 = pneg %p2720_p0 }
 0x390   : > { %v1849_v52 = vadd.f32 %v1848_v8, %v1835_v49  ;;  %v1262_v63 = vadd.f32 %v1261_v44, %v1247_v28  ;;  %2295 = vmatprep.subr.mxu0 %v2879_v55  ;;  %2297 = vmatprep.mubr.msk.f32.mxu0 %vm2880_vm7, %v2879_v55 }
 0x391   : > { %2296 = vmatpush3.msra.mxu0 %v548_v57  ;;  %2300 = vmatprep.subr.mxu1 %v2879_v55  ;;  %p2728_p12 = pnand %p2727_p4, %p2721_p1 }
 0x392   : > { %v1850_v32 = vadd.f32 %v1849_v52, %v1278_v16  ;;  %v1277_v7 = vadd.f32 %v1276_v27, %v1262_v63  ;;  %2301 = vmatpush3.msra.mxu1 %v549_v51  ;;  %2302 = vmatprep.mubr.msk.f32.mxu1 %vm2880_vm7, %v2879_v55 }
 0x394   : > { %v1851_v17 = vsel %vm1280_vm5, -1e+09, %v1850_v32  ;;  %v1279_v53 = vadd.f32 %v1278_v16, %v1277_v7 }
 0x395   : > { %v1852_v61 = vsel %vm1282_vm6, %v1851_v17, -inf }
 0x396   : > { %1853 = vmax.xlane.f32.xlu1 %v1852_v61  ;;  %v1281_v47 = vsel %vm1280_vm5, -1e+09, %v1279_v53 }
 0x397   : > { %v1283_v26 = vsel %vm1282_vm6, %v1281_v47, -inf }
 0x398   : > { %1284 = vmax.xlane.f32.xlu0 %v1283_v26 }
 0x423   : > { %v1854_v35 = vpop.xlane.xlu1 %1853 }
 0x424   : > { %v1855_v9 = vsub.f32 %v1851_v17, %v1854_v35 }
 0x425   : > { %v1285_v11 = vpop.xlane.xlu0 %1284 }
 0x426   : > { %v1286_v48 = vsub.f32 %v1281_v47, %v1285_v11  ;;  %v1856_v19 = vmul.f32 1.442695, %v1855_v9 }
 0x428   : > { %v1287_v38 = vmul.f32 1.442695, %v1286_v48 }
 0x42a   : > { %2519 = vpow2.f32 %v1287_v38 }
 0x42b   : > { %2521 = vpow2.f32 %v1856_v19 }
 0x434   : > { %v2520_v29 = vpop.eup %2519 }
 0x435   : > { %v1289_v5 = vsel %vm1282_vm6, %v2520_v29, 0.0  ;;  %v2522_v39 = vpop.eup %2521 }
 0x436   : > { %1290 = vadd.xlane.f32.xlu0 %v1289_v5  ;;  %v1858_v46 = vsel %vm1282_vm6, %v2522_v39, 0.0 }
 0x43a   : > { %1859 = vadd.xlane.f32.xlu0 %v1858_v46 }
 0x4c3   : > { %v1291_v4 = vpop.xlane.xlu0 %1290 }
 0x4c4   : > { %2523 = vrcp.f32 %v1291_v4 }
 0x4c7   : > { %v1860_v36 = vpop.xlane.xlu0 %1859 }
 0x4c8   : > { %2525 = vrcp.f32 %v1860_v36 }
 0x4ce   : > { %v2524_v0 = vpop.eup %2523 }
 0x4cf   : > { %v1293_v13 = vmul.f32 %v2524_v0, %v2520_v29 }
 0x4d1   : > { %2298 = vmatmul.mubr.msk.f32.vlgmr.msra.gmra.mrb[2].mxu0 %vm1282_vm6, %v1293_v13  ;;  %1294 = vst.msk [vmem:[%s546_s29] sm:$0xff] %vm1282_vm6, %v1293_v13 }
 0x4d2   : > { %v2526_v37 = vpop.eup %2525 }
 0x4d3   : > { %v1862_v42 = vmul.f32 %v2526_v37, %v2522_v39 }
 0x4d5   : > { %2303 = vmatmul.mubr.msk.f32.vlgmr.msra.gmra.mrb[2].mxu1 %vm1282_vm6, %v1862_v42  ;;  %2241 = vst.msk [vmem:[%s546_s29 + $0x8] sm:$0xff] %vm1282_vm6, %v1862_v42 }
 0x4d6   : > { %2731 = shalt.err (!%p2728_p12)
}
 0x4d7   : > { %s2732_s14 = scalar_lea.hbm %s4009_s20, 256  ;;  %s2736_s9 = scalar_lea.hbm %s4277_s21, 512 }
 0x4d8   : > { %p2733_p13 = scmp.ne.s32.totalorder %s4009_s20, %s2732_s14  ;;  %p2737_p3 = scmp.lt.u32.totalorder %s4009_s20, %s4277_s21 }
 0x4d9   : > { %p2738_p7 = scmp.lt.u32.totalorder %s2736_s9, %s2732_s14  ;;  %p2740_p9 = scmp.lt.u32.totalorder %s2732_s14, %s4009_s20 }
 0x4da   : > { %p2734_p6 = pnand %p2733_p13, %p4278_p10 }
 0x4db   : > { %p2739_p2 = por %p2738_p7, %p2737_p3 }
 0x4dc   : > { %p2735_p8 = pneg %p2734_p6 }
 0x4dd   : > { %p2741_p0 = por %p2740_p9, %p2739_p2 }
 0x4df   : > { %p2742_p1 = pnand %p2741_p0, %p2735_p8 }
 0x4e1   : > { %2745 = shalt.err (!%p2742_p1)
}
 0x4e2   : > { %s2882_s25 = smov 128   ;;  %s2883_s22 = smov 8  }
 0x4e3   : > { %2342 = dma.vmem_to_hbm [thread:$0]  (%p4278_p10), %s4011_s12, 256, %s4009_s20, %s1946_s27, %s2882_s25, %s2882_s25, %s2883_s22  }
 0x4e4   : > { %s539_s15 = scalar_lea.vmem [#allocation16], %s4270_s5  ;;  %s4279_s7 = sld [smem:[#allocation48_spill]] }
 0x4e5   : > { %s1959_s0 = sshll.u32 %s539_s15, 4  ;;  %s1941_s5 = scalar_lea.sflag [#allocation5], %s4274_s19  ;;  %s4042_s0 = int_to_ptr.vmem [resolvable:$true] %s1959_s0 }
 0x4e6   : > { %s2746_s29 = scalar_lea.vmem %s4042_s0, 256  ;;  %s2884_s1 = smov [#allocation16]  }
 0x4e7   : > { %p2747_p5 = scmp.ne.s32.totalorder %s4042_s0, %s2746_s29  ;;  %s2750_s18 = sshll.u32 %s2884_s1, 4  ;;  %s2751_s18 = int_to_ptr.vmem [resolvable:$false] %s2750_s18 }
 0x4e8   : > { %s2752_s24 = scalar_lea.vmem %s2751_s18, 512  ;;  %p2753_p12 = scmp.lt.s32.totalorder %s4042_s0, %s2751_s18 }
 0x4e9   : > { %p2748_p11 = pnand %p2747_p5, %p4278_p10  ;;  %p2754_p13 = scmp.lt.s32.totalorder %s2752_s24, %s2746_s29 }
 0x4ea   : > { %s4049_s16 = scalar_lea.hbm %s4279_s7, %s2255_s26 }
 0x4eb   : > { %p2749_p4 = pneg %p2748_p11  ;;  %p2755_p6 = por %p2754_p13, %p2753_p12 }
 0x4ed   : > { %p2756_p8 = pnand %p2755_p6, %p2749_p4 }
 0x5a4   : > { %v1364_v23 = vpop.f32.mrb[2].mxu0 }
 0x5a5   : > { %1368 = vst.msk [vmem:[%s539_s15] sm:$0xff] %vm558_vm0, %v1364_v23  ;;  %v2299_v43 = vpop.f32.mrb[3].mxu0 }
 0x5a8   : > { %v1934_v54 = vpop.f32.mrb[2].mxu1 }
 0x5a9   : > { %2243 = vst.msk [vmem:[%s539_s15 + $0x8] sm:$0xff] %vm558_vm0, %v1934_v54  ;;  %v2304_v15 = vpop.f32.mrb[3].mxu1 }
 0x5aa   : > { %2759 = shalt.err (!%p2756_p8)
}
 0x5ab   : > { %s2760_s26 = scalar_lea.hbm %s4049_s16, 256  ;;  %s2764_s12 = scalar_lea.hbm %s4279_s7, 512 }
 0x5ac   : > { %p2761_p3 = scmp.ne.s32.totalorder %s4049_s16, %s2760_s26  ;;  %p2765_p9 = scmp.lt.u32.totalorder %s4049_s16, %s4279_s7 }
 0x5ad   : > { %p2766_p0 = scmp.lt.u32.totalorder %s2764_s12, %s2760_s26  ;;  %p2768_p5 = scmp.lt.u32.totalorder %s2760_s26, %s4049_s16 }
 0x5ae   : > { %p2762_p7 = pnand %p2761_p3, %p4278_p10 }
 0x5af   : > { %p2767_p1 = por %p2766_p0, %p2765_p9 }
 0x5b0   : > { %p2763_p2 = pneg %p2762_p7 }
 0x5b1   : > { %p2769_p11 = por %p2768_p5, %p2767_p1 }
 0x5b3   : > { %p2770_p4 = pnand %p2769_p11, %p2763_p2 }
 0x5b5   : > { %2773 = shalt.err (!%p2770_p4)
}
 0x5b6   : > { %2341 = dma.vmem_to_hbm [thread:$0]  (%p4278_p10), %s4042_s0, 256, %s4049_s16, %s1941_s5, %s2882_s25, %s2882_s25, %s2883_s22  }
 0x5b7 PF: > { %s4280_s13 = sld [smem:[#allocation27_spill]]  ;;  %s4281_s23 = sld [smem:[#allocation35_spill]] }
 0x5b8   : > { %s4282_s10 = sld [smem:[#allocation30_spill]] }
 0x5bd   : > { %s1990_s14 = sand.u32 1, %s4280_s13   ;;  %p4283_p12 = scmp.ne.s32.totalorder %s4281_s23, 0 }
 0x5be   : > { %p4284_p13 = scmp.ge.s32.totalorder %s4282_s10, 2  ;;  %s1991_s28 = scalar_lea.sflag [#allocation5], %s1990_s14 }
 0x5c0   : > { %p2369_p6 = pnand %p4284_p13, %p4283_p12 }
 0x5c2   : > { %2815 = dma.done.wait (!%p2369_p6), %s1991_s28, 256  }
 0x5c3   : > { %2817 = vsyncadd (!%p2369_p6), %s1991_s28, 4294967040  ;;  %s2000_s4 = scalar_lea.sflag [#allocation18], %s1990_s14 }
 0x5c4   : > { %2819 = dma.done.wait (!%p2369_p6), %s2000_s4, 256  }
 0x5c5   : > { %2821 = vsyncadd (!%p2369_p6), %s2000_s4, 4294967040  ;;  %s4285_s18 = sld [smem:[#allocation32_spill]]  ;;  %s4286_s15 = sld [smem:[#allocation28_spill]] }
 0x5c6   : > { %s4287_s16 = sld [smem:[#allocation29_spill]]  ;;  %s4288_s17 = sld [smem:[#allocation33_spill]] }
 0x5cb   : > { %p36_p10 = scmp.ge.s32.totalorder %s4285_s18, 4  }
 0x5cd   :  { %38 = sbr.rel (!%p36_p10) target bundleno = 25 (0x19), region = 170 }
 0x5d4   :  { %2005 = vsyncpa [#allocation4], 1 }
 0x5d5   :  { %2007 = vsyncpa [#allocation4 + $0x1], 1 }
 0x5d6   :  { %2008 = vsyncpa [#allocation8], 1 }
 0x5d7   :  { %2010 = vsyncpa [#allocation8 + $0x1], 1 }
 0x5d8   :  { %2011 = vsyncpa [#allocation11], 1 }
 0x5d9   :  { %2013 = vsyncpa [#allocation11 + $0x1], 1 }
 0x5da   :  { %2014 = vsyncpa [#allocation14], 1 }
 0x5db   :  { %2015 = vsyncpa [#allocation5], 1 }
 0x5dc   :  { %2017 = vsyncpa [#allocation5 + $0x1], 1 }
 0x5dd   :  { %2018 = vsyncpa [#allocation18], 1 }
 0x5de   :  { %2020 = vsyncpa [#allocation18 + $0x1], 1 }
 0x5df   :  { %2021 = vsyncpa [#allocation6], 1 }
 0x5e0   :  { %2023 = vsyncpa [#allocation6 + $0x1], 1 }

</bundles_post_ra>
